<compile_context>
chip_gen: v6e
topology: v6e:2x2x1
jax: 0.10.0
libtpu: 0.0.40
codegen_flags: <defaults>
</compile_context>

<pallas_src>
import functools

import jax
import jax.numpy as jnp
from jax.experimental import pallas as pl
from jax.experimental.pallas import tpu as pltpu

LN_EPS = 1e-5


def _layer_norm(x, gamma, beta):
    mu = jnp.mean(x, axis=-1, keepdims=True)
    var = jnp.mean((x - mu) ** 2, axis=-1, keepdims=True)
    return (x - mu) * jax.lax.rsqrt(var + LN_EPS) * gamma + beta


# ----------------------------------------------------------------------------
# Pallas kernel: `batch_block` batch elements per grid step; batch folded into
# rows for every matmul; Fourier-weight stage lane-dense (lane = head*seq_k+k).
# ----------------------------------------------------------------------------
def attention_network_kernel(
    key_ref,     # (BB, seq_k*KQ)   batch rows, (k, c) flattened onto lanes
    query_ref,   # (BB*seq_q, KQ)
    value_ref,   # (BB*seq_k, H)
    resid_ref,   # (BB*seq_q, H)
    wkb_ref,     # (seq_k*KQ, L)    block-diag key weight, L = h*seq_k
    wqt_ref,     # (KQ, L)          lane-tiled query weight
    sel_ref,     # (L, H)           0/1 head(lane) == head(channel) selector
    wmats_ref,   # (5, H, H)        [wv, wf, w1, w2, w3]  (stored as W.T)
    vecs_ref,    # (8, H)           [bf, g1, be1, b1, b2, b3, g2, be2]
    out_ref,     # (BB*seq_q, H)
):
    BB = key_ref.shape[0]
    L = wqt_ref.shape[1]
    H = sel_ref.shape[1]
    seq_k = value_ref.shape[0] // BB
    seq_q = query_ref.shape[0] // BB
    h = L // seq_k
    d_head = H // h

    wv = wmats_ref[0]
    wf = wmats_ref[1]
    w1 = wmats_ref[2]
    w2 = wmats_ref[3]
    w3 = wmats_ref[4]
    bf, g1, be1 = vecs_ref[0:1, :], vecs_ref[1:2, :], vecs_ref[2:3, :]
    b1, b2, b3 = vecs_ref[3:4, :], vecs_ref[4:5, :], vecs_ref[5:6, :]
    g2, be2 = vecs_ref[6:7, :], vecs_ref[7:8, :]

    # --- projections: all MXU, outputs already in lane-dense layouts ---------
    kf = jnp.dot(key_ref[...], wkb_ref[...],
                 preferred_element_type=jnp.float32)          # (BB, L)
    qf = jnp.dot(query_ref[...], wqt_ref[...],
                 preferred_element_type=jnp.float32)          # (BB*seq_q, L)
    vproj = jnp.dot(value_ref[...], wv,
                    preferred_element_type=jnp.float32)       # (BB*seq_k, H)
    vproj3 = vproj.reshape(BB, seq_k, H)

    # --- Fourier weights via the angle-difference identity -------------------
    # cos(q - k) = cos(q)cos(k) + sin(q)sin(k): cos/sin on the small projected
    # tensors, the big tensor only needs mul+add + one exp per element.
    ck = jnp.cos(kf)[:, None, :]                              # (BB, 1, L)
    sk = jnp.sin(kf)[:, None, :]
    cq = jnp.cos(qf).reshape(BB, seq_q, L)
    sq = jnp.sin(qf).reshape(BB, seq_q, L)
    # exp(cos(q-k)); the exp(-1) constant cancels under the key-axis norm.
    fw = jnp.exp(cq * ck + sq * sk)                           # (BB, seq_q, L)

    # --- per-head value contraction (MXU); normalize AFTER the contraction ---
    chunks = []
    for head in range(h):
        fw_h = fw[:, :, head * seq_k:(head + 1) * seq_k]      # (BB, seq_q, seq_k)
        v_h = vproj3[:, :, head * d_head:(head + 1) * d_head]  # (BB, seq_k, d_head)
        chunks.append(jnp.einsum("bqk,bkd->bqd", fw_h, v_h,
                                 preferred_element_type=jnp.float32))
    num = jnp.concatenate(chunks, axis=-1).reshape(BB * seq_q, H)
    denom = jnp.dot(fw.reshape(BB * seq_q, L), sel_ref[...],
                    preferred_element_type=jnp.float32)       # per-channel denom
    attn = num * pl.reciprocal(denom, approx=True)            # (BB*seq_q, H)

    # --- final linear + residual + LayerNorm1 --------------------------------
    x = resid_ref[...] + jnp.dot(attn, wf, preferred_element_type=jnp.float32) + bf
    x = _layer_norm(x, g1, be1)

    # --- MLP (2 hidden layers, ReLU) + residual + LayerNorm2 ------------------
    y = jnp.maximum(jnp.dot(x, w1, preferred_element_type=jnp.float32) + b1, 0.0)
    y = jnp.maximum(jnp.dot(y, w2, preferred_element_type=jnp.float32) + b2, 0.0)
    y = jnp.dot(y, w3, preferred_element_type=jnp.float32) + b3
    out_ref[...] = _layer_norm(x + y, g2, be2)


# ----------------------------------------------------------------------------
# Wrapper: 2-D row-folded slabs, lane-layout plumbing for the weights, grid
# over batch blocks.
# ----------------------------------------------------------------------------
@functools.partial(jax.jit, static_argnames=("batch_block",))
def attention_network(key, query, value, residual, params, *, batch_block=8):
    B, seq_k, KQ = key.shape
    seq_q = query.shape[1]
    H = value.shape[-1]
    h = params["wk"].shape[-1]
    d_head = H // h
    L = seq_k * h

    BB = batch_block
    assert B % BB == 0, "batch must be divisible by batch_block"
    assert BB == B or BB % 8 == 0, "batch_block must be a multiple of 8 (or B)"

    # Lane-dense 2-D views (batch folded into rows).
    key_flat = key.reshape(B, seq_k * KQ)
    query2d = query.reshape(B * seq_q, KQ)
    value2d = value.reshape(B * seq_k, H)
    resid2d = residual.reshape(B * seq_q, H)

    # Block-diagonal key weight: kf[b, head*seq_k + k] = sum_c key[b,k,c]*wk[c,head]
    eye = jnp.eye(seq_k, dtype=jnp.float32)
    wk_big = jnp.einsum("ch,kj->kchj", params["wk"], eye).reshape(seq_k * KQ, L)
    # Lane-tiled query weight: qf[r, head*seq_k + k] = sum_c query2d[r,c]*wq[c,head]
    wq_tiled = jnp.repeat(params["wq"], seq_k, axis=1)                  # (KQ, L)
    # 0/1 selector expanding the per-head denominator straight to channels.
    lane_head = jnp.arange(L) // seq_k
    chan_head = jnp.arange(H) // d_head
    sel = (lane_head[:, None] == chan_head[None, :]).astype(jnp.float32)  # (L, H)

    # Pack the epilogue parameters: 5 HxH matrices + one (8, H) vector slab.
    wmats = jnp.stack([params["wv"], params["wf"], params["w1"],
                       params["w2"], params["w3"]], axis=0)             # (5, H, H)
    vecs = jnp.concatenate([params["bf"], params["g1"], params["be1"],
                            params["b1"], params["b2"], params["b3"],
                            params["g2"], params["be2"]], axis=0)       # (8, H)

    grid = (B // BB,)
    in_specs = [
        pl.BlockSpec((BB, seq_k * KQ), lambda b: (b, 0)),
        pl.BlockSpec((BB * seq_q, KQ), lambda b: (b, 0)),
        pl.BlockSpec((BB * seq_k, H), lambda b: (b, 0)),
        pl.BlockSpec((BB * seq_q, H), lambda b: (b, 0)),
        pl.BlockSpec((seq_k * KQ, L), lambda b: (0, 0)),
        pl.BlockSpec((KQ, L), lambda b: (0, 0)),
        pl.BlockSpec((L, H), lambda b: (0, 0)),
        pl.BlockSpec((5, H, H), lambda b: (0, 0, 0)),
        pl.BlockSpec((8, H), lambda b: (0, 0)),
    ]
    out_specs = pl.BlockSpec((BB * seq_q, H), lambda b: (b, 0))

    out2d = pl.pallas_call(
        attention_network_kernel,
        grid=grid,
        in_specs=in_specs,
        out_specs=out_specs,
        out_shape=jax.ShapeDtypeStruct((B * seq_q, H), jnp.float32),
        compiler_params=pltpu.CompilerParams(
            dimension_semantics=("parallel",)),
    )(key_flat, query2d, value2d, resid2d, wk_big, wq_tiled, sel, wmats, vecs)

    return out2d.reshape(B, seq_q, H)


# ----------------------------------------------------------------------------
# Pure-JAX reference (original formulation) for correctness check.
# ----------------------------------------------------------------------------
def attention_network_ref(key, query, value, residual, p):
    B, seq_k, _ = key.shape
    seq_q = query.shape[1]
    H = value.shape[-1]
    h = p["wk"].shape[-1]
    d_head = H // h

    kproj = key @ p["wk"]                                # (B, seq_k, h)
    qproj = query @ p["wq"]                              # (B, seq_q, h)
    vproj = value @ p["wv"]                              # (B, seq_k, H)

    diff = qproj[:, :, None, :] - kproj[:, None, :, :]   # (B, seq_q, seq_k, h)
    w = jnp.exp(jnp.cos(diff) - 1.0)
    w = w / jnp.sum(w, axis=2, keepdims=True)
    v_resh = vproj.reshape(B, seq_k, h, d_head)
    attn = jnp.einsum("bqkh,bkhd->bqhd", w, v_resh).reshape(B, seq_q, H)

    x = residual + attn @ p["wf"] + p["bf"]
    mu = jnp.mean(x, axis=-1, keepdims=True)
    var = jnp.mean((x - mu) ** 2, axis=-1, keepdims=True)
    x = (x - mu) * jax.lax.rsqrt(var + LN_EPS) * p["g1"] + p["be1"]

    y = jnp.maximum(x @ p["w1"] + p["b1"], 0.0)
    y = jnp.maximum(y @ p["w2"] + p["b2"], 0.0)
    y = y @ p["w3"] + p["b3"]
    x = x + y
    mu = jnp.mean(x, axis=-1, keepdims=True)
    var = jnp.mean((x - mu) ** 2, axis=-1, keepdims=True)
    return (x - mu) * jax.lax.rsqrt(var + LN_EPS) * p["g2"] + p["be2"]


# ----------------------------------------------------------------------------
# Main
# ----------------------------------------------------------------------------
if __name__ == "__main__":
    # NP instantiates AttentionNetwork(num_hidden=64, kq_num_hidden=64, h=8).
    B, seq_k, seq_q = 16, 16, 8
    num_hidden, num_heads = 64, 8
    kq_hidden = num_hidden

    root = jax.random.PRNGKey(0)
    keys = jax.random.split(root, 24)

    key_in = jax.random.normal(keys[0], (B, seq_k, kq_hidden), jnp.float32)
    query_in = jax.random.normal(keys[1], (B, seq_q, kq_hidden), jnp.float32)
    value_in = jax.random.normal(keys[2], (B, seq_k, num_hidden), jnp.float32)
    residual_in = jax.random.normal(keys[3], (B, seq_q, num_hidden), jnp.float32)

    # parameters (linear weights stored pre-transposed [in, out])
    s = 0.2
    params = {
        "wk": s * jax.random.normal(keys[4], (kq_hidden, num_heads), jnp.float32),
        "wq": s * jax.random.normal(keys[5], (kq_hidden, num_heads), jnp.float32),
        "wv": s * jax.random.normal(keys[6], (num_hidden, num_hidden), jnp.float32),
        "wf": s * jax.random.normal(keys[7], (num_hidden, num_hidden), jnp.float32),
        "bf": s * jax.random.normal(keys[8], (1, num_hidden), jnp.float32),
        "g1": jnp.ones((1, num_hidden), jnp.float32)
              + 0.05 * jax.random.normal(keys[9], (1, num_hidden), jnp.float32),
        "be1": s * jax.random.normal(keys[10], (1, num_hidden), jnp.float32),
        "w1": s * jax.random.normal(keys[11], (num_hidden, num_hidden), jnp.float32),
        "b1": s * jax.random.normal(keys[12], (1, num_hidden), jnp.float32),
        "w2": s * jax.random.normal(keys[13], (num_hidden, num_hidden), jnp.float32),
        "b2": s * jax.random.normal(keys[14], (1, num_hidden), jnp.float32),
        "w3": s * jax.random.normal(keys[15], (num_hidden, num_hidden), jnp.float32),
        "b3": s * jax.random.normal(keys[16], (1, num_hidden), jnp.float32),
        "g2": jnp.ones((1, num_hidden), jnp.float32)
              + 0.05 * jax.random.normal(keys[17], (1, num_hidden), jnp.float32),
        "be2": s * jax.random.normal(keys[18], (1, num_hidden), jnp.float32),
    }

    out = attention_network(key_in, query_in, value_in, residual_in, params,
                            batch_block=8)
    out = jax.block_until_ready(out)

    ref = attention_network_ref(key_in, query_in, value_in, residual_in, params)
    assert out.shape == (B, seq_q, num_hidden)
    # Tolerance covers the approximate (EUP) reciprocal in the attention
    # normalization, whose small relative error is amplified through the final
    # linear / MLP; everything else matches the exact-division reference.
    err = float(jnp.max(jnp.abs(out - ref)))
    assert err < 5e-3, err

    print("KERNEL_OK")
</pallas_src>

<mosaic_0001>
module attributes {stable_mosaic.version = 11 : i64} {
  func.func @attention_network_kernel(%arg0: i32, %arg1: memref<8x1024xf32, #tpu.memory_space<vmem>>, %arg2: memref<64x64xf32, #tpu.memory_space<vmem>>, %arg3: memref<128x64xf32, #tpu.memory_space<vmem>>, %arg4: memref<64x64xf32, #tpu.memory_space<vmem>>, %arg5: memref<1024x128xf32, #tpu.memory_space<vmem>>, %arg6: memref<64x128xf32, #tpu.memory_space<vmem>>, %arg7: memref<128x64xf32, #tpu.memory_space<vmem>>, %arg8: memref<5x64x64xf32, #tpu.memory_space<vmem>>, %arg9: memref<8x64xf32, #tpu.memory_space<vmem>>, %arg10: memref<64x64xf32, #tpu.memory_space<vmem>>) attributes {dimension_semantics = [#tpu.dimension_semantics<parallel>], iteration_bounds = array<i64: 2>, scalar_prefetch = 0 : i64, scratch_operands = 0 : i64, tpu.core_type = #tpu.core_type<tc>, window_params = [{transform_indices = @transform_0, window_bounds = array<i64: 8, 1024>}, {transform_indices = @transform_1, window_bounds = array<i64: 64, 64>}, {transform_indices = @transform_2, window_bounds = array<i64: 128, 64>}, {transform_indices = @transform_3, window_bounds = array<i64: 64, 64>}, {pipeline_mode = #tpu.pipeline_mode<synchronous>, transform_indices = @transform_4, window_bounds = array<i64: 1024, 128>}, {pipeline_mode = #tpu.pipeline_mode<synchronous>, transform_indices = @transform_5, window_bounds = array<i64: 64, 128>}, {pipeline_mode = #tpu.pipeline_mode<synchronous>, transform_indices = @transform_6, window_bounds = array<i64: 128, 64>}, {pipeline_mode = #tpu.pipeline_mode<synchronous>, transform_indices = @transform_7, window_bounds = array<i64: 5, 64, 64>}, {pipeline_mode = #tpu.pipeline_mode<synchronous>, transform_indices = @transform_8, window_bounds = array<i64: 8, 64>}, {transform_indices = @transform_9, window_bounds = array<i64: 64, 64>}]} {
    %c0 = arith.constant 0 : index
    %c0_0 = arith.constant 0 : index
    %c0_1 = arith.constant 0 : index
    %0 = vector.load %arg8[%c0, %c0_0, %c0_1] : memref<5x64x64xf32, #tpu.memory_space<vmem>>, vector<1x64x64xf32>
    %1 = vector.shape_cast %0 : vector<1x64x64xf32> to vector<64x64xf32>
    %c1 = arith.constant 1 : index
    %c0_2 = arith.constant 0 : index
    %c0_3 = arith.constant 0 : index
    %2 = vector.load %arg8[%c1, %c0_2, %c0_3] : memref<5x64x64xf32, #tpu.memory_space<vmem>>, vector<1x64x64xf32>
    %3 = vector.shape_cast %2 : vector<1x64x64xf32> to vector<64x64xf32>
    %c2 = arith.constant 2 : index
    %c0_4 = arith.constant 0 : index
    %c0_5 = arith.constant 0 : index
    %4 = vector.load %arg8[%c2, %c0_4, %c0_5] : memref<5x64x64xf32, #tpu.memory_space<vmem>>, vector<1x64x64xf32>
    %5 = vector.shape_cast %4 : vector<1x64x64xf32> to vector<64x64xf32>
    %c3 = arith.constant 3 : index
    %c0_6 = arith.constant 0 : index
    %c0_7 = arith.constant 0 : index
    %6 = vector.load %arg8[%c3, %c0_6, %c0_7] : memref<5x64x64xf32, #tpu.memory_space<vmem>>, vector<1x64x64xf32>
    %7 = vector.shape_cast %6 : vector<1x64x64xf32> to vector<64x64xf32>
    %c4 = arith.constant 4 : index
    %c0_8 = arith.constant 0 : index
    %c0_9 = arith.constant 0 : index
    %8 = vector.load %arg8[%c4, %c0_8, %c0_9] : memref<5x64x64xf32, #tpu.memory_space<vmem>>, vector<1x64x64xf32>
    %9 = vector.shape_cast %8 : vector<1x64x64xf32> to vector<64x64xf32>
    %c0_10 = arith.constant 0 : index
    %c0_11 = arith.constant 0 : index
    %10 = vector.load %arg9[%c0_10, %c0_11] : memref<8x64xf32, #tpu.memory_space<vmem>>, vector<1x64xf32>
    %c1_12 = arith.constant 1 : index
    %c0_13 = arith.constant 0 : index
    %11 = vector.load %arg9[%c1_12, %c0_13] : memref<8x64xf32, #tpu.memory_space<vmem>>, vector<1x64xf32>
    %c2_14 = arith.constant 2 : index
    %c0_15 = arith.constant 0 : index
    %12 = vector.load %arg9[%c2_14, %c0_15] : memref<8x64xf32, #tpu.memory_space<vmem>>, vector<1x64xf32>
    %c3_16 = arith.constant 3 : index
    %c0_17 = arith.constant 0 : index
    %13 = vector.load %arg9[%c3_16, %c0_17] : memref<8x64xf32, #tpu.memory_space<vmem>>, vector<1x64xf32>
    %c4_18 = arith.constant 4 : index
    %c0_19 = arith.constant 0 : index
    %14 = vector.load %arg9[%c4_18, %c0_19] : memref<8x64xf32, #tpu.memory_space<vmem>>, vector<1x64xf32>
    %c5 = arith.constant 5 : index
    %c0_20 = arith.constant 0 : index
    %15 = vector.load %arg9[%c5, %c0_20] : memref<8x64xf32, #tpu.memory_space<vmem>>, vector<1x64xf32>
    %c6 = arith.constant 6 : index
    %c0_21 = arith.constant 0 : index
    %16 = vector.load %arg9[%c6, %c0_21] : memref<8x64xf32, #tpu.memory_space<vmem>>, vector<1x64xf32>
    %c7 = arith.constant 7 : index
    %c0_22 = arith.constant 0 : index
    %17 = vector.load %arg9[%c7, %c0_22] : memref<8x64xf32, #tpu.memory_space<vmem>>, vector<1x64xf32>
    %c0_23 = arith.constant 0 : index
    %c0_24 = arith.constant 0 : index
    %18 = vector.load %arg1[%c0_23, %c0_24] : memref<8x1024xf32, #tpu.memory_space<vmem>>, vector<8x1024xf32>
    %c0_25 = arith.constant 0 : index
    %c0_26 = arith.constant 0 : index
    %19 = vector.load %arg5[%c0_25, %c0_26] : memref<1024x128xf32, #tpu.memory_space<vmem>>, vector<1024x128xf32>
    %cst = arith.constant dense<0.000000e+00> : vector<8x128xf32>
    %20 = tpu.matmul %18, %19, %cst {dimension_numbers = #tpu.dot_dimension_numbers<[1], [0], [0], [1], [0, 0, 1, 1], [], []>} : vector<8x1024xf32>, vector<1024x128xf32>, vector<8x128xf32> -> vector<8x128xf32>
    %c0_27 = arith.constant 0 : index
    %c0_28 = arith.constant 0 : index
    %21 = vector.load %arg2[%c0_27, %c0_28] : memref<64x64xf32, #tpu.memory_space<vmem>>, vector<64x64xf32>
    %c0_29 = arith.constant 0 : index
    %c0_30 = arith.constant 0 : index
    %22 = vector.load %arg6[%c0_29, %c0_30] : memref<64x128xf32, #tpu.memory_space<vmem>>, vector<64x128xf32>
    %cst_31 = arith.constant dense<0.000000e+00> : vector<64x128xf32>
    %23 = tpu.matmul %21, %22, %cst_31 {dimension_numbers = #tpu.dot_dimension_numbers<[1], [0], [0], [1], [0, 0, 1, 1], [], []>} : vector<64x64xf32>, vector<64x128xf32>, vector<64x128xf32> -> vector<64x128xf32>
    %c0_32 = arith.constant 0 : index
    %c0_33 = arith.constant 0 : index
    %24 = vector.load %arg3[%c0_32, %c0_33] : memref<128x64xf32, #tpu.memory_space<vmem>>, vector<128x64xf32>
    %cst_34 = arith.constant dense<0.000000e+00> : vector<128x64xf32>
    %25 = tpu.matmul %24, %1, %cst_34 {dimension_numbers = #tpu.dot_dimension_numbers<[1], [0], [0], [1], [0, 0, 1, 1], [], []>} : vector<128x64xf32>, vector<64x64xf32>, vector<128x64xf32> -> vector<128x64xf32>
    %26 = vector.shape_cast %25 : vector<128x64xf32> to vector<8x16x64xf32>
    %27 = math.cos %20 : vector<8x128xf32>
    %28 = vector.shape_cast %27 : vector<8x128xf32> to vector<8x1x128xf32>
    %29 = math.sin %20 : vector<8x128xf32>
    %30 = vector.shape_cast %29 : vector<8x128xf32> to vector<8x1x128xf32>
    %31 = math.cos %23 : vector<64x128xf32>
    %32 = vector.shape_cast %31 : vector<64x128xf32> to vector<8x8x128xf32>
    %33 = math.sin %23 : vector<64x128xf32>
    %34 = vector.shape_cast %33 : vector<64x128xf32> to vector<8x8x128xf32>
    %35 = vector.broadcast %28 : vector<8x1x128xf32> to vector<8x8x128xf32>
    %36 = arith.mulf %32, %35 : vector<8x8x128xf32>
    %37 = vector.broadcast %30 : vector<8x1x128xf32> to vector<8x8x128xf32>
    %38 = arith.mulf %34, %37 : vector<8x8x128xf32>
    %39 = arith.addf %36, %38 : vector<8x8x128xf32>
    %40 = math.exp %39 : vector<8x8x128xf32>
    %41 = vector.extract_strided_slice %40 {offsets = [0, 0, 0], sizes = [8, 8, 16], strides = [1, 1, 1]} : vector<8x8x128xf32> to vector<8x8x16xf32>
    %42 = vector.extract_strided_slice %26 {offsets = [0, 0, 0], sizes = [8, 16, 8], strides = [1, 1, 1]} : vector<8x16x64xf32> to vector<8x16x8xf32>
    "tpu.trace_start"() <{level = 10 : i32, message = "bqk,bkd->bqd"}> : () -> ()
    %cst_35 = arith.constant dense<0.000000e+00> : vector<8x8x8xf32>
    %43 = tpu.matmul %41, %42, %cst_35 {dimension_numbers = #tpu.dot_dimension_numbers<[2], [1], [1], [2], [0, 0, 0, 1, 1, 2], [0], [0]>} : vector<8x8x16xf32>, vector<8x16x8xf32>, vector<8x8x8xf32> -> vector<8x8x8xf32>
    "tpu.trace_stop"() : () -> ()
    %44 = vector.extract_strided_slice %40 {offsets = [0, 0, 16], sizes = [8, 8, 16], strides = [1, 1, 1]} : vector<8x8x128xf32> to vector<8x8x16xf32>
    %45 = vector.extract_strided_slice %26 {offsets = [0, 0, 8], sizes = [8, 16, 8], strides = [1, 1, 1]} : vector<8x16x64xf32> to vector<8x16x8xf32>
    "tpu.trace_start"() <{level = 10 : i32, message = "bqk,bkd->bqd"}> : () -> ()
    %cst_36 = arith.constant dense<0.000000e+00> : vector<8x8x8xf32>
    %46 = tpu.matmul %44, %45, %cst_36 {dimension_numbers = #tpu.dot_dimension_numbers<[2], [1], [1], [2], [0, 0, 0, 1, 1, 2], [0], [0]>} : vector<8x8x16xf32>, vector<8x16x8xf32>, vector<8x8x8xf32> -> vector<8x8x8xf32>
    "tpu.trace_stop"() : () -> ()
    %47 = vector.extract_strided_slice %40 {offsets = [0, 0, 32], sizes = [8, 8, 16], strides = [1, 1, 1]} : vector<8x8x128xf32> to vector<8x8x16xf32>
    %48 = vector.extract_strided_slice %26 {offsets = [0, 0, 16], sizes = [8, 16, 8], strides = [1, 1, 1]} : vector<8x16x64xf32> to vector<8x16x8xf32>
    "tpu.trace_start"() <{level = 10 : i32, message = "bqk,bkd->bqd"}> : () -> ()
    %cst_37 = arith.constant dense<0.000000e+00> : vector<8x8x8xf32>
    %49 = tpu.matmul %47, %48, %cst_37 {dimension_numbers = #tpu.dot_dimension_numbers<[2], [1], [1], [2], [0, 0, 0, 1, 1, 2], [0], [0]>} : vector<8x8x16xf32>, vector<8x16x8xf32>, vector<8x8x8xf32> -> vector<8x8x8xf32>
    "tpu.trace_stop"() : () -> ()
    %50 = vector.extract_strided_slice %40 {offsets = [0, 0, 48], sizes = [8, 8, 16], strides = [1, 1, 1]} : vector<8x8x128xf32> to vector<8x8x16xf32>
    %51 = vector.extract_strided_slice %26 {offsets = [0, 0, 24], sizes = [8, 16, 8], strides = [1, 1, 1]} : vector<8x16x64xf32> to vector<8x16x8xf32>
    "tpu.trace_start"() <{level = 10 : i32, message = "bqk,bkd->bqd"}> : () -> ()
    %cst_38 = arith.constant dense<0.000000e+00> : vector<8x8x8xf32>
    %52 = tpu.matmul %50, %51, %cst_38 {dimension_numbers = #tpu.dot_dimension_numbers<[2], [1], [1], [2], [0, 0, 0, 1, 1, 2], [0], [0]>} : vector<8x8x16xf32>, vector<8x16x8xf32>, vector<8x8x8xf32> -> vector<8x8x8xf32>
    "tpu.trace_stop"() : () -> ()
    %53 = vector.extract_strided_slice %40 {offsets = [0, 0, 64], sizes = [8, 8, 16], strides = [1, 1, 1]} : vector<8x8x128xf32> to vector<8x8x16xf32>
    %54 = vector.extract_strided_slice %26 {offsets = [0, 0, 32], sizes = [8, 16, 8], strides = [1, 1, 1]} : vector<8x16x64xf32> to vector<8x16x8xf32>
    "tpu.trace_start"() <{level = 10 : i32, message = "bqk,bkd->bqd"}> : () -> ()
    %cst_39 = arith.constant dense<0.000000e+00> : vector<8x8x8xf32>
    %55 = tpu.matmul %53, %54, %cst_39 {dimension_numbers = #tpu.dot_dimension_numbers<[2], [1], [1], [2], [0, 0, 0, 1, 1, 2], [0], [0]>} : vector<8x8x16xf32>, vector<8x16x8xf32>, vector<8x8x8xf32> -> vector<8x8x8xf32>
    "tpu.trace_stop"() : () -> ()
    %56 = vector.extract_strided_slice %40 {offsets = [0, 0, 80], sizes = [8, 8, 16], strides = [1, 1, 1]} : vector<8x8x128xf32> to vector<8x8x16xf32>
    %57 = vector.extract_strided_slice %26 {offsets = [0, 0, 40], sizes = [8, 16, 8], strides = [1, 1, 1]} : vector<8x16x64xf32> to vector<8x16x8xf32>
    "tpu.trace_start"() <{level = 10 : i32, message = "bqk,bkd->bqd"}> : () -> ()
    %cst_40 = arith.constant dense<0.000000e+00> : vector<8x8x8xf32>
    %58 = tpu.matmul %56, %57, %cst_40 {dimension_numbers = #tpu.dot_dimension_numbers<[2], [1], [1], [2], [0, 0, 0, 1, 1, 2], [0], [0]>} : vector<8x8x16xf32>, vector<8x16x8xf32>, vector<8x8x8xf32> -> vector<8x8x8xf32>
    "tpu.trace_stop"() : () -> ()
    %59 = vector.extract_strided_slice %40 {offsets = [0, 0, 96], sizes = [8, 8, 16], strides = [1, 1, 1]} : vector<8x8x128xf32> to vector<8x8x16xf32>
    %60 = vector.extract_strided_slice %26 {offsets = [0, 0, 48], sizes = [8, 16, 8], strides = [1, 1, 1]} : vector<8x16x64xf32> to vector<8x16x8xf32>
    "tpu.trace_start"() <{level = 10 : i32, message = "bqk,bkd->bqd"}> : () -> ()
    %cst_41 = arith.constant dense<0.000000e+00> : vector<8x8x8xf32>
    %61 = tpu.matmul %59, %60, %cst_41 {dimension_numbers = #tpu.dot_dimension_numbers<[2], [1], [1], [2], [0, 0, 0, 1, 1, 2], [0], [0]>} : vector<8x8x16xf32>, vector<8x16x8xf32>, vector<8x8x8xf32> -> vector<8x8x8xf32>
    "tpu.trace_stop"() : () -> ()
    %62 = vector.extract_strided_slice %40 {offsets = [0, 0, 112], sizes = [8, 8, 16], strides = [1, 1, 1]} : vector<8x8x128xf32> to vector<8x8x16xf32>
    %63 = vector.extract_strided_slice %26 {offsets = [0, 0, 56], sizes = [8, 16, 8], strides = [1, 1, 1]} : vector<8x16x64xf32> to vector<8x16x8xf32>
    "tpu.trace_start"() <{level = 10 : i32, message = "bqk,bkd->bqd"}> : () -> ()
    %cst_42 = arith.constant dense<0.000000e+00> : vector<8x8x8xf32>
    %64 = tpu.matmul %62, %63, %cst_42 {dimension_numbers = #tpu.dot_dimension_numbers<[2], [1], [1], [2], [0, 0, 0, 1, 1, 2], [0], [0]>} : vector<8x8x16xf32>, vector<8x16x8xf32>, vector<8x8x8xf32> -> vector<8x8x8xf32>
    "tpu.trace_stop"() : () -> ()
    %65 = tpu.concatenate %43, %46, %49, %52, %55, %58, %61, %64 in 2 : vector<8x8x8xf32>, vector<8x8x8xf32>, vector<8x8x8xf32>, vector<8x8x8xf32>, vector<8x8x8xf32>, vector<8x8x8xf32>, vector<8x8x8xf32>, vector<8x8x8xf32> -> vector<8x8x64xf32>
    %66 = vector.shape_cast %65 : vector<8x8x64xf32> to vector<64x64xf32>
    %67 = vector.shape_cast %40 : vector<8x8x128xf32> to vector<64x128xf32>
    %c0_43 = arith.constant 0 : index
    %c0_44 = arith.constant 0 : index
    %68 = vector.load %arg7[%c0_43, %c0_44] : memref<128x64xf32, #tpu.memory_space<vmem>>, vector<128x64xf32>
    %cst_45 = arith.constant dense<0.000000e+00> : vector<64x64xf32>
    %69 = tpu.matmul %67, %68, %cst_45 {dimension_numbers = #tpu.dot_dimension_numbers<[1], [0], [0], [1], [0, 0, 1, 1], [], []>} : vector<64x128xf32>, vector<128x64xf32>, vector<64x64xf32> -> vector<64x64xf32>
    %70 = tpu.reciprocal %69 {approx = true} : vector<64x64xf32> -> vector<64x64xf32>
    %71 = arith.mulf %66, %70 : vector<64x64xf32>
    %c0_46 = arith.constant 0 : index
    %c0_47 = arith.constant 0 : index
    %72 = vector.load %arg4[%c0_46, %c0_47] : memref<64x64xf32, #tpu.memory_space<vmem>>, vector<64x64xf32>
    %cst_48 = arith.constant dense<0.000000e+00> : vector<64x64xf32>
    %73 = tpu.matmul %71, %3, %cst_48 {dimension_numbers = #tpu.dot_dimension_numbers<[1], [0], [0], [1], [0, 0, 1, 1], [], []>} : vector<64x64xf32>, vector<64x64xf32>, vector<64x64xf32> -> vector<64x64xf32>
    %74 = arith.addf %72, %73 : vector<64x64xf32>
    %75 = vector.broadcast %10 : vector<1x64xf32> to vector<64x64xf32>
    %76 = arith.addf %74, %75 : vector<64x64xf32>
    %cst_49 = arith.constant dense<0.000000e+00> : vector<64xf32>
    %77 = vector.multi_reduction <add>, %76, %cst_49 [1] : vector<64x64xf32> to vector<64xf32>
    %78 = vector.shape_cast %77 : vector<64xf32> to vector<64x1xf32>
    %cst_50 = arith.constant 6.400000e+01 : f32
    %79 = vector.broadcast %cst_50 : f32 to vector<64x1xf32>
    %80 = arith.divf %78, %79 : vector<64x1xf32>
    %81 = vector.broadcast %80 : vector<64x1xf32> to vector<64x64xf32>
    %82 = arith.subf %76, %81 : vector<64x64xf32>
    %83 = arith.mulf %82, %82 : vector<64x64xf32>
    %cst_51 = arith.constant dense<0.000000e+00> : vector<64xf32>
    %84 = vector.multi_reduction <add>, %83, %cst_51 [1] : vector<64x64xf32> to vector<64xf32>
    %85 = vector.shape_cast %84 : vector<64xf32> to vector<64x1xf32>
    %cst_52 = arith.constant 6.400000e+01 : f32
    %86 = vector.broadcast %cst_52 : f32 to vector<64x1xf32>
    %87 = arith.divf %85, %86 : vector<64x1xf32>
    %88 = vector.broadcast %80 : vector<64x1xf32> to vector<64x64xf32>
    %89 = arith.subf %76, %88 : vector<64x64xf32>
    %cst_53 = arith.constant 9.99999974E-6 : f32
    %90 = vector.broadcast %cst_53 : f32 to vector<64x1xf32>
    %91 = arith.addf %87, %90 : vector<64x1xf32>
    %92 = math.rsqrt %91 : vector<64x1xf32>
    %93 = vector.broadcast %92 : vector<64x1xf32> to vector<64x64xf32>
    %94 = arith.mulf %89, %93 : vector<64x64xf32>
    %95 = vector.broadcast %11 : vector<1x64xf32> to vector<64x64xf32>
    %96 = arith.mulf %94, %95 : vector<64x64xf32>
    %97 = vector.broadcast %12 : vector<1x64xf32> to vector<64x64xf32>
    %98 = arith.addf %96, %97 : vector<64x64xf32>
    %cst_54 = arith.constant dense<0.000000e+00> : vector<64x64xf32>
    %99 = tpu.matmul %98, %5, %cst_54 {dimension_numbers = #tpu.dot_dimension_numbers<[1], [0], [0], [1], [0, 0, 1, 1], [], []>} : vector<64x64xf32>, vector<64x64xf32>, vector<64x64xf32> -> vector<64x64xf32>
    %100 = vector.broadcast %13 : vector<1x64xf32> to vector<64x64xf32>
    %101 = arith.addf %99, %100 : vector<64x64xf32>
    %cst_55 = arith.constant 0.000000e+00 : f32
    %102 = vector.broadcast %cst_55 : f32 to vector<64x64xf32>
    %103 = arith.maximumf %101, %102 : vector<64x64xf32>
    %cst_56 = arith.constant dense<0.000000e+00> : vector<64x64xf32>
    %104 = tpu.matmul %103, %7, %cst_56 {dimension_numbers = #tpu.dot_dimension_numbers<[1], [0], [0], [1], [0, 0, 1, 1], [], []>} : vector<64x64xf32>, vector<64x64xf32>, vector<64x64xf32> -> vector<64x64xf32>
    %105 = vector.broadcast %14 : vector<1x64xf32> to vector<64x64xf32>
    %106 = arith.addf %104, %105 : vector<64x64xf32>
    %cst_57 = arith.constant 0.000000e+00 : f32
    %107 = vector.broadcast %cst_57 : f32 to vector<64x64xf32>
    %108 = arith.maximumf %106, %107 : vector<64x64xf32>
    %cst_58 = arith.constant dense<0.000000e+00> : vector<64x64xf32>
    %109 = tpu.matmul %108, %9, %cst_58 {dimension_numbers = #tpu.dot_dimension_numbers<[1], [0], [0], [1], [0, 0, 1, 1], [], []>} : vector<64x64xf32>, vector<64x64xf32>, vector<64x64xf32> -> vector<64x64xf32>
    %110 = vector.broadcast %15 : vector<1x64xf32> to vector<64x64xf32>
    %111 = arith.addf %109, %110 : vector<64x64xf32>
    %112 = arith.addf %98, %111 : vector<64x64xf32>
    %cst_59 = arith.constant dense<0.000000e+00> : vector<64xf32>
    %113 = vector.multi_reduction <add>, %112, %cst_59 [1] : vector<64x64xf32> to vector<64xf32>
    %114 = vector.shape_cast %113 : vector<64xf32> to vector<64x1xf32>
    %cst_60 = arith.constant 6.400000e+01 : f32
    %115 = vector.broadcast %cst_60 : f32 to vector<64x1xf32>
    %116 = arith.divf %114, %115 : vector<64x1xf32>
    %117 = vector.broadcast %116 : vector<64x1xf32> to vector<64x64xf32>
    %118 = arith.subf %112, %117 : vector<64x64xf32>
    %119 = arith.mulf %118, %118 : vector<64x64xf32>
    %cst_61 = arith.constant dense<0.000000e+00> : vector<64xf32>
    %120 = vector.multi_reduction <add>, %119, %cst_61 [1] : vector<64x64xf32> to vector<64xf32>
    %121 = vector.shape_cast %120 : vector<64xf32> to vector<64x1xf32>
    %cst_62 = arith.constant 6.400000e+01 : f32
    %122 = vector.broadcast %cst_62 : f32 to vector<64x1xf32>
    %123 = arith.divf %121, %122 : vector<64x1xf32>
    %124 = vector.broadcast %116 : vector<64x1xf32> to vector<64x64xf32>
    %125 = arith.subf %112, %124 : vector<64x64xf32>
    %cst_63 = arith.constant 9.99999974E-6 : f32
    %126 = vector.broadcast %cst_63 : f32 to vector<64x1xf32>
    %127 = arith.addf %123, %126 : vector<64x1xf32>
    %128 = math.rsqrt %127 : vector<64x1xf32>
    %129 = vector.broadcast %128 : vector<64x1xf32> to vector<64x64xf32>
    %130 = arith.mulf %125, %129 : vector<64x64xf32>
    %131 = vector.broadcast %16 : vector<1x64xf32> to vector<64x64xf32>
    %132 = arith.mulf %130, %131 : vector<64x64xf32>
    %133 = vector.broadcast %17 : vector<1x64xf32> to vector<64x64xf32>
    %134 = arith.addf %132, %133 : vector<64x64xf32>
    %c0_64 = arith.constant 0 : index
    %c0_65 = arith.constant 0 : index
    %135 = vector.load %arg10[%c0_64, %c0_65] : memref<64x64xf32, #tpu.memory_space<vmem>>, vector<64x64xf32>
    tpu.vector_store %arg10[%c0_64, %c0_65], %134 {strides = array<i32>} : memref<64x64xf32, #tpu.memory_space<vmem>>, vector<64x64xf32>,
    return
  }
  func.func @transform_0(%arg0: i32) -> (i32, i32) {
    %c0_i32 = arith.constant 0 : i32
    %c0_i32_0 = arith.constant 0 : i32
    return %arg0, %c0_i32 : i32, i32
  }
  func.func @transform_1(%arg0: i32) -> (i32, i32) {
    %c0_i32 = arith.constant 0 : i32
    %c0_i32_0 = arith.constant 0 : i32
    return %arg0, %c0_i32 : i32, i32
  }
  func.func @transform_2(%arg0: i32) -> (i32, i32) {
    %c0_i32 = arith.constant 0 : i32
    %c0_i32_0 = arith.constant 0 : i32
    return %arg0, %c0_i32 : i32, i32
  }
  func.func @transform_3(%arg0: i32) -> (i32, i32) {
    %c0_i32 = arith.constant 0 : i32
    %c0_i32_0 = arith.constant 0 : i32
    return %arg0, %c0_i32 : i32, i32
  }
  func.func @transform_4(%arg0: i32) -> (i32, i32) {
    %c0_i32 = arith.constant 0 : i32
    %c0_i32_0 = arith.constant 0 : i32
    %c0_i32_1 = arith.constant 0 : i32
    return %c0_i32, %c0_i32_0 : i32, i32
  }
  func.func @transform_5(%arg0: i32) -> (i32, i32) {
    %c0_i32 = arith.constant 0 : i32
    %c0_i32_0 = arith.constant 0 : i32
    %c0_i32_1 = arith.constant 0 : i32
    return %c0_i32, %c0_i32_0 : i32, i32
  }
  func.func @transform_6(%arg0: i32) -> (i32, i32) {
    %c0_i32 = arith.constant 0 : i32
    %c0_i32_0 = arith.constant 0 : i32
    %c0_i32_1 = arith.constant 0 : i32
    return %c0_i32, %c0_i32_0 : i32, i32
  }
  func.func @transform_7(%arg0: i32) -> (i32, i32, i32) {
    %c0_i32 = arith.constant 0 : i32
    %c0_i32_0 = arith.constant 0 : i32
    %c0_i32_1 = arith.constant 0 : i32
    %c0_i32_2 = arith.constant 0 : i32
    return %c0_i32, %c0_i32_0, %c0_i32_1 : i32, i32, i32
  }
  func.func @transform_8(%arg0: i32) -> (i32, i32) {
    %c0_i32 = arith.constant 0 : i32
    %c0_i32_0 = arith.constant 0 : i32
    %c0_i32_1 = arith.constant 0 : i32
    return %c0_i32, %c0_i32_0 : i32, i32
  }
  func.func @transform_9(%arg0: i32) -> (i32, i32) {
    %c0_i32 = arith.constant 0 : i32
    %c0_i32_0 = arith.constant 0 : i32
    return %arg0, %c0_i32 : i32, i32
  }
}

</mosaic_0001>

<bundles_post_ra>
// kernel: attention_network.1
= control target key start
LH: loop header
LB: loop body
LE: loop exit
PB: predicated region body
PF: predicated region fallthrough
CT: control target
= control target key end

     0   :  { %s14904_s0 = inlined_call_operand.vmem [shape: f32[16,1024], index: 0, kind: input, shape index: {}]   ;;  %s14905_s1 = inlined_call_operand.vmem [shape: f32[128,64], index: 1, kind: input, shape index: {}]   ;;  %s14906_s2 = inlined_call_operand.vmem [shape: f32[256,64], index: 2, kind: input, shape index: {}]   ;;  %s14907_s3 = inlined_call_operand.vmem [shape: f32[128,64], index: 3, kind: input, shape index: {}]   ;;  %s14908_s4 = inlined_call_operand.vmem [shape: f32[1024,128], index: 4, kind: input, shape index: {}]   ;;  %s14909_s5 = inlined_call_operand.vmem [shape: f32[64,128], index: 5, kind: input, shape index: {}]   ;;  %s14910_s6 = inlined_call_operand.vmem [shape: f32[128,64], index: 6, kind: input, shape index: {}]   ;;  %s14911_s7 = inlined_call_operand.vmem [shape: f32[5,64,64], index: 7, kind: input, shape index: {}]   ;;  %s14912_s8 = inlined_call_operand.vmem [shape: f32[8,64], index: 8, kind: input, shape index: {}]   ;;  %s14913_s9 = inlined_call_operand.hbm [shape: f32[128,64], index: 9, kind: output, shape index: {}]  }
   0x1   :  { %14946 = sst [smem:[#allocation54_spill]] %s14904_s0 }
   0x2   :  { %14 = vsyncpa [#allocation3], 0 }
   0x3   :  { %16 = vsyncpa [#allocation3 + $0x1], 0  ;;  %s11487_s30 = smov 0   ;;  %s11489_s10 = smov 0  }
   0x4   :  { %s11491_s11 = smov 0   ;;  %s11493_s12 = smov 0  }
   0x5 LB: > { %s11508_s13 = sadd.s32 4294967295, %s11409_s12   ;;  %s9765_s14 = sadd.s32 4294967294, %s11409_s12   ;;  %s11409_s12 = sphi %s11493_s12, %s15098_s12   ;;  %s11405_s11 = sphi %s11491_s11, %s15097_s11   ;;  %s11401_s10 = sphi %s11489_s10, %s15096_s10   ;;  %s11397_s30 = sphi %s11487_s30, %s15095_s30  }
   0x6   : > { %s11512_s15 = sadd.s32 1, %s11409_s12   ;;  %s238_s16 = sadd.s32 1, %s11405_s11 }
   0x7   : > { %s235_s17 = ssub.s32 %s11409_s12, %s11512_s15  ;;  %p248_p0 = scmp.ne.s32.totalorder %s11405_s11, %s11401_s10 }
   0x8   : > { %p236_p1 = scmp.eq.s32.totalorder %s235_s17, 0  ;;  %p249_p2 = scmp.eq.s32.totalorder %s11508_s13, 1 }
   0x9   : > { %p254_p3 = scmp.ne.s32.totalorder %s11401_s10, %s11397_s30  ;;  %p255_p4 = scmp.eq.s32.totalorder %s9765_s14, 1 }
   0xa   : > { %s11523_s18 = scalar_select %p236_p1, %s11405_s11, %s238_s16  }
   0xb   : > { %p11525_p5 = por %p249_p2, %p248_p0  ;;  %p11529_p6 = por %p255_p4, %p254_p3 }
   0xc   : > { %p9768_p7 = scmp.ge.s32.totalorder %s11409_s12, 1  ;;  %p323_p8 = scmp.lt.s32.totalorder %s11409_s12, 3 }
   0xe   : > { %p324_p9 = pnand %p9768_p7, %p323_p8 }
  0x10   : > { %327 = sbr.rel (%p324_p9) target bundleno = 2609 (0xa31), region = 56 }
  0x15   : > { %v489_v0 = vld [vmem:[%s14908_s4 + $0xf8] sm:$0xff]  ;;  %v488_v4 = vld [vmem:[%s14908_s4 + $0xf0] sm:$0xff]  ;;  %v487_v8 = vld [vmem:[%s14908_s4 + $0xe8] sm:$0xff]  ;;  %p374_p10 = scmp.lt.s32.totalorder %s11508_s13, 1  ;;  %s14949_s0 = sld [smem:[#allocation54_spill]]  ;;  %vm882_vm0 = vcmask 523264  }
  0x16   : > { %v521_v1 = vld [vmem:[%s14908_s4 + $0x1f8] sm:$0xff]  ;;  %10017 = vmatprep.subr.mxu0 %v489_v0  ;;  %v520_v5 = vld [vmem:[%s14908_s4 + $0x1f0] sm:$0xff]  ;;  %v519_v9 = vld [vmem:[%s14908_s4 + $0x1e8] sm:$0xff]  ;;  %s9772_s17 = sshll.u32 %s11508_s13, 3  ;;  %s9774_s21 = sshll.u32 %s11508_s13, 4 }
  0x17   : > { %v473_v2 = vld [vmem:[%s14908_s4 + $0x78] sm:$0xff]  ;;  %10052 = vmatprep.subr.mxu1 %v521_v1  ;;  %v472_v6 = vld [vmem:[%s14908_s4 + $0x70] sm:$0xff]  ;;  %v471_v10 = vld [vmem:[%s14908_s4 + $0x68] sm:$0xff]  ;;  %s11671_s25 = scalar_select %p374_p10, %s11508_s13, 1 }
  0x18   : > { %v505_v3 = vld [vmem:[%s14908_s4 + $0x178] sm:$0xff]  ;;  %10018 = vmatpush3.msra.mxu0 %v473_v2  ;;  %v504_v7 = vld [vmem:[%s14908_s4 + $0x170] sm:$0xff]  ;;  %v503_v11 = vld [vmem:[%s14908_s4 + $0x168] sm:$0xff]  ;;  %p11947_p11 = scmp.lt.s32.totalorder %s9772_s17, 15  ;;  %p11957_p12 = scmp.lt.s32.totalorder %s9774_s21, 31 }
  0x19   : > { %10053 = vmatpush3.msra.mxu1 %v505_v3  ;;  %10019 = vmatprep.subr.mxu0 %v488_v4  ;;  %v486_v12 = vld [vmem:[%s14908_s4 + $0xe0] sm:$0xff]  ;;  %v485_v16 = vld [vmem:[%s14908_s4 + $0xd8] sm:$0xff]  ;;  %v484_v20 = vld [vmem:[%s14908_s4 + $0xd0] sm:$0xff]  ;;  %s10015_s16 = sshll.u32 %s11671_s25, 6  ;;  %s11419_s14 = smov 104  }
  0x1a   : > { %10054 = vmatprep.subr.mxu1 %v520_v5  ;;  %10020 = vmatpush3.msra.mxu0 %v472_v6  ;;  %v518_v13 = vld [vmem:[%s14908_s4 + $0x1e0] sm:$0xff]  ;;  %v517_v17 = vld [vmem:[%s14908_s4 + $0x1d8] sm:$0xff]  ;;  %v516_v21 = vld [vmem:[%s14908_s4 + $0x1d0] sm:$0xff]  ;;  %s15100_s17 = smov (!%p11947_p11, %s9772_s17), 15  ;;  %s15102_s21 = smov (!%p11957_p12, %s9774_s21), 31 }
  0x1b   : > { %10055 = vmatpush3.msra.mxu1 %v504_v7  ;;  %10021 = vmatprep.subr.mxu0 %v487_v8  ;;  %v470_v14 = vld [vmem:[%s14908_s4 + $0x60] sm:$0xff]  ;;  %v469_v18 = vld [vmem:[%s14908_s4 + $0x58] sm:$0xff]  ;;  %v468_v22 = vld [vmem:[%s14908_s4 + $0x50] sm:$0xff]  ;;  %s11719_s23 = scalar_lea.vmem %s14949_s0, %s10015_s16  ;;  %s14945_s27 = sshll.u32 %s15100_s17, 3 }
  0x1c   : > { %10056 = vmatprep.subr.mxu1 %v519_v9  ;;  %v502_v15 = vld [vmem:[%s14908_s4 + $0x160] sm:$0xff]  ;;  %10022 = vmatpush3.msra.mxu0 %v471_v10  ;;  %v501_v19 = vld [vmem:[%s14908_s4 + $0x158] sm:$0xff]  ;;  %v500_v23 = vld [vmem:[%s14908_s4 + $0x150] sm:$0xff]  ;;  %s9775_s16 = sshll.u32 %s15102_s21, 3  ;;  %s12003_s0 = scalar_lea.vmem %s14905_s1, %s14945_s27 }
  0x1d   : > { %10057 = vmatpush3.msra.mxu1 %v503_v11  ;;  %10023 = vmatprep.subr.mxu0 %v486_v12  ;;  %v483_v24 = vld [vmem:[%s14908_s4 + $0xc8] sm:$0xff]  ;;  %v482_v28 = vld [vmem:[%s14908_s4 + $0xc0] sm:$0xff]  ;;  %v481_v32 = vld [vmem:[%s14908_s4 + $0xb8] sm:$0xff]  ;;  %s12008_s29 = scalar_lea.vmem %s14906_s2, %s9775_s16  ;;  %s11413_s16 = smov 120  }
  0x1e   : > { %10058 = vmatprep.subr.mxu1 %v518_v13  ;;  %10024 = vmatpush3.msra.mxu0 %v470_v14  ;;  %v515_v25 = vld [vmem:[%s14908_s4 + $0x1c8] sm:$0xff]  ;;  %v514_v29 = vld [vmem:[%s14908_s4 + $0x1c0] sm:$0xff]  ;;  %v513_v33 = vld [vmem:[%s14908_s4 + $0x1b8] sm:$0xff]  ;;  %s11422_s21 = smov 88   ;;  %s11424_s25 = smov 80  }
  0x1f   : > { %10059 = vmatpush3.msra.mxu1 %v502_v15  ;;  %10025 = vmatprep.subr.mxu0 %v485_v16  ;;  %v467_v26 = vld [vmem:[%s14908_s4 + $0x48] sm:$0xff]  ;;  %v466_v30 = vld [vmem:[%s14908_s4 + $0x40] sm:$0xff]  ;;  %v465_v34 = vld [vmem:[%s14908_s4 + $0x38] sm:$0xff]  ;;  %s11427_s28 = smov 48   ;;  %s11428_s22 = smov 32  }
  0x20   : > { %10060 = vmatprep.subr.mxu1 %v517_v17  ;;  %10026 = vmatpush3.msra.mxu0 %v469_v18  ;;  %v499_v27 = vld [vmem:[%s14908_s4 + $0x148] sm:$0xff]  ;;  %v498_v31 = vld [vmem:[%s14908_s4 + $0x140] sm:$0xff]  ;;  %v497_v35 = vld [vmem:[%s14908_s4 + $0x138] sm:$0xff]  ;;  %s11429_s24 = smov 72   ;;  %s11430_s26 = smov 16  }
  0x21   : > { %10061 = vmatpush3.msra.mxu1 %v501_v19  ;;  %10027 = vmatprep.subr.mxu0 %v484_v20  ;;  %v480_v36 = vld [vmem:[%s14908_s4 + $0xb0] sm:$0xff]  ;;  %v479_v40 = vld [vmem:[%s14908_s4 + $0xa8] sm:$0xff]  ;;  %v478_v44 = vld [vmem:[%s14908_s4 + $0xa0] sm:$0xff] }
  0x22   : > { %10062 = vmatprep.subr.mxu1 %v516_v21  ;;  %10028 = vmatpush3.msra.mxu0 %v468_v22  ;;  %v512_v37 = vld [vmem:[%s14908_s4 + $0x1b0] sm:$0xff]  ;;  %v511_v41 = vld [vmem:[%s14908_s4 + $0x1a8] sm:$0xff]  ;;  %v510_v45 = vld [vmem:[%s14908_s4 + $0x1a0] sm:$0xff] }
  0x23   : > { %10063 = vmatpush3.msra.mxu1 %v500_v23  ;;  %10029 = vmatprep.subr.mxu0 %v483_v24  ;;  %v464_v38 = vld [vmem:[%s14908_s4 + $0x30] sm:$0xff]  ;;  %v463_v42 = vld [vmem:[%s14908_s4 + $0x28] sm:$0xff]  ;;  %v462_v46 = vld [vmem:[%s14908_s4 + $0x20] sm:$0xff] }
  0x24   : > { %10064 = vmatprep.subr.mxu1 %v515_v25  ;;  %10030 = vmatpush3.msra.mxu0 %v467_v26  ;;  %v496_v39 = vld [vmem:[%s14908_s4 + $0x130] sm:$0xff]  ;;  %v495_v43 = vld [vmem:[%s14908_s4 + $0x128] sm:$0xff]  ;;  %v494_v47 = vld [vmem:[%s14908_s4 + $0x120] sm:$0xff] }
  0x25   : > { %10065 = vmatpush3.msra.mxu1 %v499_v27  ;;  %10031 = vmatprep.subr.mxu0 %v482_v28  ;;  %v477_v48 = vld [vmem:[%s14908_s4 + $0x98] sm:$0xff]  ;;  %v476_v52 = vld [vmem:[%s14908_s4 + $0x90] sm:$0xff]  ;;  %v475_v56 = vld [vmem:[%s14908_s4 + $0x88] sm:$0xff] }
  0x26   : > { %10066 = vmatprep.subr.mxu1 %v514_v29  ;;  %10032 = vmatpush3.msra.mxu0 %v466_v30  ;;  %v509_v49 = vld [vmem:[%s14908_s4 + $0x198] sm:$0xff]  ;;  %v508_v53 = vld [vmem:[%s14908_s4 + $0x190] sm:$0xff]  ;;  %v507_v57 = vld [vmem:[%s14908_s4 + $0x188] sm:$0xff] }
  0x27   : > { %10067 = vmatpush3.msra.mxu1 %v498_v31  ;;  %10033 = vmatprep.subr.mxu0 %v481_v32  ;;  %v461_v50 = vld [vmem:[%s14908_s4 + $0x18] sm:$0xff]  ;;  %v460_v54 = vld [vmem:[%s14908_s4 + $0x10] sm:$0xff]  ;;  %v459_v58 = vld [vmem:[%s14908_s4 + $0x8] sm:$0xff] }
  0x28   : > { %10068 = vmatprep.subr.mxu1 %v513_v33  ;;  %10034 = vmatpush3.msra.mxu0 %v465_v34  ;;  %v493_v51 = vld [vmem:[%s14908_s4 + $0x118] sm:$0xff]  ;;  %v492_v55 = vld [vmem:[%s14908_s4 + $0x110] sm:$0xff]  ;;  %v491_v59 = vld [vmem:[%s14908_s4 + $0x108] sm:$0xff] }
  0x29   : > { %10069 = vmatpush3.msra.mxu1 %v497_v35  ;;  %10035 = vmatprep.subr.mxu0 %v480_v36  ;;  %v474_v60 = vld [vmem:[%s14908_s4 + $0x80] sm:$0xff]  ;;  %v451_v63 = vld [vmem:[%s11719_s23 + $0x8] sm:$0xff]  ;;  %v453_v1 = vld [vmem:[%s11719_s23 + $0x18] sm:$0xff] }
  0x2a   : > { %10070 = vmatprep.subr.mxu1 %v512_v37  ;;  %10036 = vmatpush3.msra.mxu0 %v464_v38  ;;  %v506_v61 = vld [vmem:[%s14908_s4 + $0x180] sm:$0xff]  ;;  %v452_v3 = vld [vmem:[%s11719_s23 + $0x10] sm:$0xff]  ;;  %v553_v4 = vld [vmem:[%s14908_s4 + $0x2f8] sm:$0xff] }
  0x2b   : > { %10071 = vmatpush3.msra.mxu1 %v496_v39  ;;  %10037 = vmatprep.subr.mxu0 %v479_v40  ;;  %v458_v62 = vld [vmem:[%s14908_s4] sm:$0xff]  ;;  %v585_v5 = vld [vmem:[%s14908_s4 + $0x3f8] sm:$0xff]  ;;  %v552_v8 = vld [vmem:[%s14908_s4 + $0x2f0] sm:$0xff] }
  0x2c   : > { %10072 = vmatprep.subr.mxu1 %v511_v41  ;;  %10038 = vmatpush3.msra.mxu0 %v463_v42  ;;  %v490_v0 = vld [vmem:[%s14908_s4 + $0x100] sm:$0xff]  ;;  %v537_v6 = vld [vmem:[%s14908_s4 + $0x278] sm:$0xff]  ;;  %v584_v9 = vld [vmem:[%s14908_s4 + $0x3f0] sm:$0xff] }
  0x2d   : > { %10073 = vmatpush3.msra.mxu1 %v495_v43  ;;  %10039 = vmatprep.subr.mxu0 %v478_v44  ;;  %v450_v2 = vld [vmem:[%s11719_s23] sm:$0xff]  ;;  %v569_v7 = vld [vmem:[%s14908_s4 + $0x378] sm:$0xff]  ;;  %v536_v10 = vld [vmem:[%s14908_s4 + $0x270] sm:$0xff] }
  0x2e   : > { %10074 = vmatprep.subr.mxu1 %v510_v45  ;;  %10040 = vmatpush3.msra.mxu0 %v462_v46  ;;  %v568_v11 = vld [vmem:[%s14908_s4 + $0x370] sm:$0xff]  ;;  %v551_v12 = vld [vmem:[%s14908_s4 + $0x2e8] sm:$0xff]  ;;  %v550_v16 = vld [vmem:[%s14908_s4 + $0x2e0] sm:$0xff] }
  0x2f   : > { %10075 = vmatpush3.msra.mxu1 %v494_v47  ;;  %10041 = vmatprep.subr.mxu0 %v477_v48  ;;  %v583_v13 = vld [vmem:[%s14908_s4 + $0x3e8] sm:$0xff]  ;;  %v582_v17 = vld [vmem:[%s14908_s4 + $0x3e0] sm:$0xff]  ;;  %v549_v20 = vld [vmem:[%s14908_s4 + $0x2d8] sm:$0xff] }
  0x30   : > { %10076 = vmatprep.subr.mxu1 %v509_v49  ;;  %10042 = vmatpush3.msra.mxu0 %v461_v50  ;;  %v535_v14 = vld [vmem:[%s14908_s4 + $0x268] sm:$0xff]  ;;  %v534_v18 = vld [vmem:[%s14908_s4 + $0x260] sm:$0xff]  ;;  %v581_v21 = vld [vmem:[%s14908_s4 + $0x3d8] sm:$0xff] }
  0x31   : > { %10077 = vmatpush3.msra.mxu1 %v493_v51  ;;  %10043 = vmatprep.subr.mxu0 %v476_v52  ;;  %v567_v15 = vld [vmem:[%s14908_s4 + $0x368] sm:$0xff]  ;;  %v566_v19 = vld [vmem:[%s14908_s4 + $0x360] sm:$0xff]  ;;  %v533_v22 = vld [vmem:[%s14908_s4 + $0x258] sm:$0xff] }
  0x32   : > { %10078 = vmatprep.subr.mxu1 %v508_v53  ;;  %10044 = vmatpush3.msra.mxu0 %v460_v54  ;;  %v565_v23 = vld [vmem:[%s14908_s4 + $0x358] sm:$0xff]  ;;  %v548_v24 = vld [vmem:[%s14908_s4 + $0x2d0] sm:$0xff]  ;;  %v547_v28 = vld [vmem:[%s14908_s4 + $0x2c8] sm:$0xff] }
  0x33   : > { %10079 = vmatpush3.msra.mxu1 %v492_v55  ;;  %10045 = vmatprep.subr.mxu0 %v475_v56  ;;  %v580_v25 = vld [vmem:[%s14908_s4 + $0x3d0] sm:$0xff]  ;;  %v579_v29 = vld [vmem:[%s14908_s4 + $0x3c8] sm:$0xff]  ;;  %v546_v32 = vld [vmem:[%s14908_s4 + $0x2c0] sm:$0xff] }
  0x34   : > { %10080 = vmatprep.subr.mxu1 %v507_v57  ;;  %10046 = vmatpush3.msra.mxu0 %v459_v58  ;;  %v532_v26 = vld [vmem:[%s14908_s4 + $0x250] sm:$0xff]  ;;  %v531_v30 = vld [vmem:[%s14908_s4 + $0x248] sm:$0xff]  ;;  %v578_v33 = vld [vmem:[%s14908_s4 + $0x3c0] sm:$0xff] }
  0x35   : > { %10081 = vmatpush3.msra.mxu1 %v491_v59  ;;  %10047 = vmatprep.subr.mxu0 %v474_v60  ;;  %v564_v27 = vld [vmem:[%s14908_s4 + $0x350] sm:$0xff]  ;;  %v563_v31 = vld [vmem:[%s14908_s4 + $0x348] sm:$0xff]  ;;  %v530_v34 = vld [vmem:[%s14908_s4 + $0x240] sm:$0xff] }
  0x36   : > { %10082 = vmatprep.subr.mxu1 %v506_v61  ;;  %10048 = vmatpush3.msra.mxu0 %v458_v62  ;;  %v562_v35 = vld [vmem:[%s14908_s4 + $0x340] sm:$0xff]  ;;  %v545_v36 = vld [vmem:[%s14908_s4 + $0x2b8] sm:$0xff]  ;;  %v544_v40 = vld [vmem:[%s14908_s4 + $0x2b0] sm:$0xff] }
  0x37   : > { %650 = vmatprep.mubr.f32.mxu0 %v451_v63  ;;  %10083 = vmatpush3.msra.mxu1 %v490_v0  ;;  %v577_v37 = vld [vmem:[%s14908_s4 + $0x3b8] sm:$0xff]  ;;  %v576_v41 = vld [vmem:[%s14908_s4 + $0x3b0] sm:$0xff]  ;;  %v543_v44 = vld [vmem:[%s14908_s4 + $0x2a8] sm:$0xff] }
  0x38   : > { %720 = vmatprep.mubr.f32.mxu1 %v453_v1  ;;  %651 = vmatmul.mubr.f32.vlgmr.msra.gmra.mxu0 %v450_v2  ;;  %v529_v38 = vld [vmem:[%s14908_s4 + $0x238] sm:$0xff]  ;;  %v528_v42 = vld [vmem:[%s14908_s4 + $0x230] sm:$0xff]  ;;  %v575_v45 = vld [vmem:[%s14908_s4 + $0x3a8] sm:$0xff] }
  0x39   : > { %721 = vmatmul.mubr.f32.vlgmr.msra.gmra.mxu1 %v452_v3  ;;  %10087 = vmatprep.subr.mxu0 %v553_v4  ;;  %v561_v39 = vld [vmem:[%s14908_s4 + $0x338] sm:$0xff]  ;;  %v560_v43 = vld [vmem:[%s14908_s4 + $0x330] sm:$0xff]  ;;  %v527_v46 = vld [vmem:[%s14908_s4 + $0x228] sm:$0xff] }
  0x3a   : > { %10122 = vmatprep.subr.mxu1 %v585_v5  ;;  %10088 = vmatpush3.msra.mxu0 %v537_v6  ;;  %v559_v47 = vld [vmem:[%s14908_s4 + $0x328] sm:$0xff]  ;;  %v542_v48 = vld [vmem:[%s14908_s4 + $0x2a0] sm:$0xff]  ;;  %v541_v52 = vld [vmem:[%s14908_s4 + $0x298] sm:$0xff] }
  0x3b   : > { %10123 = vmatpush3.msra.mxu1 %v569_v7  ;;  %10089 = vmatprep.subr.mxu0 %v552_v8  ;;  %v574_v49 = vld [vmem:[%s14908_s4 + $0x3a0] sm:$0xff]  ;;  %v573_v53 = vld [vmem:[%s14908_s4 + $0x398] sm:$0xff]  ;;  %v540_v56 = vld [vmem:[%s14908_s4 + $0x290] sm:$0xff] }
  0x3c   : > { %10124 = vmatprep.subr.mxu1 %v584_v9  ;;  %10090 = vmatpush3.msra.mxu0 %v536_v10  ;;  %v526_v50 = vld [vmem:[%s14908_s4 + $0x220] sm:$0xff]  ;;  %v525_v54 = vld [vmem:[%s14908_s4 + $0x218] sm:$0xff]  ;;  %v572_v57 = vld [vmem:[%s14908_s4 + $0x390] sm:$0xff] }
  0x3d   : > { %10125 = vmatpush3.msra.mxu1 %v568_v11  ;;  %10091 = vmatprep.subr.mxu0 %v551_v12  ;;  %v558_v51 = vld [vmem:[%s14908_s4 + $0x320] sm:$0xff]  ;;  %v557_v55 = vld [vmem:[%s14908_s4 + $0x318] sm:$0xff]  ;;  %v524_v58 = vld [vmem:[%s14908_s4 + $0x210] sm:$0xff] }
  0x3e   : > { %10126 = vmatprep.subr.mxu1 %v583_v13  ;;  %10092 = vmatpush3.msra.mxu0 %v535_v14  ;;  %v556_v59 = vld [vmem:[%s14908_s4 + $0x310] sm:$0xff]  ;;  %v539_v60 = vld [vmem:[%s14908_s4 + $0x288] sm:$0xff]  ;;  %v538_v0 = vld [vmem:[%s14908_s4 + $0x280] sm:$0xff] }
  0x3f   : > { %10127 = vmatpush3.msra.mxu1 %v567_v15  ;;  %10093 = vmatprep.subr.mxu0 %v550_v16  ;;  %v571_v61 = vld [vmem:[%s14908_s4 + $0x388] sm:$0xff]  ;;  %v570_v1 = vld [vmem:[%s14908_s4 + $0x380] sm:$0xff]  ;;  %v457_v5 = vld [vmem:[%s11719_s23 + $0x38] sm:$0xff] }
  0x40   : > { %10128 = vmatprep.subr.mxu1 %v582_v17  ;;  %10094 = vmatpush3.msra.mxu0 %v534_v18  ;;  %v523_v62 = vld [vmem:[%s14908_s4 + $0x208] sm:$0xff]  ;;  %v522_v2 = vld [vmem:[%s14908_s4 + $0x200] sm:$0xff]  ;;  %v456_v7 = vld [vmem:[%s11719_s23 + $0x30] sm:$0xff] }
  0x41   : > { %10129 = vmatpush3.msra.mxu1 %v566_v19  ;;  %10095 = vmatprep.subr.mxu0 %v549_v20  ;;  %v555_v63 = vld [vmem:[%s14908_s4 + $0x308] sm:$0xff]  ;;  %v554_v4 = vld [vmem:[%s14908_s4 + $0x300] sm:$0xff]  ;;  %v881_v8 = vld [vmem:[%s14909_s5 + $0x38] sm:$0xff] }
  0x42   : > { %10130 = vmatprep.subr.mxu1 %v581_v21  ;;  %10096 = vmatpush3.msra.mxu0 %v533_v22  ;;  %v455_v3 = vld [vmem:[%s11719_s23 + $0x28] sm:$0xff]  ;;  %v454_v6 = vld [vmem:[%s11719_s23 + $0x20] sm:$0xff]  ;;  %v405_v9 = vld [vmem:[%s14911_s7 + $0x38] sm:$0xff]  ;;  %s11421_s23 = smov 96  }
  0x43   : > { %10131 = vmatpush3.msra.mxu1 %v565_v23  ;;  %10097 = vmatprep.subr.mxu0 %v548_v24  ;;  %v880_v10 = vld [vmem:[%s14909_s5 + $0x30] sm:$0xff]  ;;  %v879_v12 = vld [vmem:[%s14909_s5 + $0x28] sm:$0xff]  ;;  %v878_v14 = vld [vmem:[%s14909_s5 + $0x20] sm:$0xff] }
  0x44   : > { %10132 = vmatprep.subr.mxu1 %v580_v25  ;;  %10098 = vmatpush3.msra.mxu0 %v532_v26  ;;  %v404_v11 = vld [vmem:[%s14911_s7 + $0x30] sm:$0xff]  ;;  %v403_v13 = vld [vmem:[%s14911_s7 + $0x28] sm:$0xff]  ;;  %v402_v15 = vld [vmem:[%s14911_s7 + $0x20] sm:$0xff] }
  0x45   : > { %10133 = vmatpush3.msra.mxu1 %v564_v27  ;;  %10099 = vmatprep.subr.mxu0 %v547_v28  ;;  %v877_v16 = vld [vmem:[%s14909_s5 + $0x18] sm:$0xff]  ;;  %v876_v18 = vld [vmem:[%s14909_s5 + $0x10] sm:$0xff]  ;;  %v875_v20 = vld [vmem:[%s14909_s5 + $0x8] sm:$0xff] }
  0x46   : > { %10134 = vmatprep.subr.mxu1 %v579_v29  ;;  %10100 = vmatpush3.msra.mxu0 %v531_v30  ;;  %v401_v17 = vld [vmem:[%s14911_s7 + $0x18] sm:$0xff]  ;;  %v400_v19 = vld [vmem:[%s14911_s7 + $0x10] sm:$0xff]  ;;  %v399_v21 = vld [vmem:[%s14911_s7 + $0x8] sm:$0xff] }
  0x47   : > { %10135 = vmatpush3.msra.mxu1 %v563_v31  ;;  %10101 = vmatprep.subr.mxu0 %v546_v32  ;;  %v874_v22 = vld [vmem:[%s14909_s5] sm:$0xff]  ;;  %v867_v26 = vld [vmem:[%s12003_s0 + $0x8] sm:$0xff]  ;;  %v868_v28 = vld [vmem:[%s12003_s0 + $0x10] sm:$0xff] }
  0x48   : > { %10136 = vmatprep.subr.mxu1 %v578_v33  ;;  %10102 = vmatpush3.msra.mxu0 %v530_v34  ;;  %v398_v23 = vld [vmem:[%s14911_s7] sm:$0xff]  ;;  %v1013_v27 = vld [vmem:[%s12008_s29 + $0x8] sm:$0xff]  ;;  %v1014_v29 = vld [vmem:[%s12008_s29 + $0x10] sm:$0xff] }
  0x49   : > { %10137 = vmatpush3.msra.mxu1 %v562_v35  ;;  %10103 = vmatprep.subr.mxu0 %v545_v36  ;;  %v866_v24 = vld [vmem:[%s12003_s0] sm:$0xff]  ;;  %v869_v30 = vld [vmem:[%s12003_s0 + $0x18] sm:$0xff]  ;;  %v871_v34 = vld [vmem:[%s12003_s0 + $0x28] sm:$0xff] }
  0x4a   : > { %10138 = vmatprep.subr.mxu1 %v577_v37  ;;  %10104 = vmatpush3.msra.mxu0 %v529_v38  ;;  %v1012_v25 = vld [vmem:[%s12008_s29] sm:$0xff]  ;;  %v1015_v31 = vld [vmem:[%s12008_s29 + $0x18] sm:$0xff]  ;;  %v1017_v35 = vld [vmem:[%s12008_s29 + $0x28] sm:$0xff] }
  0x4b   : > { %10139 = vmatpush3.msra.mxu1 %v561_v39  ;;  %10105 = vmatprep.subr.mxu0 %v544_v40  ;;  %v870_v32 = vld [vmem:[%s12003_s0 + $0x20] sm:$0xff]  ;;  %v872_v36 = vld [vmem:[%s12003_s0 + $0x30] sm:$0xff]  ;;  %v873_v38 = vld [vmem:[%s12003_s0 + $0x38] sm:$0xff]  ;;  %s11412_s0 = smov 112  }
  0x4c   : > { %10140 = vmatprep.subr.mxu1 %v576_v41  ;;  %10106 = vmatpush3.msra.mxu0 %v528_v42  ;;  %v1016_v33 = vld [vmem:[%s12008_s29 + $0x20] sm:$0xff]  ;;  %v1018_v37 = vld [vmem:[%s12008_s29 + $0x30] sm:$0xff]  ;;  %v1019_v39 = vld [vmem:[%s12008_s29 + $0x38] sm:$0xff] }
  0x4d   : > { %10141 = vmatpush3.msra.mxu1 %v560_v43  ;;  %10107 = vmatprep.subr.mxu0 %v543_v44  ;;  %v1020_v40 = vld [vmem:[%s12008_s29 + $0x40] sm:$0xff]  ;;  %v1021_v41 = vld [vmem:[%s12008_s29 + $0x48] sm:$0xff]  ;;  %v1022_v42 = vld [vmem:[%s12008_s29 + $0x50] sm:$0xff] }
  0x4e   : > { %10142 = vmatprep.subr.mxu1 %v575_v45  ;;  %10108 = vmatpush3.msra.mxu0 %v527_v46  ;;  %v1023_v43 = vld [vmem:[%s12008_s29 + $0x58] sm:$0xff]  ;;  %v1024_v44 = vld [vmem:[%s12008_s29 + $0x60] sm:$0xff]  ;;  %v1025_v45 = vld [vmem:[%s12008_s29 + $0x68] sm:$0xff] }
  0x4f   : > { %10143 = vmatpush3.msra.mxu1 %v559_v47  ;;  %10109 = vmatprep.subr.mxu0 %v542_v48  ;;  %v1026_v46 = vld [vmem:[%s12008_s29 + $0x70] sm:$0xff]  ;;  %v1027_v47 = vld [vmem:[%s12008_s29 + $0x78] sm:$0xff]  ;;  %v14914_v48 = vmov 0.0   ;;  %s11426_s29 = smov 64  }
  0x50   : > { %10144 = vmatprep.subr.mxu1 %v574_v49  ;;  %10110 = vmatpush3.msra.mxu0 %v526_v50 }
  0x51   : > { %10145 = vmatpush3.msra.mxu1 %v558_v51  ;;  %10111 = vmatprep.subr.mxu0 %v541_v52 }
  0x52   : > { %10146 = vmatprep.subr.mxu1 %v573_v53  ;;  %10112 = vmatpush3.msra.mxu0 %v525_v54 }
  0x53   : > { %10147 = vmatpush3.msra.mxu1 %v557_v55  ;;  %10113 = vmatprep.subr.mxu0 %v540_v56 }
  0x54   : > { %10148 = vmatprep.subr.mxu1 %v572_v57  ;;  %10114 = vmatpush3.msra.mxu0 %v524_v58 }
  0x55   : > { %10149 = vmatpush3.msra.mxu1 %v556_v59  ;;  %10115 = vmatprep.subr.mxu0 %v539_v60 }
  0x56   : > { %10150 = vmatprep.subr.mxu1 %v571_v61  ;;  %10116 = vmatpush3.msra.mxu0 %v523_v62 }
  0x57   : > { %10151 = vmatpush3.msra.mxu1 %v555_v63  ;;  %10117 = vmatprep.subr.mxu0 %v538_v0 }
  0x58   : > { %10152 = vmatprep.subr.mxu1 %v570_v1  ;;  %10118 = vmatpush3.msra.mxu0 %v522_v2 }
  0x59   : > { %790 = vmatprep.mubr.f32.mxu0 %v455_v3  ;;  %10153 = vmatpush3.msra.mxu1 %v554_v4 }
  0x5a   : > { %860 = vmatprep.mubr.f32.mxu1 %v457_v5  ;;  %791 = vmatmul.mubr.f32.vlgmr.msra.gmra.mxu0 %v454_v6 }
  0x5b   : > { %861 = vmatmul.mubr.f32.vlgmr.msra.gmra.mxu1 %v456_v7  ;;  %10477 = vmatprep.subr.mxu0 %v881_v8 }
  0x5c   : > { %10505 = vmatprep.subr.mxu1 %v405_v9  ;;  %10478 = vmatpush3.msra.mxu0 %v881_v8 }
  0x5d   : > { %10506 = vmatpush3.msra.mxu1 %v405_v9  ;;  %10479 = vmatprep.subr.mxu0 %v880_v10 }
  0x5e   : > { %10507 = vmatprep.subr.mxu1 %v404_v11  ;;  %10480 = vmatpush3.msra.mxu0 %v880_v10 }
  0x5f   : > { %10508 = vmatpush3.msra.mxu1 %v404_v11  ;;  %10481 = vmatprep.subr.mxu0 %v879_v12 }
  0x60   : > { %10509 = vmatprep.subr.mxu1 %v403_v13  ;;  %10482 = vmatpush3.msra.mxu0 %v879_v12 }
  0x61   : > { %10510 = vmatpush3.msra.mxu1 %v403_v13  ;;  %10483 = vmatprep.subr.mxu0 %v878_v14 }
  0x62   : > { %10511 = vmatprep.subr.mxu1 %v402_v15  ;;  %10484 = vmatpush3.msra.mxu0 %v878_v14 }
  0x63   : > { %10512 = vmatpush3.msra.mxu1 %v402_v15  ;;  %10485 = vmatprep.subr.mxu0 %v877_v16 }
  0x64   : > { %10513 = vmatprep.subr.mxu1 %v401_v17  ;;  %10486 = vmatpush3.msra.mxu0 %v877_v16 }
  0x65   : > { %10514 = vmatpush3.msra.mxu1 %v401_v17  ;;  %10487 = vmatprep.subr.mxu0 %v876_v18  ;;  %v14926_v17 = vmov 683565275  }
  0x66   : > { %10515 = vmatprep.subr.mxu1 %v400_v19  ;;  %10488 = vmatpush3.msra.mxu0 %v876_v18 }
  0x67   : > { %10516 = vmatpush3.msra.mxu1 %v400_v19  ;;  %10489 = vmatprep.subr.mxu0 %v875_v20  ;;  %v14923_v19 = vmov 2475754826  }
  0x68   : > { %10517 = vmatprep.subr.mxu1 %v399_v21  ;;  %10490 = vmatpush3.msra.mxu0 %v875_v20 }
  0x69   : > { %10518 = vmatpush3.msra.mxu1 %v399_v21  ;;  %10491 = vmatprep.subr.mxu0 %v874_v22  ;;  %v14921_v21 = vmov 2131351028  }
  0x6a   : > { %10519 = vmatprep.subr.mxu1 %v398_v23  ;;  %10492 = vmatpush3.msra.mxu0 %v874_v22 }
  0x6b   : > { %10493 = vmatprep.mubr.msk.f32.mxu0 %vm882_vm0, %v866_v24  ;;  %10520 = vmatpush3.msra.mxu1 %v398_v23  ;;  %v14919_v23 = vmov 2102212464  }
  0x6c   : > { %10521 = vmatprep.mubr.msk.f32.mxu1 %vm882_vm0, %v1012_v25  ;;  %10494 = vmatmul.mubr.msk.f32.vlgmr.msra.gmra.mxu0 %vm882_vm0, %v867_v26 }
  0x6d   : > { %10522 = vmatmul.mubr.msk.f32.vlgmr.msra.gmra.mxu1 %vm882_vm0, %v1013_v27  ;;  %10496 = vmatprep.mubr.msk.f32.mxu0 %vm882_vm0, %v868_v28  ;;  %v14928_v28 = vmov 920167782  }
  0x6e   : > { %10524 = vmatprep.mubr.msk.f32.mxu1 %vm882_vm0, %v1014_v29  ;;  %10545 = vmatprep.subr.mxu0 %v14914_v48 }
  0x6f   : > { %10580 = vmatprep.subr.mxu1 %v14914_v48 }
  0x70   : > { %10497 = vmatmul.mubr.msk.f32.gmra.mxu0 %vm882_vm0, %v869_v30 }
  0x71   : > { %10525 = vmatmul.mubr.msk.f32.gmra.mxu1 %vm882_vm0, %v1015_v31  ;;  %10499 = vmatprep.mubr.msk.f32.mxu0 %vm882_vm0, %v870_v32  ;;  %v14916_v31 = vmov 1326507024  }
  0x72   : > { %10527 = vmatprep.mubr.msk.f32.mxu1 %vm882_vm0, %v1016_v33 }
  0x74   : > { %10500 = vmatmul.mubr.msk.f32.gmra.mxu0 %vm882_vm0, %v871_v34 }
  0x75   : > { %10528 = vmatmul.mubr.msk.f32.gmra.mxu1 %vm882_vm0, %v1017_v35  ;;  %10502 = vmatprep.mubr.msk.f32.mxu0 %vm882_vm0, %v872_v36 }
  0x76   : > { %10530 = vmatprep.mubr.msk.f32.mxu1 %vm882_vm0, %v1018_v37 }
  0x78   : > { %10503 = vmatmul.mubr.msk.f32.gmra.mxu0 %vm882_vm0, %v873_v38 }
  0x79   : > { %10531 = vmatmul.mubr.msk.f32.gmra.mxu1 %vm882_vm0, %v1019_v39 }
  0x7a   : > { %10533 = vmatprep.mubr.msk.f32.mxu1 %vm882_vm0, %v1020_v40 }
  0x7d   : > { %10534 = vmatmul.mubr.msk.f32.gmra.mxu1 %vm882_vm0, %v1021_v41 }
  0x7e   : > { %10536 = vmatprep.mubr.msk.f32.mxu1 %vm882_vm0, %v1022_v42 }
  0x81   : > { %10537 = vmatmul.mubr.msk.f32.gmra.mxu1 %vm882_vm0, %v1023_v43 }
  0x82   : > { %10539 = vmatprep.mubr.msk.f32.mxu1 %vm882_vm0, %v1024_v44 }
  0x85   : > { %10540 = vmatmul.mubr.msk.f32.gmra.mxu1 %vm882_vm0, %v1025_v45 }
  0x86   : > { %10542 = vmatprep.mubr.msk.f32.mxu1 %vm882_vm0, %v1026_v46 }
  0x89   : > { %10543 = vmatmul.mubr.msk.f32.gmra.mxu1 %vm882_vm0, %v1027_v47 }
  0xf8   : > { %v10049_v52 = vpop.f32.mrf.mxu0 }
  0xf9   : > { %v10084_v49 = vpop.f32.mrf.mxu1 }
  0xfa   : > { %v10050_v53 = vpop.f32.mrf.mxu0 }
  0xfb   : > { %v10085_v50 = vpop.f32.mrf.mxu1  ;;  %v10051_v54 = vadd.f32 %v10050_v53, %v10049_v52 }
  0xfc   : > { %v10086_v51 = vadd.f32 %v10085_v50, %v10084_v49 }
  0xfe   : > { %v723_v59 = vadd.f32 %v10086_v51, %v10051_v54 }
 0x11a   : > { %v10119_v55 = vpop.f32.mrf.mxu0 }
 0x11b   : > { %v10154_v56 = vpop.f32.mrf.mxu1 }
 0x11c   : > { %v10120_v57 = vpop.f32.mrf.mxu0 }
 0x11d   : > { %v10155_v58 = vpop.f32.mrf.mxu1  ;;  %v10121_v60 = vadd.f32 %v10120_v57, %v10119_v55 }
 0x11e   : > { %v10156_v61 = vadd.f32 %v10155_v58, %v10154_v56 }
 0x11f   : > { %v793_v62 = vadd.f32 %v10121_v60, %v723_v59 }
 0x121   : > { %v12066_v63 = vadd.f32 %v10156_v61, %v793_v62 }
 0x123   : > { %v1221_v0 = vand.u32 2147483647, %v12066_v63  ;;  %v1224_v1 = vand.u32 2139095040, %v12066_v63 }
 0x125   : > { %v1225_v2 = vshrl.u32 %v1224_v1, 23  ;;  %v1228_v4 = vand.u32 8388607, %v1221_v0 }
 0x127   : > { %v9834_v3 = vadd.s32 4294967169, %v1225_v2  ;;  %v1229_v6 = vor.u32 8388608, %v1228_v4 }
 0x129   : > { %v1231_v5 = vadd.s32 1, %v9834_v3  ;;  %v12085_v14 = vshll.u32 %v1229_v6, 8 }
 0x12b   : > { %vm1232_vm1 = vcmp.gt.s32.totalorder %v1231_v5, 0 }
 0x12c   : > { %v1233_v7 = vsel %vm1232_vm1, %v1231_v5, 0  ;;  %v12072_v8 = vpop.f32.mrf.mxu0 }
 0x12d   : > { %v12074_v9 = vpop.f32.mrf.mxu1  ;;  %v1235_v10 = vand.u32 31, %v1233_v7  ;;  %v12080_v11 = vshrl.u32 %v1233_v7, 5  ;;  %v1631_v15 = vand.u32 2147483647, %v12072_v8  ;;  %v1634_v16 = vand.u32 2139095040, %v12072_v8 }
 0x12e   : > { %14952 = vst [vmem:[#allocation5_spill] sm:$0xff] %v12074_v9  ;;  %4549 = vrot.lane.b32.xlu1 %v12074_v9, %s11412_s0  ;;  %3895 = vrot.lane.b32.xlu0 %v12074_v9, %s11413_s16  ;;  %v12129_v57 = vpop.f32.mrf.mxu0 }
 0x12f   : > { %10546 = vmatpush3.msra.mxu0 %v12074_v9  ;;  %v12083_v12 = vpop.f32.mrf.mxu1  ;;  %v1236_v13 = vsub.s32 32, %v1235_v10  ;;  %v1238_v18 = vshll.u32 %v14926_v17, %v1235_v10  ;;  %v1241_v20 = vshll.u32 %v14923_v19, %v1235_v10  ;;  %v1244_v22 = vshll.u32 %v14921_v21, %v1235_v10 }
 0x130   : > { %14953 = vst [vmem:[#allocation6_spill] sm:$0xff] %v12083_v12  ;;  %10547 = vmatprep.subr.mxu0 %v14914_v48  ;;  %v1247_v24 = vshll.u32 %v14919_v23, %v1235_v10  ;;  %v1250_v29 = vshll.u32 %v14928_v28, %v1235_v10  ;;  %vm1253_vm2 = vcmp.lt.s32.totalorder %v12080_v11, 1  ;;  %vm1254_vm3 = vcmp.lt.s32.totalorder %v12080_v11, 2 }
 0x131   : > { %10548 = vmatpush3.msra.mxu0 %v12083_v12  ;;  %v1239_v25 = vshrl.u32 %v14923_v19, %v1236_v13  ;;  %v1242_v26 = vshrl.u32 %v14921_v21, %v1236_v13  ;;  %v1245_v27 = vshrl.u32 %v14919_v23, %v1236_v13  ;;  %v1248_v30 = vshrl.u32 %v14928_v28, %v1236_v13  ;;  %v12116_v44 = vpop.f32.mrf.mxu1 }
 0x132   : > { %5189 = vrot.lane.b32.xlu1 %v12074_v9, %s11419_s14  ;;  %v1251_v32 = vshrl.u32 %v14916_v31, %v1236_v13  ;;  %3893 = vrot.lane.b32.xlu0 %v12083_v12, %s11413_s16  ;;  %vm1256_vm4 = vcmp.lt.s32.totalorder %v12080_v11, 4  ;;  %v1635_v38 = vshrl.u32 %v1634_v16, 23  ;;  %v1638_v39 = vand.u32 8388607, %v1631_v15 }
 0x133   : > { %10552 = vmatprep.subr.mxu0 %v14914_v48  ;;  %v1240_v33 = vor.u32 %v1239_v25, %v1238_v18  ;;  %v1243_v34 = vor.u32 %v1242_v26, %v1241_v20  ;;  %v1246_v35 = vor.u32 %v1245_v27, %v1244_v22  ;;  %v1249_v36 = vor.u32 %v1248_v30, %v1247_v24 }
 0x134   : > { %v1252_v37 = vor.u32 %v1251_v32, %v1250_v29  ;;  %v1237_v40 = vshrl.u32 %v14926_v17, %v1236_v13  ;;  %vm1255_vm5 = vcmp.lt.s32.totalorder %v12080_v11, 3  ;;  %v9846_v47 = vadd.s32 4294967169, %v1635_v38 }
 0x135   : > { %v1258_v41 = vsel %vm1256_vm4, %v1246_v35, 2102212464  ;;  %v1261_v42 = vsel %vm1253_vm2, %v1240_v33, %v1243_v34  ;;  %v1265_v43 = vsel %vm1253_vm2, %v1243_v34, %v1246_v35  ;;  %v1262_v45 = vsel %vm1256_vm4, %v1249_v36, 920167782 }
 0x136   : > { %5829 = vrot.lane.b32.xlu1 %v12074_v9, %s11421_s23  ;;  %v1266_v46 = vsel %vm1256_vm4, %v1252_v37, 1326507024  ;;  %4629 = vrot.lane.b32.xlu0 %v12116_v44, %s11412_s0  ;;  %v1257_v49 = vsel %vm1253_vm2, %v1237_v40, %v1240_v33  ;;  %v1259_v50 = vsel %vm1255_vm5, %v1243_v34, %v1258_v41  ;;  %v1263_v51 = vsel %vm1255_vm5, %v1246_v35, %v1262_v45 }
 0x137   : > { %v1267_v52 = vsel %vm1255_vm5, %v1249_v36, %v1266_v46  ;;  %v1264_v53 = vsel %vm1254_vm3, %v1261_v42, %v1263_v51  ;;  %v1639_v55 = vor.u32 8388608, %v1638_v39  ;;  %v1641_v56 = vadd.s32 1, %v9846_v47 }
 0x138   : > { %v1268_v54 = vsel %vm1254_vm3, %v1265_v43, %v1267_v52  ;;  %v12136_v60 = vmul.u32.u64.low %v12085_v14, %v1264_v53  ;;  %v12137_v61 = vmul.u32.u64.high %v12085_v14, %v1264_v53, %v12136_v60  ;;  %v1260_v62 = vsel %vm1254_vm3, %v1257_v49, %v1259_v50 }
 0x139   : > { %v12132_v58 = vmul.u32.u64.low %v12085_v14, %v1268_v54  ;;  %v12133_v59 = vmul.u32.u64.high %v12085_v14, %v1268_v54, %v12132_v58  ;;  %vm1642_vm6 = vcmp.gt.s32.totalorder %v1641_v56, 0  ;;  %v1531_v2 = vand.u32 2139095040, %v12129_v57 }
 0x13a   : > { %5269 = vrot.lane.b32.xlu0 %v12116_v44, %s11419_s14  ;;  %v1643_v1 = vsel %vm1642_vm6, %v1641_v56, 0  ;;  %v1276_v5 = vmul.u32 %v12085_v14, %v1260_v62  ;;  %v1279_v6 = vadd.s32 1, %v12137_v61  ;;  %v12149_v7 = vshll.u32 %v1639_v55, 8  ;;  %6469 = vrot.lane.b32.xlu1 %v12074_v9, %s11422_s21 }
 0x13b   : > { %v1644_v3 = vshrl.u32 %v1643_v1, 5  ;;  %v1645_v4 = vand.u32 31, %v1643_v1  ;;  %vm1278_vm7 = vc.u32 %v12133_v59, %v12136_v60  ;;  %v1532_v16 = vshrl.u32 %v1531_v2, 23 }
 0x13c   : > { %v1280_v18 = vsel %vm1278_vm7, %v1279_v6, %v12137_v61  ;;  %v1528_v6 = vand.u32 2147483647, %v12129_v57  ;;  %vm1223_vm4 = vcmp.lt.s32.totalorder %v12066_v63, 0  ;;  %vm12240_vm5 = vcmp.le.f32.partialorder %v1221_v0, 0.7853982 }
 0x13d   : > { %v1646_v10 = vsub.s32 32, %v1645_v4  ;;  %v1648_v11 = vshll.u32 %v14926_v17, %v1645_v4  ;;  %v1651_v13 = vshll.u32 %v14923_v19, %v1645_v4  ;;  %v1654_v14 = vshll.u32 %v14921_v21, %v1645_v4 }
 0x13e   : > { %5909 = vrot.lane.b32.xlu0 %v12116_v44, %s11421_s23  ;;  %v1657_v20 = vshll.u32 %v14919_v23, %v1645_v4  ;;  %v1660_v22 = vshll.u32 %v14928_v28, %v1645_v4  ;;  %v1281_v24 = vadd.s32 %v1280_v18, %v1276_v5  ;;  %vm1663_vm8 = vcmp.lt.s32.totalorder %v1644_v3, 1  ;;  %7109 = vrot.lane.b32.xlu1 %v12074_v9, %s11424_s25 }
 0x13f   : > { %v1649_v25 = vshrl.u32 %v14923_v19, %v1646_v10  ;;  %v1652_v26 = vshrl.u32 %v14921_v21, %v1646_v10  ;;  %v1647_v27 = vshrl.u32 %v14926_v17, %v1646_v10  ;;  %v1655_v29 = vshrl.u32 %v14919_v23, %v1646_v10 }
 0x140   : > { %v1658_v30 = vshrl.u32 %v14928_v28, %v1646_v10  ;;  %v1661_v32 = vshrl.u32 %v14916_v31, %v1646_v10  ;;  %v1282_v33 = vadd.s32 536870912, %v1281_v24  ;;  %vm1665_vm9 = vcmp.lt.s32.totalorder %v1644_v3, 3 }
 0x141   : > { %v1650_v34 = vor.u32 %v1649_v25, %v1648_v11  ;;  %v1653_v35 = vor.u32 %v1652_v26, %v1651_v13  ;;  %v1656_v36 = vor.u32 %v1655_v29, %v1654_v14  ;;  %vm1666_vm10 = vcmp.lt.s32.totalorder %v1644_v3, 4 }
 0x142   : > { %v1659_v37 = vor.u32 %v1658_v30, %v1657_v20  ;;  %v1662_v38 = vor.u32 %v1661_v32, %v1660_v22  ;;  %v12165_v39 = vshrl.u32 %v1282_v33, 30  ;;  %vm1664_vm11 = vcmp.lt.s32.totalorder %v1644_v3, 2  ;;  %6549 = vrot.lane.b32.xlu0 %v12116_v44, %s11422_s21  ;;  %4547 = vrot.lane.b32.xlu1 %v12083_v12, %s11412_s0 }
 0x143   : > { %v1671_v40 = vsel %vm1663_vm8, %v1650_v34, %v1653_v35  ;;  %v9842_v41 = vadd.s32 4294967169, %v1532_v16  ;;  %v1668_v42 = vsel %vm1666_vm10, %v1656_v36, 2102212464  ;;  %v1675_v45 = vsel %vm1663_vm8, %v1653_v35, %v1656_v36 }
 0x144   : > { %v1672_v43 = vsel %vm1666_vm10, %v1659_v37, 920167782  ;;  %v1676_v46 = vsel %vm1666_vm10, %v1662_v38, 1326507024  ;;  %v1284_v47 = vshll.u32 %v12165_v39, 30  ;;  %v1667_v50 = vsel %vm1663_vm8, %v1647_v27, %v1650_v34 }
 0x145   : > { %v1673_v49 = vsel %vm1665_vm9, %v1656_v36, %v1672_v43  ;;  %v1677_v51 = vsel %vm1665_vm9, %v1659_v37, %v1676_v46  ;;  %v1669_v53 = vsel %vm1665_vm9, %v1653_v35, %v1668_v42  ;;  %v1538_v61 = vadd.s32 1, %v9842_v41 }
 0x146   : > { %v1285_v52 = vsub.s32 %v1281_v24, %v1284_v47  ;;  %v1674_v54 = vsel %vm1664_vm11, %v1671_v40, %v1673_v49  ;;  %v1678_v55 = vsel %vm1664_vm11, %v1675_v45, %v1677_v51  ;;  %v1670_v1 = vsel %vm1664_vm11, %v1667_v50, %v1669_v53  ;;  %7189 = vrot.lane.b32.xlu0 %v12116_v44, %s11424_s25 }
 0x147   : > { %v12177_v56 = vmul.u32.u64.low %v12149_v7, %v1678_v55  ;;  %v12178_v58 = vmul.u32.u64.high %v12149_v7, %v1678_v55, %v12177_v56  ;;  %v12182_v2 = vmul.u32.u64.low %v12149_v7, %v1674_v54  ;;  %v12183_v4 = vmul.u32.u64.high %v12149_v7, %v1674_v54, %v12182_v2  ;;  %5187 = vrot.lane.b32.xlu1 %v12083_v12, %s11419_s14 }
 0x148   : > { %v1287_v62 = vsub.s32 0, %v1285_v52  ;;  %vm1539_vm12 = vcmp.gt.s32.totalorder %v1538_v61, 0  ;;  %v1686_v13 = vmul.u32 %v12149_v7, %v1670_v1  ;;  %v1277_v20 = vadd.s32 %v12136_v60, %v12133_v59 }
 0x149   : > { %v1540_v10 = vsel %vm1539_vm12, %v1538_v61, 0  ;;  %vm1688_vm13 = vc.u32 %v12178_v58, %v12182_v2  ;;  %v1689_v3 = vadd.s32 1, %v12183_v4  ;;  %v1535_v24 = vand.u32 8388607, %v1528_v6 }
 0x14a   : > { %v9835_v5 = vmin.u32 %v1287_v62, %v1285_v52  ;;  %v1542_v16 = vand.u32 31, %v1540_v10  ;;  %v1541_v35 = vshrl.u32 %v1540_v10, 5  ;;  %v12211_v62 = vpop.f32.mrf.mxu0  ;;  %v1687_v0 = vadd.s32 %v12182_v2, %v12178_v58 }
 0x14b   : > { %v1690_v22 = vsel %vm1688_vm13, %v1689_v3, %v12183_v4  ;;  %v1536_v61 = vor.u32 8388608, %v1535_v24  ;;  %vm12281_vm9 = vcmp.le.f32.partialorder %v1631_v15, 0.7853982  ;;  %vm1633_vm10 = vcmp.lt.s32.totalorder %v12072_v8, 0  ;;  %5827 = vrot.lane.b32.xlu1 %v12083_v12, %s11421_s23 }
 0x14c   : > { %v1289_v11 = vclz %v9835_v5  ;;  %v1543_v14 = vsub.s32 32, %v1542_v16  ;;  %v1545_v25 = vshll.u32 %v14926_v17, %v1542_v16  ;;  %v1691_v7 = vadd.s32 %v1690_v22, %v1686_v13 }
 0x14d   : > { %v1548_v26 = vshll.u32 %v14923_v19, %v1542_v16  ;;  %v1554_v27 = vshll.u32 %v14919_v23, %v1542_v16  ;;  %v1551_v37 = vshll.u32 %v14921_v21, %v1542_v16  ;;  %v1557_v40 = vshll.u32 %v14928_v28, %v1542_v16 }
 0x14e   : > { %v9836_v18 = vadd.s32 4294967294, %v1289_v11  ;;  %v1546_v30 = vshrl.u32 %v14923_v19, %v1543_v14  ;;  %v1549_v32 = vshrl.u32 %v14921_v21, %v1543_v14  ;;  %v1555_v59 = vshrl.u32 %v14928_v28, %v1543_v14 }
 0x14f   : > { %v1692_v34 = vadd.s32 536870912, %v1691_v7  ;;  %v1552_v38 = vshrl.u32 %v14919_v23, %v1543_v14  ;;  %v1558_v45 = vshrl.u32 %v14916_v31, %v1543_v14  ;;  %vm1563_vm15 = vcmp.lt.s32.totalorder %v1541_v35, 4  ;;  %6467 = vrot.lane.b32.xlu1 %v12083_v12, %s11422_s21 }
 0x150   : > { %vm9837_vm14 = vcmp.lt.s32.totalorder %v9836_v18, 0  ;;  %v1547_v46 = vor.u32 %v1546_v30, %v1545_v25  ;;  %v1550_v47 = vor.u32 %v1549_v32, %v1548_v26  ;;  %v1556_v49 = vor.u32 %v1555_v59, %v1554_v27 }
 0x151   : > { %v1292_v29 = vsel %vm9837_vm14, 0, %v9836_v18  ;;  %v12205_v43 = vshrl.u32 %v1692_v34, 30  ;;  %v1559_v54 = vor.u32 %v1558_v45, %v1557_v40  ;;  %vm1560_vm1 = vcmp.lt.s32.totalorder %v1541_v35, 1 }
 0x152   : > { %v1293_v60 = vsub.s32 32, %v1292_v29  ;;  %v1297_v33 = vsub.s32 4294967266, %v1292_v29  ;;  %v1294_v36 = vshll.u32 %v1285_v52, %v1292_v29  ;;  %v1553_v52 = vor.u32 %v1552_v38, %v1551_v37 }
 0x153   : > { %v1694_v53 = vshll.u32 %v12205_v43, 30  ;;  %vm1562_vm2 = vcmp.lt.s32.totalorder %v1541_v35, 3  ;;  %v1544_v1 = vshrl.u32 %v14926_v17, %v1543_v14  ;;  %vm1561_vm3 = vcmp.lt.s32.totalorder %v1541_v35, 2  ;;  %7107 = vrot.lane.b32.xlu1 %v12083_v12, %s11424_s25 }
 0x154   : > { %v1295_v41 = vshrl.u32 %v1277_v20, %v1293_v60  ;;  %v1298_v42 = vadd.s32 127, %v1297_v33  ;;  %v1565_v4 = vsel %vm1563_vm15, %v1553_v52, 2102212464  ;;  %v1569_v5 = vsel %vm1563_vm15, %v1556_v49, 920167782 }
 0x155   : > { %v12209_v56 = vsub.s32 %v1691_v7, %v1694_v53  ;;  %v1568_v16 = vsel %vm1560_vm1, %v1547_v46, %v1550_v47  ;;  %v1570_v3 = vsel %vm1562_vm2, %v1553_v52, %v1569_v5  ;;  %v1572_v18 = vsel %vm1560_vm1, %v1550_v47, %v1553_v52 }
 0x156   : > { %v1296_v50 = vor.u32 %v1295_v41, %v1294_v36  ;;  %v1299_v51 = vshll.u32 %v1298_v42, 23  ;;  %v1573_v20 = vsel %vm1563_vm15, %v1559_v54, 1326507024  ;;  %v1840_v22 = vand.u32 2139095040, %v12211_v62 }
 0x157   : > { %v1697_v13 = vsub.s32 0, %v12209_v56  ;;  %v1576_v25 = vshll.u32 %v1536_v61, 8  ;;  %v1564_v7 = vsel %vm1560_vm1, %v1544_v1, %v1547_v46  ;;  %v1566_v26 = vsel %vm1562_vm2, %v1550_v47, %v1565_v4  ;;  %3977 = vrot.lane.b32.xlu1 %v12116_v44, %s11413_s16 }
 0x158   : > { %v1300_v55 = vor.u32 4788187, %v1299_v51  ;;  %v1303_v11 = vcvt.s32.f32 %v1296_v50  ;;  %v1574_v27 = vsel %vm1562_vm2, %v1556_v49, %v1573_v20  ;;  %v1571_v32 = vsel %vm1561_vm3, %v1568_v16, %v1570_v3 }
 0x159   : > { %v9847_v24 = vmin.u32 %v1697_v13, %v12209_v56  ;;  %v1575_v59 = vsel %vm1561_vm3, %v1572_v18, %v1574_v27  ;;  %v1307_v60 = vsub.s32 4, %v12165_v39  ;;  %v1841_v33 = vshrl.u32 %v1840_v22, 23 }
 0x15a   : > { %v1301_v10 = vand.u32 2147483647, %v1300_v55  ;;  %v12230_v37 = vmul.u32.u64.low %v1576_v25, %v1575_v59  ;;  %v12231_v38 = vmul.u32.u64.high %v1576_v25, %v1575_v59, %v12230_v37  ;;  %v1567_v40 = vsel %vm1561_vm3, %v1564_v7, %v1566_v26 }
 0x15b   : > { %v1699_v30 = vclz %v9847_v24  ;;  %v12234_v41 = vmul.u32.u64.low %v1576_v25, %v1571_v32  ;;  %v12235_v42 = vmul.u32.u64.high %v1576_v25, %v1571_v32, %v12234_v41  ;;  %v9854_v45 = vadd.s32 4294967169, %v1841_v33 }
 0x15c   : > { %v1304_v14 = vmul.f32 %v1303_v11, %v1301_v10  ;;  %v1308_v35 = vsel %vm1223_vm4, %v1307_v60, %v12165_v39  ;;  %v1583_v52 = vmul.u32 %v1576_v25, %v1567_v40  ;;  %v11423_v5 = vmov 1966171168  }
 0x15d   : > { %v9848_v36 = vadd.s32 4294967294, %v1699_v30  ;;  %v1847_v50 = vadd.s32 1, %v9854_v45  ;;  %vm1585_vm7 = vc.u32 %v12231_v38, %v12234_v41  ;;  %v1586_v54 = vadd.s32 1, %v12235_v42 }
 0x15e   : > { %v1305_v29 = vxor.u32 2147483648, %v1304_v14  ;;  %v1310_v39 = vsel %vm12240_vm5, 0, %v1308_v35  ;;  %v1327_v10 = vunpack.c.l.s4 %v11423_v5  ;;  %v1329_v11 = vlaneseq }
 0x15f   : > { %vm9849_vm6 = vcmp.lt.s32.totalorder %v9848_v36, 0  ;;  %vm1848_vm8 = vcmp.gt.s32.totalorder %v1847_v50, 0  ;;  %v1587_v61 = vsel %vm1585_vm7, %v1586_v54, %v12235_v42  ;;  %v1837_v3 = vand.u32 2147483647, %v12211_v62 }
 0x160   : > { %v1306_v34 = vsel %vm1223_vm4, %v1305_v29, %v1304_v14  ;;  %v1702_v49 = vsel %vm9849_vm6, 0, %v9848_v36  ;;  %v1588_v4 = vadd.s32 %v1587_v61, %v1583_v52  ;;  %v1849_v13 = vsel %vm1848_vm8, %v1847_v50, 0 }
 0x161   : > { %v1309_v47 = vsel %vm12240_vm5, %v12066_v63, %v1306_v34  ;;  %v1703_v51 = vsub.s32 32, %v1702_v49  ;;  %v1707_v53 = vsub.s32 4294967266, %v1702_v49  ;;  %v1704_v1 = vshll.u32 %v12209_v56, %v1702_v49 }
 0x162   : > { %11249 = vcosq.f32 %v1309_v47  ;;  %v1589_v16 = vadd.s32 536870912, %v1588_v4  ;;  %v1467_v18 = vadd.s32 3, %v1310_v39  ;;  %v1851_v24 = vand.u32 31, %v1849_v13 }
 0x163   : > { %v1708_v55 = vadd.s32 127, %v1707_v53  ;;  %11251 = vsinq.f32 %v1309_v47  ;;  %v1705_v58 = vshrl.u32 %v1687_v0, %v1703_v51  ;;  %v1328_v25 = vunpack.c.0.s8 %v1327_v10 }
 0x164   : > { %v12262_v14 = vshrl.u32 %v1589_v16, 30  ;;  %v12264_v7 = vshrl.u32 %v1329_v11, 7  ;;  %v12266_v56 = vand.u32 3, %v1310_v39  ;;  %v1717_v26 = vsub.s32 4, %v12205_v43 }
 0x165   : > { %v1709_v2 = vshll.u32 %v1708_v55, 23  ;;  %v1706_v20 = vor.u32 %v1705_v58, %v1704_v1  ;;  %v1844_v29 = vand.u32 8388607, %v1837_v3  ;;  %v12272_v30 = vand.u32 3, %v1467_v18 }
 0x166   : > { %v1591_v27 = vshll.u32 %v12262_v14, 30  ;;  %v1852_v33 = vsub.s32 32, %v1851_v24  ;;  %v12277_v34 = vsub.s32 %v1328_v25, %v12264_v7  ;;  %vm1319_vm11 = vcmp.eq.s32.totalorder %v12266_v56, 2 }
 0x167   : > { %v1710_v22 = vor.u32 4788187, %v1709_v2  ;;  %v1713_v59 = vcvt.s32.f32 %v1706_v20  ;;  %v1718_v37 = vsel %vm1633_vm10, %v1717_v26, %v12205_v43  ;;  %v1845_v42 = vor.u32 8388608, %v1844_v29 }
 0x168   : > { %v12274_v60 = vsub.s32 %v1588_v4, %v1591_v27  ;;  %vm1316_vm12 = vcmp.eq.s32.totalorder %v12266_v56, 0  ;;  %vm1470_vm13 = vcmp.eq.s32.totalorder %v12272_v30, 0  ;;  %v1854_v15 = vshll.u32 %v14926_v17, %v1851_v24 }
 0x169   : > { %v1711_v32 = vand.u32 2147483647, %v1710_v22  ;;  %v1857_v46 = vshll.u32 %v14923_v19, %v1851_v24  ;;  %v1860_v35 = vshll.u32 %v14921_v21, %v1851_v24  ;;  %v1863_v47 = vshll.u32 %v14919_v23, %v1851_v24 }
 0x16a   : > { %v1594_v40 = vsub.s32 0, %v12274_v60  ;;  %v1855_v0 = vshrl.u32 %v14923_v19, %v1852_v33  ;;  %v1858_v51 = vshrl.u32 %v14921_v21, %v1852_v33  ;;  %v1861_v53 = vshrl.u32 %v14919_v23, %v1852_v33 }
 0x16b   : > { %v1714_v50 = vmul.f32 %v1713_v59, %v1711_v32  ;;  %v1864_v52 = vshrl.u32 %v14928_v28, %v1852_v33  ;;  %v1866_v54 = vshll.u32 %v14928_v28, %v1851_v24  ;;  %v1867_v55 = vshrl.u32 %v14916_v31, %v1852_v33 }
 0x16c   : > { %v9843_v43 = vmin.u32 %v1594_v40, %v12274_v60  ;;  %vm1473_vm14 = vcmp.eq.s32.totalorder %v12272_v30, 2  ;;  %v12307_v39 = vsel %vm12281_vm9, 0, %v1718_v37  ;;  %v1584_v61 = vadd.s32 %v12234_v41, %v12231_v38 }
 0x16d   : > { %v1850_v1 = vshrl.u32 %v1849_v13, 5  ;;  %vm1315_vm15 = vcmp.lt.s32.totalorder %v12266_v56, 2  ;;  %vm1469_vm1 = vcmp.lt.s32.totalorder %v12272_v30, 2  ;;  %v1853_v4 = vshrl.u32 %v14926_v17, %v1852_v33 }
 0x16e   : > { %v1596_v2 = vclz %v9843_v43  ;;  %v12314_v5 = vshll.u32 %v1845_v42, 8  ;;  %v1715_v11 = vxor.u32 2147483648, %v1714_v50  ;;  %v1856_v16 = vor.u32 %v1855_v0, %v1854_v15 }
 0x16f   : > { %v11250_v45 = vpop.eup %11249  ;;  %v1859_v18 = vor.u32 %v1858_v51, %v1857_v46  ;;  %v1862_v22 = vor.u32 %v1861_v53, %v1860_v35  ;;  %v1865_v24 = vor.u32 %v1864_v52, %v1863_v47  ;;  %v1868_v25 = vor.u32 %v1867_v55, %v1866_v54 }
 0x170   : > { %v11252_v49 = vpop.eup %11251  ;;  %v1320_v58 = vxor.u32 2147483648, %v11250_v45  ;;  %v9844_v20 = vadd.s32 4294967294, %v1596_v2  ;;  %vm1313_vm2 = vweird.f32 %v12066_v63  ;;  %vm1869_vm3 = vcmp.lt.s32.totalorder %v1850_v1, 1 }
 0x171   : > { %v1317_v10 = vxor.u32 2147483648, %v11252_v49  ;;  %vm1870_vm4 = vcmp.lt.s32.totalorder %v1850_v1, 2  ;;  %vm1871_vm5 = vcmp.lt.s32.totalorder %v1850_v1, 3  ;;  %vm1872_vm6 = vcmp.lt.s32.totalorder %v1850_v1, 4 }
 0x172   : > { %v1321_v38 = vsel %vm1319_vm11, %v1320_v58, %v11252_v49  ;;  %v1475_v41 = vsel %vm1473_vm14, %v1320_v58, %v11252_v49  ;;  %vm9845_vm7 = vcmp.lt.s32.totalorder %v9844_v20, 0  ;;  %v1873_v13 = vsel %vm1869_vm3, %v1853_v4, %v1856_v16 }
 0x173   : > { %v1318_v26 = vsel %vm1316_vm12, %v11250_v45, %v1317_v10  ;;  %v1472_v27 = vsel %vm1470_vm13, %v11250_v45, %v1317_v10  ;;  %v1716_v29 = vsel %vm1633_vm10, %v1715_v11, %v1714_v50  ;;  %v1599_v32 = vsel %vm9845_vm7, 0, %v9844_v20  ;;  %v12371_v20 = vpop.f32.mrf.mxu1 }
 0x174   : > { %v1600_v59 = vsub.s32 32, %v1599_v32  ;;  %v1601_v33 = vshll.u32 %v12274_v60, %v1599_v32  ;;  %v1604_v37 = vsub.s32 4294967266, %v1599_v32  ;;  %v1874_v40 = vsel %vm1872_vm6, %v1862_v22, 2102212464  ;;  %3975 = vrot.lane.b32.xlu0 %v12371_v20, %s11413_s16 }
 0x175   : > { %v1877_v42 = vsel %vm1869_vm3, %v1856_v16, %v1859_v18  ;;  %v1878_v15 = vsel %vm1872_vm6, %v1865_v24, 920167782  ;;  %v1881_v46 = vsel %vm1869_vm3, %v1859_v18, %v1862_v22  ;;  %v1882_v35 = vsel %vm1872_vm6, %v1868_v25, 1326507024 }
 0x176   : > { %v1719_v45 = vsel %vm12281_vm9, %v12072_v8, %v1716_v29  ;;  %v1602_v47 = vshrl.u32 %v1584_v61, %v1600_v59  ;;  %v1605_v49 = vadd.s32 127, %v1604_v37  ;;  %v1879_v50 = vsel %vm1871_vm5, %v1862_v22, %v1878_v15  ;;  %v12355_v61 = vpop.f32.mrf.mxu0 }
 0x177   : > { %v1322_v60 = vsel %vm1315_vm15, %v1318_v26, %v1321_v38  ;;  %v1476_v43 = vsel %vm1469_vm1, %v1472_v27, %v1475_v41  ;;  %v1875_v0 = vsel %vm1871_vm5, %v1859_v18, %v1874_v40  ;;  %v1883_v51 = vsel %vm1871_vm5, %v1865_v24, %v1882_v35 }
 0x178   : > { %v1603_v53 = vor.u32 %v1602_v47, %v1601_v33  ;;  %v1606_v52 = vshll.u32 %v1605_v49, 23  ;;  %v1880_v54 = vsel %vm1870_vm4, %v1877_v42, %v1879_v50  ;;  %v1884_v36 = vsel %vm1870_vm4, %v1881_v46, %v1883_v51  ;;  %4627 = vrot.lane.b32.xlu0 %v12371_v20, %s11412_s0 }
 0x179   : > { %11253 = vcosq.f32 %v1719_v45  ;;  %v1614_v56 = vsub.s32 4, %v12262_v14  ;;  %v12352_v30 = vmul.u32.u64.low %v12314_v5, %v1884_v36  ;;  %v12353_v55 = vmul.u32.u64.high %v12314_v5, %v1884_v36, %v12352_v30 }
 0x17a   : > { %v12359_v58 = vsel %vm1313_vm2, nan, %v1322_v60  ;;  %v12363_v2 = vsel %vm1313_vm2, nan, %v1476_v43  ;;  %11255 = vsinq.f32 %v1719_v45  ;;  %v1607_v4 = vor.u32 4788187, %v1606_v52 }
 0x17b   : > { %v1610_v10 = vcvt.s32.f32 %v1603_v53  ;;  %v1876_v11 = vsel %vm1870_vm4, %v1873_v13, %v1875_v0  ;;  %v12367_v16 = vmul.u32.u64.low %v12314_v5, %v1880_v54  ;;  %v12368_v18 = vmul.u32.u64.high %v12314_v5, %v1880_v54, %v12367_v16 }
 0x17c   : > { %v1608_v22 = vand.u32 2147483647, %v1607_v4  ;;  %v1737_v24 = vand.u32 2139095040, %v12355_v61  ;;  %v1332_v63 = vrot.slane %v12359_v58, %v12277_v34  ;;  %v1486_v1 = vrot.slane %v12363_v2, %v12277_v34  ;;  %5267 = vrot.lane.b32.xlu0 %v12371_v20, %s11419_s14 }
 0x17d   : > { %v2549_v25 = vadd.s32 3, %v12307_v39  ;;  %vm1530_vm8 = vcmp.lt.s32.totalorder %v12129_v57, 0  ;;  %v1892_v41 = vmul.u32 %v12314_v5, %v1876_v11  ;;  %vm1894_vm9 = vc.u32 %v12353_v55, %v12367_v16 }
 0x17e   : > { %v1615_v38 = vsel %vm1530_vm8, %v1614_v56, %v12262_v14  ;;  %v1738_v13 = vshrl.u32 %v1737_v24, 23  ;;  %v1611_v26 = vmul.f32 %v1610_v10, %v1608_v22  ;;  %v1895_v27 = vadd.s32 1, %v12368_v18 }
 0x17f   : > { %v12392_v29 = vand.u32 3, %v12307_v39  ;;  %vm12396_vm10 = vcmp.le.f32.partialorder %v1528_v6, 0.7853982  ;;  %v1340_v14 = vcombine.high %v1332_v63, %v1332_v63  ;;  %v1494_v5 = vcombine.high %v1486_v1, %v1486_v1 }
 0x180   : > { %v9850_v59 = vadd.s32 4294967169, %v1738_v13  ;;  %v1617_v33 = vsel %vm12396_vm10, 0, %v1615_v38  ;;  %v1896_v39 = vsel %vm1894_vm9, %v1895_v27, %v12368_v18  ;;  %v12407_v37 = vand.u32 3, %v2549_v25  ;;  %5907 = vrot.lane.b32.xlu0 %v12371_v20, %s11421_s23 }
 0x181   : > { %v1897_v6 = vadd.s32 %v1896_v39, %v1892_v41  ;;  %v12410_v42 = vsub.s32 0, %v12264_v7  ;;  %v1612_v15 = vxor.u32 2147483648, %v1611_v26  ;;  %vm1729_vm11 = vcmp.eq.s32.totalorder %v12392_v29, 2 }
 0x182   : > { %v1744_v40 = vadd.s32 1, %v9850_v59  ;;  %v12414_v46 = vrot.slane %v1332_v63, %v12277_v34  ;;  %v2445_v35 = vadd.s32 3, %v1617_v33  ;;  %v12421_v47 = vrot.slane %v1340_v14, %v12277_v34 }
 0x183   : > { %v1898_v45 = vadd.s32 536870912, %v1897_v6  ;;  %v12424_v7 = vrot.slane %v1494_v5, %v12277_v34  ;;  %vm1726_vm13 = vcmp.eq.s32.totalorder %v12392_v29, 0  ;;  %v12428_v49 = vrot.slane %v1486_v1, %v12277_v34 }
 0x184   : > { %vm1745_vm12 = vcmp.gt.s32.totalorder %v1744_v40, 0  ;;  %vm2552_vm14 = vcmp.eq.s32.totalorder %v12407_v37, 0  ;;  %vm2555_vm15 = vcmp.eq.s32.totalorder %v12407_v37, 2  ;;  %v1734_v0 = vand.u32 2147483647, %v12355_v61  ;;  %6547 = vrot.lane.b32.xlu0 %v12371_v20, %s11422_s21 }
 0x185   : > { %v1746_v50 = vsel %vm1745_vm12, %v1744_v40, 0  ;;  %v12432_v43 = vshrl.u32 %v1898_v45, 30  ;;  %v1325_v52 = vcombine.high %v12359_v58, %v12359_v58  ;;  %v1479_v54 = vcombine.high %v12363_v2, %v12363_v2 }
 0x186   : > { %v11254_v60 = vpop.eup %11253  ;;  %v1748_v51 = vand.u32 31, %v1746_v50  ;;  %v1613_v36 = vsel %vm1530_vm8, %v1612_v15, %v1611_v26  ;;  %v12441_v56 = vand.u32 3, %v1617_v33  ;;  %vm1725_vm1 = vcmp.lt.s32.totalorder %v12392_v29, 2 }
 0x187   : > { %v11256_v53 = vpop.eup %11255  ;;  %v12444_v30 = vand.u32 3, %v2445_v35  ;;  %v1900_v10 = vshll.u32 %v12432_v43, 30  ;;  %v1730_v18 = vxor.u32 2147483648, %v11254_v60  ;;  %vm2551_vm2 = vcmp.lt.s32.totalorder %v12407_v37, 2 }
 0x188   : > { %v1749_v11 = vsub.s32 32, %v1748_v51  ;;  %v3191_v22 = vrot.slane %v12421_v47, %v12410_v42  ;;  %v3239_v24 = vrot.slane %v12424_v7, %v12410_v42  ;;  %v1727_v1 = vxor.u32 2147483648, %v11256_v53  ;;  %7187 = vrot.lane.b32.xlu0 %v12371_v20, %s11424_s25 }
 0x189   : > { %v1616_v25 = vsel %vm12396_vm10, %v12129_v57, %v1613_v36  ;;  %v12463_v38 = vsub.s32 %v1897_v6, %v1900_v10  ;;  %v12465_v41 = vshrl.u32 %v1746_v50, 5  ;;  %v1751_v13 = vshll.u32 %v14926_v17, %v1748_v51 }
 0x18a   : > { %v1760_v26 = vshll.u32 %v14919_v23, %v1748_v51  ;;  %v1761_v27 = vshrl.u32 %v14928_v28, %v1749_v11  ;;  %v1763_v59 = vshll.u32 %v14928_v28, %v1748_v51  ;;  %v1752_v5 = vshrl.u32 %v14923_v19, %v1749_v11 }
 0x18b   : > { %v1903_v14 = vsub.s32 0, %v12463_v38  ;;  %v1754_v33 = vshll.u32 %v14923_v19, %v1748_v51  ;;  %v1755_v32 = vshrl.u32 %v14921_v21, %v1749_v11  ;;  %vm1723_vm3 = vweird.f32 %v12072_v8 }
 0x18c   : > { %v1731_v39 = vsel %vm1729_vm11, %v1730_v18, %v11256_v53  ;;  %v1757_v6 = vshll.u32 %v14921_v21, %v1748_v51  ;;  %v1758_v40 = vshrl.u32 %v14919_v23, %v1749_v11  ;;  %v1764_v15 = vshrl.u32 %v14916_v31, %v1749_v11 }
 0x18d   : > { %v1728_v35 = vsel %vm1726_vm13, %v11254_v60, %v1727_v1  ;;  %v2557_v45 = vsel %vm2555_vm15, %v1730_v18, %v11256_v53  ;;  %v9855_v50 = vmin.u32 %v1903_v14, %v12463_v38  ;;  %v1741_v36 = vand.u32 8388607, %v1734_v0 }
 0x18e   : > { %v2554_v10 = vsel %vm2552_vm14, %v11254_v60, %v1727_v1  ;;  %11257 = vcosq.f32 %v1616_v25  ;;  %v1762_v51 = vor.u32 %v1761_v27, %v1760_v26  ;;  %v1765_v48 = vor.u32 %v1764_v15, %v1763_v59  ;;  %v12512_v59 = vpop.f32.mrf.mxu1 }
 0x18f   : > { %v1905_v63 = vclz %v9855_v50  ;;  %v1753_v4 = vor.u32 %v1752_v5, %v1751_v13  ;;  %v1756_v31 = vor.u32 %v1755_v32, %v1754_v33  ;;  %vm1769_vm4 = vcmp.lt.s32.totalorder %v12465_v41, 4  ;;  %14960 = vst [vmem:[#allocation7_spill] sm:$0xff] %v12512_v59  ;;  %4059 = vrot.lane.b32.xlu1 %v12512_v59, %s11413_s16 }
 0x190   : > { %v1732_v53 = vsel %vm1725_vm1, %v1728_v35, %v1731_v39  ;;  %11259 = vsinq.f32 %v1616_v25  ;;  %v1759_v18 = vor.u32 %v1758_v40, %v1757_v6  ;;  %vm1766_vm5 = vcmp.lt.s32.totalorder %v12465_v41, 1  ;;  %v12530_v39 = vpop.f32.mrf.mxu0 }
 0x191   : > { %v2558_v60 = vsel %vm2551_vm2, %v2554_v10, %v2557_v45  ;;  %v9856_v1 = vadd.s32 4294967294, %v1905_v63  ;;  %v1742_v13 = vor.u32 8388608, %v1741_v36  ;;  %vm1768_vm6 = vcmp.lt.s32.totalorder %v12465_v41, 3  ;;  %v12539_v45 = vpop.f32.mrf.mxu1 }
 0x192   : > { %v1893_v26 = vadd.s32 %v12367_v16, %v12353_v55  ;;  %v1750_v27 = vshrl.u32 %v14926_v17, %v1749_v11  ;;  %v1775_v29 = vsel %vm1769_vm4, %v1762_v51, 920167782  ;;  %v1779_v25 = vsel %vm1769_vm4, %v1765_v48, 1326507024  ;;  %14961 = vst [vmem:[#allocation8_spill] sm:$0xff] %v12539_v45 }
 0x193   : > { %vm9857_vm7 = vcmp.lt.s32.totalorder %v9856_v1, 0  ;;  %vm1767_vm8 = vcmp.lt.s32.totalorder %v12465_v41, 2  ;;  %v1771_v37 = vsel %vm1769_vm4, %v1759_v18, 2102212464  ;;  %v1774_v63 = vsel %vm1766_vm5, %v1753_v4, %v1756_v31  ;;  %4709 = vrot.lane.b32.xlu1 %v12512_v59, %s11412_s0 }
 0x194   : > { %v1908_v55 = vsel %vm9857_vm7, 0, %v9856_v1  ;;  %v1776_v16 = vsel %vm1768_vm6, %v1759_v18, %v1775_v29  ;;  %v1778_v48 = vsel %vm1766_vm5, %v1756_v31, %v1759_v18  ;;  %v1780_v11 = vsel %vm1768_vm6, %v1762_v51, %v1779_v25 }
 0x195   : > { %v1733_v14 = vsel %vm1723_vm3, nan, %v1732_v53  ;;  %v1909_v5 = vsub.s32 32, %v1908_v55  ;;  %v1910_v33 = vshll.u32 %v12463_v38, %v1908_v55  ;;  %v1782_v32 = vshll.u32 %v1742_v13, 8 }
 0x196   : > { %v2559_v6 = vsel %vm1723_vm3, nan, %v2558_v60  ;;  %v1372_v40 = vcombine.high %v12421_v47, %v12421_v47  ;;  %vm1839_vm9 = vcmp.lt.s32.totalorder %v12211_v62, 0  ;;  %v1913_v15 = vsub.s32 4294967266, %v1908_v55 }
 0x197   : > { %v1770_v35 = vsel %vm1766_vm5, %v1750_v27, %v1753_v4  ;;  %v1911_v50 = vshrl.u32 %v1893_v26, %v1909_v5  ;;  %v1772_v38 = vsel %vm1768_vm6, %v1756_v31, %v1771_v37  ;;  %v1777_v36 = vsel %vm1767_vm8, %v1774_v63, %v1776_v16  ;;  %v12555_v31 = vpop.f32.mrf.mxu1  ;;  %5349 = vrot.lane.b32.xlu1 %v12512_v59, %s11419_s14 }
 0x198   : > { %v1781_v8 = vsel %vm1767_vm8, %v1778_v48, %v1780_v11  ;;  %v3225_v10 = vmul.f32 %v3191_v22, %v1733_v14  ;;  %v1526_v4 = vcombine.high %v12424_v7, %v12424_v7  ;;  %v1914_v51 = vadd.s32 127, %v1913_v15  ;;  %14962 = vst [vmem:[#allocation9_spill] sm:$0xff] %v12555_v31  ;;  %4141 = vrot.lane.b32.xlu0 %v12555_v31, %s11413_s16 }
 0x199   : > { %v2046_v53 = vand.u32 2139095040, %v12530_v39  ;;  %v3273_v18 = vmul.f32 %v3239_v24, %v2559_v6  ;;  %v1912_v60 = vor.u32 %v1911_v50, %v1910_v33  ;;  %vm12567_vm10 = vcmp.le.f32.partialorder %v1837_v3, 0.7853982 }
 0x19a   : > { %v12560_v1 = vmul.u32.u64.low %v1782_v32, %v1781_v8  ;;  %v12561_v13 = vmul.u32.u64.high %v1782_v32, %v1781_v8, %v12560_v1  ;;  %v1915_v22 = vshll.u32 %v1914_v51, 23  ;;  %v1773_v26 = vsel %vm1767_vm8, %v1770_v35, %v1772_v38 }
 0x19b   : > { %v12573_v27 = vmul.u32.u64.low %v1782_v32, %v1777_v36  ;;  %v12574_v7 = vmul.u32.u64.high %v1782_v32, %v1777_v36, %v12573_v27  ;;  %v11258_v24 = vpop.eup %11257  ;;  %vm1623_vm11 = vcmp.eq.s32.totalorder %v12441_v56, 0  ;;  %vm1626_vm12 = vcmp.eq.s32.totalorder %v12441_v56, 2  ;;  %5989 = vrot.lane.b32.xlu1 %v12512_v59, %s11421_s23 }
 0x19c   : > { %vm2451_vm13 = vcmp.eq.s32.totalorder %v12444_v30, 2  ;;  %v1923_v3 = vsub.s32 4, %v12432_v43  ;;  %v12582_v29 = vrot.slane %v1372_v40, %v12410_v42  ;;  %v12588_v41 = vrot.slane %v1325_v52, %v12277_v34  ;;  %4789 = vrot.lane.b32.xlu0 %v12555_v31, %s11412_s0 }
 0x19d   : > { %v2047_v25 = vshrl.u32 %v2046_v53, 23  ;;  %vm2448_vm14 = vcmp.eq.s32.totalorder %v12444_v30, 0  ;;  %v1916_v37 = vor.u32 4788187, %v1915_v22  ;;  %v1919_v63 = vcvt.s32.f32 %v1912_v60  ;;  %v11260_v48 = vpop.eup %11259 }
 0x19e   : > { %v12594_v55 = vrot.slane %v1526_v4, %v12410_v42  ;;  %v1370_v16 = vcombine.high %v12414_v46, %v12414_v46  ;;  %v1789_v11 = vmul.u32 %v1782_v32, %v1773_v26  ;;  %vm1791_vm15 = vc.u32 %v12561_v13, %v12573_v27  ;;  %v12641_v26 = vpop.f32.mrf.mxu0 }
 0x19f   : > { %v14918_v58 = vand.u32 2147483647, %v12530_v39  ;;  %v9862_v52 = vadd.s32 4294967169, %v2047_v25  ;;  %v3281_v14 = vadd.f32 %v3273_v18, %v3225_v10  ;;  %v1917_v5 = vand.u32 2147483647, %v1916_v37  ;;  %6629 = vrot.lane.b32.xlu1 %v12512_v59, %s11422_s21 }
 0x1a0   : > { %v1792_v33 = vadd.s32 1, %v12574_v7  ;;  %v12608_v6 = vrot.slane %v1479_v54, %v12277_v34  ;;  %v1924_v32 = vsel %vm1839_vm9, %v1923_v3, %v12432_v43  ;;  %v1341_v15 = vcombine.high %v12588_v41, %v12588_v41  ;;  %5429 = vrot.lane.b32.xlu0 %v12555_v31, %s11419_s14 }
 0x1a1   : > { %v2053_v35 = vadd.s32 1, %v9862_v52  ;;  %v1624_v50 = vxor.u32 2147483648, %v11260_v48  ;;  %v1627_v38 = vxor.u32 2147483648, %v11258_v24  ;;  %v1920_v36 = vmul.f32 %v1919_v63, %v1917_v5 }
 0x1a2   : > { %v1793_v2 = vsel %vm1791_vm15, %v1792_v33, %v12574_v7  ;;  %v12624_v43 = vrot.slane %v1370_v16, %v12410_v42  ;;  %v2050_v8 = vand.u32 8388607, %v14918_v58  ;;  %v12630_v10 = vmul.f32 1.442695, %v3281_v14 }
 0x1a3   : > { %v1794_v54 = vadd.s32 %v1793_v2, %v1789_v11  ;;  %vm2054_vm1 = vcmp.gt.s32.totalorder %v2053_v35, 0  ;;  %v1921_v4 = vxor.u32 2147483648, %v1920_v36  ;;  %v1495_v51 = vcombine.high %v12608_v6, %v12608_v6  ;;  %7269 = vrot.lane.b32.xlu1 %v12512_v59, %s11424_s25 }
 0x1a4   : > { %v2055_v53 = vsel %vm2054_vm1, %v2053_v35, 0  ;;  %vm1622_vm2 = vcmp.lt.s32.totalorder %v12441_v56, 2  ;;  %vm2447_vm3 = vcmp.lt.s32.totalorder %v12444_v30, 2  ;;  %v1926_v18 = vsel %vm12567_vm10, 0, %v1924_v32  ;;  %6069 = vrot.lane.b32.xlu0 %v12555_v31, %s11421_s23 }
 0x1a5   : > { %v1795_v60 = vadd.s32 536870912, %v1794_v54  ;;  %v12639_v1 = vrot.slane %v1341_v15, %v12277_v34  ;;  %v2057_v22 = vand.u32 31, %v2055_v53  ;;  %v1625_v7 = vsel %vm1623_vm11, %v11258_v24, %v1624_v50 }
 0x1a6   : > { %v1628_v3 = vsel %vm1626_vm12, %v1627_v38, %v11260_v48  ;;  %v2453_v25 = vsel %vm2451_vm13, %v1627_v38, %v11260_v48  ;;  %v1922_v37 = vsel %vm1839_vm9, %v1921_v4, %v1920_v36  ;;  %v2450_v63 = vsel %vm2448_vm14, %v11258_v24, %v1624_v50 }
 0x1a7   : > { %v12655_v16 = vshrl.u32 %v1795_v60, 30  ;;  %v2051_v11 = vor.u32 8388608, %v2050_v8  ;;  %v2058_v52 = vsub.s32 32, %v2057_v22  ;;  %v1925_v14 = vsel %vm12567_vm10, %v12211_v62, %v1922_v37  ;;  %4057 = vrot.lane.b32.xlu1 %v12539_v45, %s11413_s16 }
 0x1a8   : > { %v12662_v5 = vshrl.u32 %v2055_v53, 5  ;;  %v2060_v48 = vshll.u32 %v14926_v17, %v2057_v22  ;;  %v1943_v33 = vand.u32 2139095040, %v12641_v26  ;;  %vm1620_vm4 = vweird.f32 %v12129_v57  ;;  %6709 = vrot.lane.b32.xlu0 %v12555_v31, %s11422_s21 }
 0x1a9   : > { %v1797_v24 = vshll.u32 %v12655_v16, 30  ;;  %v2063_v32 = vshll.u32 %v14923_v19, %v2057_v22  ;;  %v2066_v15 = vshll.u32 %v14921_v21, %v2057_v22  ;;  %v2069_v35 = vshll.u32 %v14919_v23, %v2057_v22 }
 0x1aa   : > { %v2061_v47 = vshrl.u32 %v14923_v19, %v2058_v52  ;;  %v2064_v50 = vshrl.u32 %v14921_v21, %v2058_v52  ;;  %v2067_v38 = vshrl.u32 %v14919_v23, %v2058_v52  ;;  %v2070_v36 = vshrl.u32 %v14928_v28, %v2058_v52 }
 0x1ab   : > { %11261 = vcosq.f32 %v1925_v14  ;;  %v12677_v2 = vsub.s32 %v1794_v54, %v1797_v24  ;;  %v2072_v8 = vshll.u32 %v14928_v28, %v2057_v22  ;;  %v14965_v4 = vmov 1326507024   ;;  %4707 = vrot.lane.b32.xlu1 %v12539_v45, %s11412_s0 }
 0x1ac   : > { %v2073_v53 = vshrl.u32 %v14965_v4, %v2058_v52  ;;  %11263 = vsinq.f32 %v1925_v14  ;;  %v12683_v60 = vand.u32 3, %v1926_v18  ;;  %v2757_v37 = vadd.s32 3, %v1926_v18  ;;  %v12693_v14 = vpop.f32.mrf.mxu1 }
 0x1ad   : > { %v1944_v40 = vshrl.u32 %v1943_v33, 23  ;;  %v1800_v58 = vsub.s32 0, %v12677_v2  ;;  %v2062_v23 = vor.u32 %v2061_v47, %v2060_v48  ;;  %v2065_v21 = vor.u32 %v2064_v50, %v2063_v32  ;;  %14966 = vst [vmem:[#allocation10_spill] sm:$0xff] %v12693_v14  ;;  %4139 = vrot.lane.b32.xlu0 %v12693_v14, %s11413_s16 }
 0x1ae   : > { %v2071_v19 = vor.u32 %v2070_v36, %v2069_v35  ;;  %v1629_v54 = vsel %vm1622_vm2, %v1625_v7, %v1628_v3  ;;  %v2454_v22 = vsel %vm2447_vm3, %v2450_v63, %v2453_v25  ;;  %v2068_v24 = vor.u32 %v2067_v38, %v2066_v15 }
 0x1af   : > { %vm2075_vm5 = vcmp.lt.s32.totalorder %v12662_v5, 1  ;;  %v9851_v18 = vmin.u32 %v1800_v58, %v12677_v2  ;;  %v2059_v48 = vshrl.u32 %v14926_v17, %v2058_v52  ;;  %v2074_v33 = vor.u32 %v2073_v53, %v2072_v8  ;;  %5347 = vrot.lane.b32.xlu1 %v12539_v45, %s11419_s14 }
 0x1b0   : > { %v12697_v32 = vshll.u32 %v2051_v11, 8  ;;  %vm2076_vm6 = vcmp.lt.s32.totalorder %v12662_v5, 2  ;;  %vm2077_vm7 = vcmp.lt.s32.totalorder %v12662_v5, 3  ;;  %vm2078_vm8 = vcmp.lt.s32.totalorder %v12662_v5, 4 }
 0x1b1   : > { %v9858_v56 = vadd.s32 4294967169, %v1944_v40  ;;  %vm1736_vm9 = vcmp.lt.s32.totalorder %v12355_v61, 0  ;;  %v1802_v30 = vclz %v9851_v18  ;;  %v2080_v7 = vsel %vm2078_vm8, %v2068_v24, 2102212464  ;;  %4787 = vrot.lane.b32.xlu0 %v12693_v14, %s11412_s0 }
 0x1b2   : > { %v2083_v58 = vsel %vm2075_vm5, %v2062_v23, %v2065_v21  ;;  %v2084_v3 = vsel %vm2078_vm8, %v2071_v19, 920167782  ;;  %v1630_v25 = vsel %vm1620_vm4, nan, %v1629_v54  ;;  %v1790_v63 = vadd.s32 %v12573_v27, %v12561_v13 }
 0x1b3   : > { %v2087_v40 = vsel %vm2075_vm5, %v2065_v21, %v2068_v24  ;;  %v14925_v11 = vand.u32 2147483647, %v12641_v26  ;;  %v9852_v52 = vadd.s32 4294967294, %v1802_v30  ;;  %v2079_v15 = vsel %vm2075_vm5, %v2059_v48, %v2062_v23  ;;  %5987 = vrot.lane.b32.xlu1 %v12539_v45, %s11421_s23 }
 0x1b4   : > { %v2085_v35 = vsel %vm2077_vm7, %v2068_v24, %v2084_v3  ;;  %v2088_v47 = vsel %vm2078_vm8, %v2074_v33, 1326507024  ;;  %v2081_v50 = vsel %vm2077_vm7, %v2065_v21, %v2080_v7  ;;  %v1950_v38 = vadd.s32 1, %v9858_v56 }
 0x1b5   : > { %v2086_v13 = vsel %vm2076_vm6, %v2083_v58, %v2085_v35  ;;  %v2089_v27 = vsel %vm2077_vm7, %v2071_v19, %v2088_v47  ;;  %vm9853_vm10 = vcmp.lt.s32.totalorder %v9852_v52, 0  ;;  %vm12739_vm11 = vcmp.le.f32.partialorder %v1734_v0, 0.7853982  ;;  %5427 = vrot.lane.b32.xlu0 %v12693_v14, %s11419_s14 }
 0x1b6   : > { %v2090_v23 = vsel %vm2076_vm6, %v2087_v40, %v2089_v27  ;;  %v12731_v36 = vmul.u32.u64.low %v12697_v32, %v2086_v13  ;;  %v12732_v8 = vmul.u32.u64.high %v12697_v32, %v2086_v13, %v12731_v36  ;;  %v1805_v19 = vsel %vm9853_vm10, 0, %v9852_v52 }
 0x1b7   : > { %v1820_v53 = vsub.s32 4, %v12655_v16  ;;  %v12745_v54 = vmul.u32.u64.low %v12697_v32, %v2090_v23  ;;  %v12746_v24 = vmul.u32.u64.high %v12697_v32, %v2090_v23, %v12745_v54  ;;  %v2455_v18 = vsel %vm1620_vm4, nan, %v2454_v22  ;;  %6627 = vrot.lane.b32.xlu1 %v12539_v45, %s11422_s21 }
 0x1b8   : > { %v1806_v48 = vsub.s32 32, %v1805_v19  ;;  %v1807_v33 = vshll.u32 %v12677_v2, %v1805_v19  ;;  %v1810_v56 = vsub.s32 4294967266, %v1805_v19  ;;  %v12753_v0 = vpop.eup %11261  ;;  %vm1932_vm12 = vcmp.eq.s32.totalorder %v12683_v60, 0  ;;  %v12800_v19 = vpop.f32.mrf.mxu1 }
 0x1b9   : > { %vm1935_vm13 = vcmp.eq.s32.totalorder %v12683_v60, 2  ;;  %v12761_v30 = vrot.slane %v1495_v51, %v12277_v34  ;;  %v2082_v57 = vsel %vm2076_vm6, %v2079_v15, %v2081_v50  ;;  %v11264_v2 = vpop.eup %11263  ;;  %v12765_v22 = vand.u32 3, %v2757_v37  ;;  %6067 = vrot.lane.b32.xlu0 %v12693_v14, %s11421_s23 }
 0x1ba   : > { %v1808_v7 = vshrl.u32 %v1790_v63, %v1806_v48  ;;  %v1811_v58 = vadd.s32 127, %v1810_v56  ;;  %vm1951_vm14 = vcmp.gt.s32.totalorder %v1950_v38, 0  ;;  %v14969_v3 = vrot.slane %v12414_v46, %v12410_v42 }
 0x1bb   : > { %v14970_v51 = vrot.slane %v12428_v49, %v12410_v42  ;;  %vm1931_vm15 = vcmp.lt.s32.totalorder %v12683_v60, 2  ;;  %v1821_v5 = vsel %vm1736_vm9, %v1820_v53, %v12655_v16  ;;  %v12781_v37 = vand.u32 8388607, %v14925_v11  ;;  %4223 = vrot.lane.b32.xlu1 %v12800_v19, %s11413_s16 }
 0x1bc   : > { %v3224_v40 = vmul.f32 %v14969_v3, %v1630_v25  ;;  %v1809_v63 = vor.u32 %v1808_v7, %v1807_v33  ;;  %v1812_v15 = vshll.u32 %v1811_v58, 23  ;;  %v2098_v35 = vmul.u32 %v12697_v32, %v2082_v57  ;;  %v12813_v58 = vpop.f32.mrf.mxu1 }
 0x1bd   : > { %v3272_v52 = vmul.f32 %v14970_v51, %v2455_v18  ;;  %vm2100_vm1 = vc.u32 %v12746_v24, %v12731_v36  ;;  %v1933_v46 = vxor.u32 2147483648, %v11264_v2  ;;  %v1936_v25 = vxor.u32 2147483648, %v12753_v0  ;;  %6707 = vrot.lane.b32.xlu0 %v12693_v14, %s11422_s21 }
 0x1be   : > { %v2101_v47 = vadd.s32 1, %v12732_v8  ;;  %v1952_v16 = vsel %vm1951_vm14, %v1950_v38, 0  ;;  %vm2759_vm2 = vcmp.lt.s32.totalorder %v12765_v22, 2  ;;  %vm2760_vm3 = vcmp.eq.s32.totalorder %v12765_v22, 0 }
 0x1bf   : > { %v1813_v50 = vor.u32 4788187, %v1812_v15  ;;  %v1816_v13 = vcvt.s32.f32 %v1809_v63  ;;  %v1954_v27 = vand.u32 31, %v1952_v16  ;;  %v12794_v32 = vadd.f32 %v3272_v52, %v3224_v40  ;;  %4869 = vrot.lane.b32.xlu1 %v12800_v19, %s11412_s0 }
 0x1c0   : > { %vm1929_vm4 = vweird.f32 %v12211_v62  ;;  %vm2763_vm5 = vcmp.eq.s32.totalorder %v12765_v22, 2  ;;  %v2102_v23 = vsel %vm2100_vm1, %v2101_v47, %v12732_v8  ;;  %v1948_v38 = vor.u32 8388608, %v12781_v37 }
 0x1c1   : > { %v1814_v53 = vand.u32 2147483647, %v1813_v50  ;;  %v1823_v54 = vsel %vm12739_vm11, 0, %v1821_v5  ;;  %v2103_v18 = vadd.s32 %v2102_v23, %v2098_v35  ;;  %v1955_v48 = vsub.s32 32, %v1954_v27  ;;  %v12823_v50 = vpop.f32.mrf.mxu1 }
 0x1c2   : > { %v1934_v33 = vsel %vm1932_vm12, %v12753_v0, %v1933_v46  ;;  %v1937_v8 = vsel %vm1935_vm13, %v1936_v25, %v11264_v2  ;;  %v1957_v56 = vshll.u32 %v14926_v17, %v1954_v27  ;;  %v14971_v57 = vmov 2475754826   ;;  %10581 = vmatpush3.msra.mxu1 %v12823_v50  ;;  %4305 = vrot.lane.b32.xlu0 %v12823_v50, %s11413_s16 }
 0x1c3   : > { %v1960_v7 = vshll.u32 %v14971_v57, %v1954_v27  ;;  %v1817_v3 = vmul.f32 %v1816_v13, %v1814_v53  ;;  %v2104_v40 = vadd.s32 536870912, %v2103_v18  ;;  %v1958_v51 = vshrl.u32 %v14971_v57, %v1955_v48  ;;  %5509 = vrot.lane.b32.xlu1 %v12800_v19, %s11419_s14 }
 0x1c4   : > { %v14972_v52 = vmov 2131351028   ;;  %v14973_v63 = vmov 2102212464   ;;  %v1967_v47 = vshrl.u32 %v14928_v28, %v1955_v48  ;;  %v12825_v13 = vand.u32 3, %v1823_v54 }
 0x1c5   : > { %v1963_v5 = vshll.u32 %v14972_v52, %v1954_v27  ;;  %v1961_v37 = vshrl.u32 %v14972_v52, %v1955_v48  ;;  %v1964_v15 = vshrl.u32 %v14973_v63, %v1955_v48  ;;  %v1966_v35 = vshll.u32 %v14973_v63, %v1954_v27 }
 0x1c6   : > { %v1818_v23 = vxor.u32 2147483648, %v1817_v3  ;;  %v12827_v53 = vshrl.u32 %v2104_v40, 30  ;;  %v12829_v11 = vshrl.u32 %v1952_v16, 5  ;;  %v2762_v17 = vsel %vm2760_vm3, %v12753_v0, %v1933_v46  ;;  %v12841_v40 = vpop.f32.mrf.mxu1  ;;  %4949 = vrot.lane.b32.xlu0 %v12823_v50, %s11412_s0 }
 0x1c7   : > { %v2765_v28 = vsel %vm2763_vm5, %v1936_v25, %v11264_v2  ;;  %v14974_v12 = vmov 920167782   ;;  %v1970_v14 = vshrl.u32 %v14965_v4, %v1955_v48  ;;  %v14975_v16 = vmov 0.0   ;;  %6149 = vrot.lane.b32.xlu1 %v12800_v19, %s11421_s23 }
 0x1c8   : > { %v1969_v9 = vshll.u32 %v14974_v12, %v1954_v27  ;;  %10582 = vmatprep.subr.mxu1 %v14975_v16  ;;  %v1938_v31 = vsel %vm1931_vm15, %v1934_v33, %v1937_v8  ;;  %v1819_v45 = vsel %vm1736_vm9, %v1818_v23, %v1817_v3  ;;  %v2106_v59 = vshll.u32 %v12827_v53, 30 }
 0x1c9   : > { %v1959_v0 = vor.u32 %v1958_v51, %v1957_v56  ;;  %10583 = vmatpush3.msra.mxu1 %v12841_v40  ;;  %v1822_v2 = vsel %vm12739_vm11, %v12355_v61, %v1819_v45  ;;  %v1962_v46 = vor.u32 %v1961_v37, %v1960_v7  ;;  %v1965_v25 = vor.u32 %v1964_v15, %v1963_v5  ;;  %v12902_v15 = vpop.f32.mrf.mxu0 }
 0x1ca   : > { %v1968_v27 = vor.u32 %v1967_v47, %v1966_v35  ;;  %10594 = vmatprep.subr.mxu1 %v14975_v16  ;;  %11265 = vcosq.f32 %v1822_v2  ;;  %v12856_v60 = vsub.s32 %v2103_v18, %v2106_v59  ;;  %vm1972_vm6 = vcmp.lt.s32.totalorder %v12829_v11, 1  ;;  %5589 = vrot.lane.b32.xlu0 %v12823_v50, %s11419_s14 }
 0x1cb   : > { %vm1975_vm7 = vcmp.lt.s32.totalorder %v12829_v11, 4  ;;  %v2766_v33 = vsel %vm2759_vm2, %v2762_v17, %v2765_v28  ;;  %11267 = vsinq.f32 %v1822_v2  ;;  %v2653_v45 = vadd.s32 3, %v1823_v54  ;;  %6789 = vrot.lane.b32.xlu1 %v12800_v19, %s11422_s21 }
 0x1cc   : > { %v1971_v21 = vor.u32 %v1970_v14, %v1969_v9  ;;  %v1939_v8 = vsel %vm1929_vm4, nan, %v1938_v31  ;;  %v2109_v56 = vsub.s32 0, %v12856_v60  ;;  %vm1974_vm8 = vcmp.lt.s32.totalorder %v12829_v11, 3 }
 0x1cd   : > { %v12868_v59 = vshll.u32 %v1948_v38, 8  ;;  %vm2045_vm9 = vcmp.lt.s32.totalorder %v12530_v39, 0  ;;  %v14976_v18 = vmov 683565275   ;;  %vm1973_vm10 = vcmp.lt.s32.totalorder %v12829_v11, 2  ;;  %v12951_v11 = vpop.permute.xlu1 %4549 }
 0x1ce   : > { %v1956_v22 = vshrl.u32 %v14976_v18, %v1955_v48  ;;  %v1980_v9 = vsel %vm1972_vm6, %v1959_v0, %v1962_v46  ;;  %v1981_v17 = vsel %vm1975_vm7, %v1968_v27, 920167782  ;;  %v2767_v28 = vsel %vm1929_vm4, nan, %v2766_v33  ;;  %6229 = vrot.lane.b32.xlu0 %v12823_v50, %s11421_s23 }
 0x1cf   : > { %v9863_v31 = vmin.u32 %v2109_v56, %v12856_v60  ;;  %v1977_v14 = vsel %vm1975_vm7, %v1965_v25, 2102212464  ;;  %v1984_v38 = vsel %vm1972_vm6, %v1962_v46, %v1965_v25  ;;  %v12889_v54 = vmul.f32 1.442695, %v12794_v32  ;;  %v12942_v56 = vpop.permute.xlu0 %3895  ;;  %4221 = vrot.lane.b32.xlu1 %v12813_v58, %s11413_s16 }
 0x1d0   : > { %v12891_v48 = vand.u32 3, %v2653_v45  ;;  %v1982_v62 = vsel %vm1974_vm8, %v1965_v25, %v1981_v17  ;;  %v1985_v7 = vsel %vm1975_vm7, %v1971_v21, 1326507024  ;;  %v3227_v3 = vmul.f32 %v12582_v29, %v1939_v8 }
 0x1d1   : > { %v2111_v51 = vclz %v9863_v31  ;;  %v1983_v5 = vsel %vm1973_vm10, %v1980_v9, %v1982_v62  ;;  %v1986_v37 = vsel %vm1974_vm8, %v1968_v27, %v1985_v7  ;;  %v3275_v32 = vmul.f32 %v12594_v55, %v2767_v28 }
 0x1d2   : > { %vm1829_vm11 = vcmp.eq.s32.totalorder %v12825_v13, 0  ;;  %v14977_v35 = vand.u32 2147483647, %v12530_v39  ;;  %v1976_v47 = vsel %vm1972_vm6, %v1956_v22, %v1959_v0  ;;  %v1978_v23 = vsel %vm1974_vm8, %v1962_v46, %v1977_v14  ;;  %6869 = vrot.lane.b32.xlu0 %v12823_v50, %s11422_s21 }
 0x1d3   : > { %v1987_v2 = vsel %vm1973_vm10, %v1984_v38, %v1986_v37  ;;  %v9864_v25 = vadd.s32 4294967294, %v2111_v51  ;;  %v2129_v55 = vsub.s32 4, %v12827_v53  ;;  %vm1832_vm13 = vcmp.eq.s32.totalorder %v12825_v13, 2  ;;  %4867 = vrot.lane.b32.xlu1 %v12813_v58, %s11412_s0 }
 0x1d4   : > { %vm12910_vm12 = vcmp.le.f32.partialorder %v14977_v35, 0.7853982  ;;  %v12922_v27 = vmul.u32.u64.low %v12868_v59, %v1987_v2  ;;  %v12923_v33 = vmul.u32.u64.high %v12868_v59, %v1987_v2, %v12922_v27  ;;  %v2252_v46 = vand.u32 2139095040, %v12902_v15 }
 0x1d5   : > { %v12929_v0 = vmul.u32.u64.low %v12868_v59, %v1983_v5  ;;  %v12930_v45 = vmul.u32.u64.high %v12868_v59, %v1983_v5, %v12929_v0  ;;  %vm1828_vm14 = vcmp.lt.s32.totalorder %v12825_v13, 2  ;;  %vm2655_vm15 = vcmp.lt.s32.totalorder %v12891_v48, 2  ;;  %v12961_v5 = vpop.permute.xlu0 %3893 }
 0x1d6   : > { %v2099_v21 = vadd.s32 %v12731_v36, %v12746_v24  ;;  %vm9865_vm1 = vcmp.lt.s32.totalorder %v9864_v25, 0  ;;  %v1979_v8 = vsel %vm1973_vm10, %v1976_v47, %v1978_v23  ;;  %v3283_v22 = vadd.f32 %v3275_v32, %v3227_v3  ;;  %4303 = vrot.lane.b32.xlu0 %v12841_v40, %s11413_s16 }
 0x1d7   : > { %vm2656_vm2 = vcmp.eq.s32.totalorder %v12891_v48, 0  ;;  %v2114_v9 = vsel %vm9865_vm1, 0, %v9864_v25  ;;  %v2253_v17 = vshrl.u32 %v2252_v46, 23  ;;  %v2130_v36 = vsel %vm2045_vm9, %v2129_v55, %v12827_v53  ;;  %v11266_v24 = vpop.eup %11265  ;;  %5507 = vrot.lane.b32.xlu1 %v12813_v58, %s11419_s14 }
 0x1d8   : > { %v2115_v28 = vsub.s32 32, %v2114_v9  ;;  %v2116_v31 = vshll.u32 %v12856_v60, %v2114_v9  ;;  %v2119_v14 = vsub.s32 4294967266, %v2114_v9  ;;  %vm1826_vm3 = vweird.f32 %v12355_v61  ;;  %v11268_v7 = vpop.eup %11267  ;;  %v12977_v9 = vpop.permute.xlu1 %5189 }
 0x1d9   : > { %v1995_v38 = vmul.u32 %v12868_v59, %v1979_v8  ;;  %vm1997_vm4 = vc.u32 %v12923_v33, %v12929_v0  ;;  %v1998_v60 = vadd.s32 1, %v12930_v45  ;;  %v9870_v62 = vadd.s32 4294967169, %v2253_v17  ;;  %14980 = vst [vmem:[#allocation11_spill] sm:$0xff] %v12977_v9  ;;  %v12979_v17 = vpop.permute.xlu0 %4629 }
 0x1da   : > { %v1833_v3 = vxor.u32 2147483648, %v11266_v24  ;;  %vm2659_vm5 = vcmp.eq.s32.totalorder %v12891_v48, 2  ;;  %v2117_v53 = vshrl.u32 %v2099_v21, %v2115_v28  ;;  %v2120_v51 = vadd.s32 127, %v2119_v14  ;;  %4947 = vrot.lane.b32.xlu0 %v12841_v40, %s11412_s0 }
 0x1db   : > { %v1830_v37 = vxor.u32 2147483648, %v11268_v7  ;;  %v1999_v59 = vsel %vm1997_vm4, %v1998_v60, %v12930_v45  ;;  %v14940_v32 = vand.u32 2147483647, %v12902_v15  ;;  %v2259_v35 = vadd.s32 1, %v9870_v62  ;;  %6147 = vrot.lane.b32.xlu1 %v12813_v58, %s11421_s23 }
 0x1dc   : > { %v3294_v47 = vmul.f32 1.442695, %v3283_v22  ;;  %v2118_v23 = vor.u32 %v2117_v53, %v2116_v31  ;;  %v2121_v2 = vshll.u32 %v2120_v51, 23  ;;  %v2132_v25 = vsel %vm12910_vm12, 0, %v2130_v36 }
 0x1dd   : > { %v1834_v55 = vsel %vm1832_vm13, %v1833_v3, %v11268_v7  ;;  %v2661_v27 = vsel %vm2659_vm5, %v1833_v3, %v11268_v7  ;;  %v2000_v46 = vadd.s32 %v1999_v59, %v1995_v38  ;;  %vm2260_vm6 = vcmp.gt.s32.totalorder %v2259_v35, 0 }
 0x1de   : > { %v1831_v45 = vsel %vm1829_vm11, %v11266_v24, %v1830_v37  ;;  %v2658_v21 = vsel %vm2656_vm2, %v11266_v24, %v1830_v37  ;;  %v2122_v8 = vor.u32 4788187, %v2121_v2  ;;  %v2125_v22 = vcvt.s32.f32 %v2118_v23  ;;  %5587 = vrot.lane.b32.xlu0 %v12841_v40, %s11419_s14  ;;  %v13014_v2 = vpop.permute.xlu1 %5829 }
 0x1df   : > { %11269 = vpow2.f32 %v12630_v10  ;;  %v2001_v28 = vadd.s32 536870912, %v2000_v46  ;;  %v2256_v31 = vand.u32 8388607, %v14940_v32  ;;  %v2261_v14 = vsel %vm2260_vm6, %v2259_v35, 0  ;;  %14982 = vst [vmem:[#allocation12_spill] sm:$0xff] %v13014_v2  ;;  %6787 = vrot.lane.b32.xlu1 %v12813_v58, %s11422_s21 }
 0x1e0   : > { %11271 = vpow2.f32 %v12889_v54  ;;  %v14981_v36 = vcombine.high %v12428_v49, %v12428_v49  ;;  %v2123_v38 = vand.u32 2147483647, %v2122_v8  ;;  %v2965_v60 = vadd.s32 3, %v2132_v25 }
 0x1e1   : > { %v1835_v10 = vsel %vm1828_vm14, %v1831_v45, %v1834_v55  ;;  %v2662_v62 = vsel %vm2655_vm15, %v2658_v21, %v2661_v27  ;;  %v12995_v7 = vshrl.u32 %v2001_v28, 30  ;;  %v2263_v3 = vand.u32 31, %v2261_v14 }
 0x1e2   : > { %v3243_v24 = vrot.slane %v14981_v36, %v12410_v42  ;;  %11273 = vpow2.f32 %v3294_v47  ;;  %v2126_v54 = vmul.f32 %v2125_v22, %v2123_v38  ;;  %v13003_v51 = vand.u32 3, %v2132_v25  ;;  %v13016_v25 = vpop.permute.xlu0 %5269  ;;  %v13041_v38 = vpop.f32.mrf.mxu1  ;;  %6227 = vrot.lane.b32.xlu0 %v12841_v40, %s11421_s23 }
 0x1e3   : > { %v2003_v13 = vshll.u32 %v12995_v7, 30  ;;  %v2257_v48 = vor.u32 8388608, %v2256_v31  ;;  %v2264_v37 = vsub.s32 32, %v2263_v3  ;;  %v1836_v59 = vsel %vm1826_vm3, nan, %v1835_v10  ;;  %14983 = vst [vmem:[#allocation13_spill] sm:$0xff] %v13016_v25  ;;  %4387 = vrot.lane.b32.xlu1 %v13041_v38, %s11413_s16 }
 0x1e4   : > { %v2663_v35 = vsel %vm1826_vm3, nan, %v2662_v62  ;;  %v2127_v47 = vxor.u32 2147483648, %v2126_v54  ;;  %v13010_v23 = vand.u32 3, %v2965_v60  ;;  %v13020_v27 = vshrl.u32 %v2261_v14, 5 }
 0x1e5   : > { %v13018_v55 = vsub.s32 %v2000_v46, %v2003_v13  ;;  %v2266_v45 = vshll.u32 %v14976_v18, %v2263_v3  ;;  %v2269_v21 = vshll.u32 %v14971_v57, %v2263_v3  ;;  %v2267_v8 = vshrl.u32 %v14971_v57, %v2264_v37 }
 0x1e6   : > { %v2128_v61 = vsel %vm2045_vm9, %v2127_v47, %v2126_v54  ;;  %v2270_v22 = vshrl.u32 %v14972_v52, %v2264_v37  ;;  %v2272_v28 = vshll.u32 %v14972_v52, %v2263_v3  ;;  %v13036_v31 = vadd.s32 %v12929_v0, %v12923_v33  ;;  %v13047_v29 = vpop.permute.xlu0 %5909  ;;  %6867 = vrot.lane.b32.xlu0 %v12841_v40, %s11422_s21 }
 0x1e7   : > { %v2131_v46 = vsel %vm12910_vm12, %v12530_v39, %v2128_v61  ;;  %v2006_v14 = vsub.s32 0, %v13018_v55  ;;  %v13039_v36 = vshll.u32 %v2257_v48, 8  ;;  %v3226_v60 = vmul.f32 %v12624_v43, %v1836_v59  ;;  %14984 = vst [vmem:[#allocation14_spill] sm:$0xff] %v13047_v29  ;;  %5029 = vrot.lane.b32.xlu1 %v13041_v38, %s11412_s0 }
 0x1e8   : > { %v3274_v10 = vmul.f32 %v3243_v24, %v2663_v35  ;;  %11275 = vcosq.f32 %v2131_v46  ;;  %v2273_v62 = vshrl.u32 %v14973_v63, %v2264_v37  ;;  %v2265_v0 = vshrl.u32 %v14976_v18, %v2264_v37  ;;  %v13055_v24 = vpop.permute.xlu1 %6469 }
 0x1e9   : > { %11277 = vsinq.f32 %v2131_v46  ;;  %v9859_v33 = vmin.u32 %v2006_v14, %v13018_v55  ;;  %vm2281_vm7 = vcmp.lt.s32.totalorder %v13020_v27, 1  ;;  %v2268_v54 = vor.u32 %v2267_v8, %v2266_v45  ;;  %14985 = vst [vmem:[#allocation15_spill] sm:$0xff] %v13055_v24  ;;  %v13060_v46 = vpop.f32.mrf.mxu1 }
 0x1ea   : > { %v2271_v13 = vor.u32 %v2270_v22, %v2269_v21  ;;  %v2274_v48 = vor.u32 %v2273_v62, %v2272_v28  ;;  %v2275_v43 = vshll.u32 %v14973_v63, %v2263_v3  ;;  %v2276_v35 = vshrl.u32 %v14974_v12, %v2264_v37  ;;  %v13070_v8 = vpop.permute.xlu0 %6549 }
 0x1eb   : > { %v2008_v59 = vclz %v9859_v33  ;;  %v2278_v47 = vshll.u32 %v14974_v12, %v2263_v3  ;;  %v2279_v61 = vshrl.u32 %v14965_v4, %v2264_v37  ;;  %v3282_v45 = vadd.f32 %v3274_v10, %v3226_v60  ;;  %14986 = vst [vmem:[#allocation16_spill] sm:$0xff] %v13070_v8  ;;  %v13106_v8 = vpop.f32.mrf.mxu0  ;;  %5669 = vrot.lane.b32.xlu1 %v13041_v38, %s11419_s14 }
 0x1ec   : > { %v13062_v14 = vpop.eup %11269  ;;  %vm1942_vm8 = vcmp.lt.s32.totalorder %v12641_v26, 0  ;;  %v2026_v21 = vsub.s32 4, %v12995_v7  ;;  %vm2282_vm9 = vcmp.lt.s32.totalorder %v13020_v27, 2  ;;  %vm2283_vm10 = vcmp.lt.s32.totalorder %v13020_v27, 3  ;;  %v13097_v49 = vpop.permute.xlu1 %7109 }
 0x1ed   : > { %v13072_v3 = vpop.eup %11271  ;;  %vm2141_vm11 = vcmp.eq.s32.totalorder %v13003_v51, 2  ;;  %v9860_v37 = vadd.s32 4294967294, %v2008_v59  ;;  %v2277_v22 = vor.u32 %v2276_v35, %v2275_v43  ;;  %v2280_v28 = vor.u32 %v2279_v61, %v2278_v47  ;;  %v13090_v47 = vpop.f32.mrf.mxu1  ;;  %14988 = vst [vmem:[#allocation18_spill] sm:$0xff] %v13097_v49 }
 0x1ee   : > { %14987 = vst [vmem:[#allocation17_spill] sm:$0xff] %v13072_v3  ;;  %vm2284_vm12 = vcmp.lt.s32.totalorder %v13020_v27, 4  ;;  %vm2138_vm13 = vcmp.eq.s32.totalorder %v13003_v51, 0  ;;  %v2285_v60 = vsel %vm2281_vm7, %v2265_v0, %v2268_v54  ;;  %v2289_v62 = vsel %vm2281_vm7, %v2268_v54, %v2271_v13  ;;  %4469 = vrot.lane.b32.xlu0 %v13090_v47, %s11413_s16 }
 0x1ef   : > { %v2286_v10 = vsel %vm2284_vm12, %v2274_v48, 2102212464  ;;  %v2293_v33 = vsel %vm2281_vm7, %v2271_v13, %v2274_v48  ;;  %v13085_v59 = vpop.eup %11273  ;;  %vm2137_vm14 = vcmp.lt.s32.totalorder %v13003_v51, 2  ;;  %vm9861_vm15 = vcmp.lt.s32.totalorder %v9860_v37, 0  ;;  %6309 = vrot.lane.b32.xlu1 %v13041_v38, %s11421_s23 }
 0x1f0   : > { %v2287_v43 = vsel %vm2283_vm10, %v2271_v13, %v2286_v10  ;;  %v2290_v35 = vsel %vm2284_vm12, %v2277_v22, 920167782  ;;  %v2294_v0 = vsel %vm2284_vm12, %v2280_v28, 1326507024  ;;  %v3292_v61 = vmul.f32 1.442695, %v3282_v45  ;;  %v13101_v13 = vpop.permute.xlu0 %7189 }
 0x1f1   : > { %vm2135_vm1 = vweird.f32 %v12530_v39  ;;  %v2011_v54 = vsel %vm9861_vm15, 0, %v9860_v37  ;;  %v2291_v32 = vsel %vm2283_vm10, %v2274_v48, %v2290_v35  ;;  %v2295_v53 = vsel %vm2283_vm10, %v2277_v22, %v2294_v0  ;;  %14989 = vst [vmem:[#allocation19_spill] sm:$0xff] %v13101_v13 }
 0x1f2   : > { %v2012_v28 = vsub.s32 32, %v2011_v54  ;;  %v2013_v10 = vshll.u32 %v13018_v55, %v2011_v54  ;;  %v2016_v45 = vsub.s32 4294967266, %v2011_v54  ;;  %v2292_v37 = vsel %vm2282_vm9, %v2289_v62, %v2291_v32  ;;  %5109 = vrot.lane.b32.xlu0 %v13090_v47, %s11412_s0 }
 0x1f3   : > { %v2288_v48 = vsel %vm2282_vm9, %v2285_v60, %v2287_v43  ;;  %v2296_v22 = vsel %vm2282_vm9, %v2293_v33, %v2295_v53  ;;  %v13113_v35 = vmul.u32.u64.low %v13039_v36, %v2292_v37  ;;  %v13114_v0 = vmul.u32.u64.high %v13039_v36, %v2292_v37, %v13113_v35  ;;  %6949 = vrot.lane.b32.xlu1 %v13041_v38, %s11422_s21 }
 0x1f4   : > { %v2014_v55 = vshrl.u32 %v13036_v31, %v2012_v28  ;;  %v2017_v54 = vadd.s32 127, %v2016_v45  ;;  %v13121_v32 = vmul.u32.u64.low %v13039_v36, %v2296_v22  ;;  %v13122_v62 = vmul.u32.u64.high %v13039_v36, %v2296_v22, %v13121_v32  ;;  %v13134_v31 = vpop.permute.xlu1 %4547  ;;  %v13138_v33 = vpop.permute.xlu0 %3975 }
 0x1f5   : > { %vm2967_vm2 = vcmp.lt.s32.totalorder %v13010_v23, 2  ;;  %vm2968_vm3 = vcmp.eq.s32.totalorder %v13010_v23, 0  ;;  %vm2971_vm4 = vcmp.eq.s32.totalorder %v13010_v23, 2  ;;  %v14990_v53 = vand.u32 2147483647, %v12641_v26  ;;  %v11276_v43 = vpop.eup %11275 }
 0x1f6   : > { %v2149_v60 = vand.u32 2139095040, %v13106_v8  ;;  %v2015_v28 = vor.u32 %v2014_v55, %v2013_v10  ;;  %v2018_v45 = vshll.u32 %v2017_v54, 23  ;;  %v2027_v37 = vsel %vm1942_vm8, %v2026_v21, %v12995_v7  ;;  %v11278_v22 = vpop.eup %11277  ;;  %5749 = vrot.lane.b32.xlu0 %v13090_v47, %s11419_s14 }
 0x1f7   : > { %vm13129_vm5 = vcmp.le.f32.partialorder %v14990_v53, 0.7853982  ;;  %v2142_v32 = vxor.u32 2147483648, %v11276_v43  ;;  %v2304_v53 = vmul.u32 %v13039_v36, %v2288_v48  ;;  %v2307_v13 = vadd.s32 1, %v13114_v0  ;;  %4385 = vrot.lane.b32.xlu1 %v13060_v46, %s11413_s16 }
 0x1f8   : > { %v2150_v49 = vshrl.u32 %v2149_v60, 23  ;;  %vm11425_vm6 = vmmov 0   ;;  %11279 = vpow2.f32 %v3292_v61  ;;  %v2139_v10 = vxor.u32 2147483648, %v11278_v22  ;;  %v13157_v48 = vpop.permute.xlu1 %5187  ;;  %v13161_v61 = vpop.permute.xlu0 %4627 }
 0x1f9   : > { %10549 = vmatprep.mubr.msk.f32.mxu0 %vm11425_vm6, %v14975_v16  ;;  %10584 = vmatprep.mubr.msk.f32.mxu1 %vm11425_vm6, %v14975_v16  ;;  %v2019_v55 = vor.u32 4788187, %v2018_v45  ;;  %v2022_v54 = vcvt.s32.f32 %v2015_v28  ;;  %v2143_v7 = vsel %vm2141_vm11, %v2142_v32, %v11278_v22  ;;  %v2973_v36 = vsel %vm2971_vm4, %v2142_v32, %v11278_v22  ;;  %14993 = vst [vmem:[#allocation20_spill] sm:$0xff] %v13157_v48 }
 0x1fa   : > { %vm2306_vm7 = vc.u32 %v13122_v62, %v13113_v35  ;;  %v9866_v21 = vadd.s32 4294967169, %v2150_v49  ;;  %v2140_v60 = vsel %vm2138_vm13, %v11276_v43, %v2139_v10  ;;  %v2970_v28 = vsel %vm2968_vm3, %v11276_v43, %v2139_v10  ;;  %6389 = vrot.lane.b32.xlu0 %v13090_v47, %s11421_s23 }
 0x1fb   : > { %v2020_v45 = vand.u32 2147483647, %v2019_v55  ;;  %v2308_v22 = vsel %vm2306_vm7, %v2307_v13, %v13114_v0  ;;  %v2144_v32 = vsel %vm2137_vm14, %v2140_v60, %v2143_v7  ;;  %v2974_v49 = vsel %vm2967_vm2, %v2970_v28, %v2973_v36  ;;  %5027 = vrot.lane.b32.xlu1 %v13060_v46, %s11412_s0 }
 0x1fc   : > { %v2309_v24 = vadd.s32 %v2308_v22, %v2304_v53  ;;  %v2156_v29 = vadd.s32 1, %v9866_v21  ;;  %v2145_v2 = vsel %vm2135_vm1, nan, %v2144_v32  ;;  %v2975_v25 = vsel %vm2135_vm1, nan, %v2974_v49  ;;  %v13185_v10 = vpop.permute.xlu1 %5827  ;;  %v13189_v39 = vpop.permute.xlu0 %5267 }
 0x1fd   : > { %v2023_v48 = vmul.f32 %v2022_v54, %v2020_v45  ;;  %v14941_v43 = vand.u32 2147483647, %v13106_v8  ;;  %v14994_v51 = vrot.slane %v12639_v1, %v12410_v42  ;;  %v14995_v23 = vrot.slane %v12761_v30, %v12410_v42  ;;  %14996 = vst [vmem:[#allocation21_spill] sm:$0xff] %v13185_v10  ;;  %14997 = vst [vmem:[#allocation22_spill] sm:$0xff] %v13189_v39 }
 0x1fe   : > { %v2310_v53 = vadd.s32 536870912, %v2309_v24  ;;  %vm2157_vm9 = vcmp.gt.s32.totalorder %v2156_v29, 0  ;;  %v2029_v54 = vsel %vm13129_vm5, 0, %v2027_v37  ;;  %vm3304_vm10 = vcmask 130048   ;;  %7029 = vrot.lane.b32.xlu0 %v13090_v47, %s11422_s21 }
 0x1ff   : > { %v3229_v13 = vmul.f32 %v14994_v51, %v2145_v2  ;;  %v3277_v0 = vmul.f32 %v14995_v23, %v2975_v25  ;;  %v2024_v55 = vxor.u32 2147483648, %v2023_v48  ;;  %v2158_v7 = vsel %vm2157_vm9, %v2156_v29, 0  ;;  %10550 = vmatmul.mubr.msk.f32.vlgmr.msra.gmra.mxu0 %vm3304_vm10, %v13072_v3  ;;  %5667 = vrot.lane.b32.xlu1 %v13060_v46, %s11419_s14 }
 0x200   : > { %v13193_v36 = vshrl.u32 %v2310_v53, 30  ;;  %v2160_v21 = vand.u32 31, %v2158_v7  ;;  %v13199_v25 = vrot.slane %v12588_v41, %v12277_v34  ;;  %10553 = vmatpush3.msra.mxu0 %v12116_v44  ;;  %10556 = vmatprep.mubr.msk.f32.mxu0 %vm11425_vm6, %v14975_v16  ;;  %v2861_v28 = vadd.s32 3, %v2029_v54  ;;  %v13213_v41 = vpop.permute.xlu1 %6467 }
 0x201   : > { %v3285_v2 = vadd.f32 %v3277_v0, %v3229_v13  ;;  %v2025_v60 = vsel %vm1942_vm8, %v2024_v55, %v2023_v48  ;;  %10554 = vmatprep.subr.mxu0 %v14975_v16  ;;  %14998 = vst [vmem:[#allocation23_spill] sm:$0xff] %v13213_v41  ;;  %v13215_v48 = vpop.permute.xlu0 %5907  ;;  %v13219_v22 = vrot.slane %v12608_v6, %v12277_v34  ;;  %v2153_v27 = vand.u32 8388607, %v14941_v43  ;;  %v15000_v0 = vld [vmem:[#allocation7_spill] sm:$0xff] }
 0x202   : > { %v2028_v37 = vsel %vm13129_vm5, %v12641_v26, %v2025_v60  ;;  %v2312_v45 = vshll.u32 %v13193_v36, 30  ;;  %14999 = vst [vmem:[#allocation24_spill] sm:$0xff] %v13215_v48  ;;  %v2161_v32 = vsub.s32 32, %v2160_v21  ;;  %10555 = vmatpush3.msra.mxu0 %v12371_v20  ;;  %v13226_v49 = vand.u32 3, %v2029_v54  ;;  %v15004_v48 = vld [vmem:[#allocation9_spill] sm:$0xff] }
 0x203   : > { %v3298_v29 = vmul.f32 1.442695, %v3285_v2  ;;  %11281 = vcosq.f32 %v2028_v37  ;;  %v2163_v13 = vshll.u32 %v14976_v18, %v2160_v21  ;;  %10559 = vmatprep.subr.mxu0 %v14975_v16  ;;  %10557 = vmatmul.mubr.msk.f32.vlgmr.msra.gmra.mxu0 %vm3304_vm10, %v13062_v14  ;;  %v2166_v6 = vshll.u32 %v14971_v57, %v2160_v21 }
 0x204   : > { %v13228_v51 = vsub.s32 %v2309_v24, %v2312_v45  ;;  %v2164_v34 = vshrl.u32 %v14971_v57, %v2161_v32  ;;  %v2169_v23 = vshll.u32 %v14972_v52, %v2160_v21  ;;  %10560 = vmatpush3.msra.mxu0 %v15000_v0  ;;  %10563 = vmatprep.mubr.msk.f32.mxu0 %vm11425_vm6, %v14975_v16  ;;  %v13242_v53 = vand.u32 3, %v2861_v28  ;;  %v13251_v57 = vpop.permute.xlu1 %7107  ;;  %v15002_v45 = vld [vmem:[#allocation8_spill] sm:$0xff] }
 0x205   : > { %11283 = vpow2.f32 %v3298_v29  ;;  %v13240_v24 = vpop.eup %11279  ;;  %v13245_v54 = vshrl.u32 %v2158_v7, 5  ;;  %v2167_v2 = vshrl.u32 %v14972_v52, %v2161_v32  ;;  %10561 = vmatprep.subr.mxu0 %v14975_v16  ;;  %15001 = vst [vmem:[#allocation7_spill] sm:$0xff] %v13251_v57  ;;  %v2154_v60 = vor.u32 8388608, %v2153_v27  ;;  %v13262_v57 = vpop.permute.xlu0 %6547  ;;  %6307 = vrot.lane.b32.xlu1 %v13060_v46, %s11421_s23 }
 0x206   : > { %11285 = vsinq.f32 %v2028_v37  ;;  %v2315_v55 = vsub.s32 0, %v13228_v51  ;;  %v2170_v29 = vshrl.u32 %v14973_v63, %v2161_v32  ;;  %v2172_v37 = vshll.u32 %v14973_v63, %v2160_v21  ;;  %10562 = vmatpush3.msra.mxu0 %v15002_v45  ;;  %15003 = vst [vmem:[#allocation8_spill] sm:$0xff] %v13262_v57 }
 0x207   : > { %v2173_v28 = vshrl.u32 %v14974_v12, %v2161_v32  ;;  %v2162_v52 = vshrl.u32 %v14976_v18, %v2161_v32  ;;  %v2165_v43 = vor.u32 %v2164_v34, %v2163_v13  ;;  %10566 = vmatprep.subr.mxu0 %v14975_v16  ;;  %10564 = vmatmul.mubr.msk.f32.vlgmr.msra.gmra.mxu0 %vm3304_vm10, %v13240_v24  ;;  %vm2038_vm8 = vcmp.eq.s32.totalorder %v13226_v49, 2 }
 0x208   : > { %v9871_v7 = vmin.u32 %v2315_v55, %v13228_v51  ;;  %v2168_v27 = vor.u32 %v2167_v2, %v2166_v6  ;;  %v2171_v63 = vor.u32 %v2170_v29, %v2169_v23  ;;  %10567 = vmatpush3.msra.mxu0 %v15004_v48  ;;  %10570 = vmatprep.mubr.msk.f32.mxu0 %vm11425_vm6, %v14975_v16  ;;  %vm2035_vm11 = vcmp.eq.s32.totalorder %v13226_v49, 0  ;;  %v13273_v55 = vpop.f32.mrf.mxu1  ;;  %v13278_v6 = vpop.permute.xlu1 %3977 }
 0x209   : > { %v2174_v41 = vor.u32 %v2173_v28, %v2172_v37  ;;  %vm2864_vm12 = vcmp.eq.s32.totalorder %v13242_v53, 0  ;;  %v2175_v13 = vshll.u32 %v14974_v12, %v2160_v21  ;;  %v2176_v34 = vshrl.u32 %v14965_v4, %v2161_v32  ;;  %10568 = vmatprep.subr.mxu0 %v14975_v16  ;;  %v15005_v21 = vld [vmem:[#allocation10_spill] sm:$0xff]  ;;  %4467 = vrot.lane.b32.xlu0 %v13273_v55, %s11413_s16  ;;  %s11432_s16 = smov 24  }
 0x20a   : > { %v2317_v18 = vclz %v9871_v7  ;;  %vm2178_vm13 = vcmp.lt.s32.totalorder %v13245_v54, 1  ;;  %vm2034_vm14 = vcmp.lt.s32.totalorder %v13226_v49, 2  ;;  %vm2867_vm15 = vcmp.eq.s32.totalorder %v13242_v53, 2  ;;  %10569 = vmatpush3.msra.mxu0 %v15005_v21  ;;  %v13318_v7 = vpop.permute.xlu0 %7187  ;;  %6947 = vrot.lane.b32.xlu1 %v13060_v46, %s11422_s21 }
 0x20b   : > { %v2305_v12 = vadd.s32 %v13113_v35, %v13122_v62  ;;  %vm2179_vm1 = vcmp.lt.s32.totalorder %v13245_v54, 2  ;;  %v13285_v4 = vshll.u32 %v2154_v60, 8  ;;  %vm2032_vm2 = vweird.f32 %v12641_v26  ;;  %10573 = vmatprep.subr.mxu0 %v14975_v16  ;;  %10571 = vmatmul.mubr.msk.f32.vlgmr.msra.gmra.mxu0 %vm3304_vm10, %v13085_v59  ;;  %15006 = vst [vmem:[#allocation9_spill] sm:$0xff] %v13318_v7 }
 0x20c   : > { %v9872_v32 = vadd.s32 4294967294, %v2317_v18  ;;  %v2177_v23 = vor.u32 %v2176_v34, %v2175_v13  ;;  %vm2180_vm3 = vcmp.lt.s32.totalorder %v13245_v54, 3  ;;  %vm2181_vm4 = vcmp.lt.s32.totalorder %v13245_v54, 4  ;;  %10574 = vmatpush3.msra.mxu0 %v12800_v19  ;;  %10577 = vmatprep.mubr.msk.f32.mxu0 %vm11425_vm6, %v14975_v16 }
 0x20d   : > { %v2182_v35 = vsel %vm2178_vm13, %v2162_v52, %v2165_v43  ;;  %v2183_v62 = vsel %vm2181_vm4, %v2171_v63, 2102212464  ;;  %v2186_v2 = vsel %vm2178_vm13, %v2165_v43, %v2168_v27  ;;  %v2187_v60 = vsel %vm2181_vm4, %v2174_v41, 920167782  ;;  %10575 = vmatprep.subr.mxu0 %v14975_v16  ;;  %v13316_v43 = vpop.permute.xlu1 %4059  ;;  %5107 = vrot.lane.b32.xlu0 %v13273_v55, %s11412_s0 }
 0x20e   : > { %vm9873_vm5 = vcmp.lt.s32.totalorder %v9872_v32, 0  ;;  %v2184_v29 = vsel %vm2180_vm3, %v2168_v27, %v2183_v62  ;;  %v2188_v37 = vsel %vm2180_vm3, %v2171_v63, %v2187_v60  ;;  %v2190_v28 = vsel %vm2178_vm13, %v2168_v27, %v2171_v63  ;;  %10576 = vmatpush3.msra.mxu0 %v12813_v58  ;;  %3889 = vrot.lane.b32.xlu1 %v13072_v3, %s11412_s0 }
 0x20f   : > { %v2320_v52 = vsel %vm9873_vm5, 0, %v9872_v32  ;;  %v2185_v18 = vsel %vm2179_vm1, %v2182_v35, %v2184_v29  ;;  %v2189_v13 = vsel %vm2179_vm1, %v2186_v2, %v2188_v37  ;;  %v2191_v34 = vsel %vm2181_vm4, %v2177_v23, 1326507024  ;;  %10587 = vmatprep.subr.mxu0 %v14975_v16 }
 0x210   : > { %v11282_v27 = vpop.eup %11281  ;;  %v2321_v63 = vsub.s32 32, %v2320_v52  ;;  %v2322_v62 = vshll.u32 %v13228_v51, %v2320_v52  ;;  %v2325_v60 = vsub.s32 4294967266, %v2320_v52  ;;  %v2192_v32 = vsel %vm2180_vm3, %v2174_v41, %v2191_v34 }
 0x211   : > { %v2039_v2 = vxor.u32 2147483648, %v11282_v27  ;;  %v2193_v23 = vsel %vm2179_vm1, %v2190_v28, %v2192_v32  ;;  %v13338_v29 = vmul.u32.u64.low %v13285_v4, %v2189_v13  ;;  %v13339_v37 = vmul.u32.u64.high %v13285_v4, %v2189_v13, %v13338_v29  ;;  %v13350_v41 = vpop.permute.xlu1 %4709  ;;  %5747 = vrot.lane.b32.xlu0 %v13273_v55, %s11419_s14  ;;  %v13367_v32 = vpop.permute.xlu0 %4141  ;;  %s11431_s14 = smov 8  }
 0x212   : > { %v13333_v35 = vpop.eup %11283  ;;  %v2323_v57 = vshrl.u32 %v2305_v12, %v2321_v63  ;;  %v2326_v51 = vadd.s32 127, %v2325_v60  ;;  %v13343_v52 = vmul.u32.u64.low %v13285_v4, %v2193_v23  ;;  %v13344_v10 = vmul.u32.u64.high %v13285_v4, %v2193_v23, %v13343_v52  ;;  %4545 = vrot.lane.b32.xlu1 %v13072_v3, %s11421_s23 }
 0x213   : > { %15007 = vst [vmem:[#allocation10_spill] sm:$0xff] %v13333_v35  ;;  %v11286_v7 = vpop.eup %11285  ;;  %10585 = vmatmul.mubr.msk.f32.vlgmr.msra.gmra.mxu1 %vm3304_vm10, %v13333_v35  ;;  %vm2863_vm7 = vcmp.lt.s32.totalorder %v13242_v53, 2  ;;  %v3203_v13 = vrot.slane %v13199_v25, %v12410_v42  ;;  %v3251_v34 = vrot.slane %v13219_v22, %v12410_v42  ;;  %v2201_v23 = vmul.u32 %v13285_v4, %v2185_v18 }
 0x214   : > { %v2036_v54 = vxor.u32 2147483648, %v11286_v7  ;;  %v2040_v28 = vsel %vm2038_vm8, %v2039_v2, %v11286_v7  ;;  %v2869_v12 = vsel %vm2867_vm15, %v2039_v2, %v11286_v7  ;;  %10595 = vmatpush3.msra.mxu1 %v13090_v47  ;;  %10598 = vmatprep.mubr.msk.f32.mxu1 %vm11425_vm6, %v14975_v16  ;;  %v2324_v63 = vor.u32 %v2323_v57, %v2322_v62 }
 0x215   : > { %v2327_v60 = vshll.u32 %v2326_v51, 23  ;;  %10596 = vmatprep.subr.mxu1 %v14975_v16  ;;  %v2204_v52 = vadd.s32 1, %v13339_v37  ;;  %vm2203_vm9 = vc.u32 %v13344_v10, %v13338_v29  ;;  %6387 = vrot.lane.b32.xlu0 %v13273_v55, %s11421_s23  ;;  %vm2251_vm8 = vcmp.lt.s32.totalorder %v12902_v15, 0 }
 0x216   : > { %v2037_v7 = vsel %vm2035_vm11, %v11282_v27, %v2036_v54  ;;  %v2866_v2 = vsel %vm2864_vm12, %v11282_v27, %v2036_v54  ;;  %10597 = vmatpush3.msra.mxu1 %v13273_v55  ;;  %v2331_v39 = vcvt.s32.f32 %v2324_v63  ;;  %v13383_v27 = vpop.permute.xlu1 %5349  ;;  %5185 = vrot.lane.b32.xlu1 %v13072_v3, %s11424_s25  ;;  %vm2341_vm4 = vweird.f32 %v12902_v15 }
 0x217   : > { %v2041_v57 = vsel %vm2034_vm14, %v2037_v7, %v2040_v28  ;;  %v2870_v62 = vsel %vm2863_vm7, %v2866_v2, %v2869_v12  ;;  %v2328_v51 = vor.u32 4788187, %v2327_v60  ;;  %10608 = vmatprep.subr.mxu1 %v14975_v16  ;;  %15008 = vst [vmem:[#allocation25_spill] sm:$0xff] %v13383_v27  ;;  %v2205_v28 = vsel %vm2203_vm9, %v2204_v52, %v13339_v37  ;;  %v13394_v12 = vpop.permute.xlu0 %4789 }
 0x218   : > { %v2042_v4 = vsel %vm2032_vm2, nan, %v2041_v57  ;;  %v2871_v18 = vsel %vm2032_vm2, nan, %v2870_v62  ;;  %v2206_v63 = vadd.s32 %v2205_v28, %v2201_v23  ;;  %v15010_v37 = vand.u32 2147483647, %v12902_v15 }
 0x219   : > { %v3228_v49 = vmul.f32 %v3203_v13, %v2042_v4  ;;  %v3276_v53 = vmul.f32 %v3251_v34, %v2871_v18  ;;  %v2329_v54 = vand.u32 2147483647, %v2328_v51  ;;  %v2335_v13 = vsub.s32 4, %v13193_v36  ;;  %7027 = vrot.lane.b32.xlu0 %v13273_v55, %s11422_s21 }
 0x21a   : > { %v13398_v26 = vpop.permute.xlu1 %5989  ;;  %v2207_v34 = vadd.s32 536870912, %v2206_v63  ;;  %vm13404_vm11 = vcmp.le.f32.partialorder %v15010_v37, 0.7853982  ;;  %5825 = vrot.lane.b32.xlu1 %v13072_v3, %s11426_s29  ;;  %vm2148_vm5 = vcmp.lt.s32.totalorder %v13106_v8, 0 }
 0x21b   : > { %v3284_v60 = vadd.f32 %v3276_v53, %v3228_v49  ;;  %v2332_v7 = vmul.f32 %v2331_v39, %v2329_v54  ;;  %15009 = vst [vmem:[#allocation26_spill] sm:$0xff] %v13398_v26  ;;  %v13410_v39 = vpop.permute.xlu0 %5429  ;;  %v2336_v4 = vsel %vm2251_vm8, %v2335_v13, %v13193_v36 }
 0x21c   : > { %15013 = vst [vmem:[#allocation27_spill] sm:$0xff] %v13410_v39  ;;  %v13412_v57 = vshrl.u32 %v2207_v34, 30  ;;  %v2338_v28 = vsel %vm13404_vm11, 0, %v2336_v4 }
 0x21d   : > { %v3296_v2 = vmul.f32 1.442695, %v3284_v60  ;;  %v2333_v23 = vxor.u32 2147483648, %v2332_v7  ;;  %3971 = vrot.lane.b32.xlu0 %v13062_v14, %s11412_s0  ;;  %v3173_v13 = vadd.s32 3, %v2338_v28  ;;  %v2342_v37 = vand.u32 3, %v2338_v28 }
 0x21e   : > { %v13416_v51 = vpop.permute.xlu1 %6629  ;;  %v2209_v49 = vshll.u32 %v13412_v57, 30  ;;  %6465 = vrot.lane.b32.xlu1 %v13072_v3, %s11427_s28  ;;  %v1373_v28 = vcombine.high %v12639_v1, %v12639_v1 }
 0x21f   : > { %11287 = vpow2.f32 %v3296_v2  ;;  %v2334_v62 = vsel %vm2251_vm8, %v2333_v23, %v2332_v7  ;;  %15014 = vst [vmem:[#allocation28_spill] sm:$0xff] %v13416_v51  ;;  %v13425_v53 = vpop.permute.xlu0 %6069  ;;  %v3174_v23 = vand.u32 3, %v3173_v13  ;;  %vm2347_vm13 = vcmp.eq.s32.totalorder %v2342_v37, 2 }
 0x220   : > { %v2337_v18 = vsel %vm13404_vm11, %v12902_v15, %v2334_v62  ;;  %15015 = vst [vmem:[#allocation29_spill] sm:$0xff] %v13425_v53  ;;  %v2210_v54 = vsub.s32 %v2206_v63, %v2209_v49  ;;  %v2202_v49 = vadd.s32 %v13338_v29, %v13344_v10  ;;  %vm2343_vm15 = vcmp.lt.s32.totalorder %v2342_v37, 2 }
 0x221   : > { %11289 = vcosq.f32 %v2337_v18  ;;  %4625 = vrot.lane.b32.xlu0 %v13062_v14, %s11421_s23  ;;  %vm3179_vm14 = vcmp.eq.s32.totalorder %v3174_v23, 2  ;;  %vm2344_vm1 = vcmp.eq.s32.totalorder %v2342_v37, 0  ;;  %vm3176_vm2 = vcmp.eq.s32.totalorder %v3174_v23, 0 }
 0x222   : > { %11291 = vsinq.f32 %v2337_v18  ;;  %v13431_v36 = vpop.permute.xlu1 %7269  ;;  %v2212_v60 = vsub.s32 0, %v2210_v54  ;;  %7105 = vrot.lane.b32.xlu1 %v13072_v3, %s11428_s22  ;;  %vm3175_vm3 = vcmp.lt.s32.totalorder %v3174_v23, 2  ;;  %v3215_v9 = vrot.slane %v1373_v28, %v12410_v42 }
 0x223   : > { %15016 = vst [vmem:[#allocation30_spill] sm:$0xff] %v13431_v36  ;;  %v13435_v7 = vpop.permute.xlu0 %6709  ;;  %v2232_v15 = vsub.s32 4, %v13412_v57 }
 0x224   : > { %15017 = vst [vmem:[#allocation31_spill] sm:$0xff] %v13435_v7  ;;  %v9867_v34 = vmin.u32 %v2212_v60, %v2210_v54  ;;  %v1527_v60 = vcombine.high %v12761_v30, %v12761_v30 }
 0x225   : > { %5265 = vrot.lane.b32.xlu0 %v13062_v14, %s11424_s25 }
 0x226   : > { %v13439_v63 = vpop.permute.xlu1 %4057  ;;  %v2214_v2 = vclz %v9867_v34  ;;  %4053 = vrot.lane.b32.xlu1 %v13240_v24, %s11412_s0 }
 0x227   : > { %v13443_v52 = vpop.permute.xlu0 %4139 }
 0x228   : > { %v9868_v62 = vadd.s32 4294967294, %v2214_v2 }
 0x229   : > { %5905 = vrot.lane.b32.xlu0 %v13062_v14, %s11426_s29 }
 0x22a   : > { %v13447_v4 = vpop.permute.xlu1 %4707  ;;  %vm9869_vm12 = vcmp.lt.s32.totalorder %v9868_v62, 0  ;;  %4705 = vrot.lane.b32.xlu1 %v13240_v24, %s11421_s23 }
 0x22b   : > { %v2217_v13 = vsel %vm9869_vm12, 0, %v9868_v62  ;;  %v13461_v34 = vpop.permute.xlu0 %4787 }
 0x22c   : > { %v13449_v18 = vpop.eup %11287  ;;  %v2218_v10 = vsub.s32 32, %v2217_v13  ;;  %v2219_v29 = vshll.u32 %v2210_v54, %v2217_v13  ;;  %v2222_v36 = vsub.s32 4294967266, %v2217_v13 }
 0x22d   : > { %10578 = vmatmul.mubr.msk.f32.vlgmr.msra.gmra.mxu0 %vm3304_vm10, %v13449_v18  ;;  %6545 = vrot.lane.b32.xlu0 %v13062_v14, %s11427_s28 }
 0x22e   : > { %v11290_v2 = vpop.eup %11289  ;;  %10588 = vmatpush3.msra.mxu0 %v13041_v38  ;;  %10591 = vmatprep.mubr.msk.f32.mxu0 %vm11425_vm6, %v14975_v16  ;;  %v13469_v62 = vpop.permute.xlu1 %5347  ;;  %v2220_v13 = vshrl.u32 %v2202_v49, %v2218_v10  ;;  %v2223_v7 = vadd.s32 127, %v2222_v36 }
 0x22f   : > { %v11292_v1 = vpop.eup %11291  ;;  %v2348_v30 = vxor.u32 2147483648, %v11290_v2  ;;  %10589 = vmatprep.subr.mxu0 %v14975_v16  ;;  %15018 = vst [vmem:[#allocation32_spill] sm:$0xff] %v13469_v62  ;;  %v13478_v26 = vpop.permute.xlu0 %5427  ;;  %5345 = vrot.lane.b32.xlu1 %v13240_v24, %s11424_s25 }
 0x230   : > { %v2345_v54 = vxor.u32 2147483648, %v11292_v1  ;;  %10590 = vmatpush3.msra.mxu0 %v13060_v46  ;;  %15019 = vst [vmem:[#allocation33_spill] sm:$0xff] %v13478_v26  ;;  %v2221_v36 = vor.u32 %v2220_v13, %v2219_v29  ;;  %v2224_v10 = vshll.u32 %v2223_v7, 23 }
 0x231   : > { %v2349_v51 = vsel %vm2347_vm13, %v2348_v30, %v11292_v1  ;;  %v3181_v53 = vsel %vm3179_vm14, %v2348_v30, %v11292_v1  ;;  %10601 = vmatprep.subr.mxu0 %v14975_v16  ;;  %v3263_v1 = vrot.slane %v1527_v60, %v12410_v42  ;;  %7185 = vrot.lane.b32.xlu0 %v13062_v14, %s11428_s22 }
 0x232   : > { %v2346_v39 = vsel %vm2344_vm1, %v11290_v2, %v2345_v54  ;;  %v3178_v49 = vsel %vm3176_vm2, %v11290_v2, %v2345_v54  ;;  %v13487_v30 = vpop.permute.xlu1 %5987  ;;  %v2225_v2 = vor.u32 4788187, %v2224_v10  ;;  %v2228_v7 = vcvt.s32.f32 %v2221_v36 }
 0x233   : > { %v2350_v62 = vsel %vm2343_vm15, %v2346_v39, %v2349_v51  ;;  %v3182_v27 = vsel %vm3175_vm3, %v3178_v49, %v3181_v53  ;;  %15020 = vst [vmem:[#allocation34_spill] sm:$0xff] %v13487_v30  ;;  %v13495_v51 = vpop.permute.xlu0 %6067  ;;  %v2233_v49 = vsel %vm2148_vm5, %v2232_v15, %v13412_v57  ;;  %5985 = vrot.lane.b32.xlu1 %v13240_v24, %s11426_s29  ;;  %vm2238_vm15 = vweird.f32 %v13106_v8 }
 0x234   : > { %v2351_v26 = vsel %vm2341_vm4, nan, %v2350_v62  ;;  %v3183_v23 = vsel %vm2341_vm4, nan, %v3182_v27  ;;  %15021 = vst [vmem:[#allocation35_spill] sm:$0xff] %v13495_v51  ;;  %v2226_v53 = vand.u32 2147483647, %v2225_v2  ;;  %vm8626_vm1 = vcmask 195584  }
 0x235   : > { %v3231_v37 = vmul.f32 %v3215_v9, %v2351_v26  ;;  %v3279_v39 = vmul.f32 %v3263_v1, %v3183_v23  ;;  %4135 = vrot.lane.b32.xlu0 %v13085_v59, %s11412_s0  ;;  %v15024_v27 = vand.u32 2147483647, %v13106_v8  ;;  %vm8644_vm2 = vcmask 326656  }
 0x236   : > { %v13499_v60 = vpop.permute.xlu1 %6627  ;;  %v2229_v29 = vmul.f32 %v2228_v7, %v2226_v53  ;;  %vm8662_vm3 = vcmask 457728   ;;  %vm8653_vm4 = vcmask 392192  }
 0x237   : > { %v3287_v28 = vadd.f32 %v3279_v39, %v3231_v37  ;;  %15022 = vst [vmem:[#allocation36_spill] sm:$0xff] %v13499_v60  ;;  %v13505_v9 = vpop.permute.xlu0 %6707  ;;  %vm2147_vm7 = vcmp.le.f32.partialorder %v15024_v27, 0.7853982  ;;  %6625 = vrot.lane.b32.xlu1 %v13240_v24, %s11427_s28  ;;  %v1371_v27 = vcombine.high %v13199_v25, %v13199_v25 }
 0x238   : > { %15023 = vst [vmem:[#allocation37_spill] sm:$0xff] %v13505_v9  ;;  %v2230_v26 = vxor.u32 2147483648, %v2229_v29  ;;  %v2235_v23 = vsel %vm2147_vm7, 0, %v2233_v49 }
 0x239   : > { %v3302_v62 = vmul.f32 1.442695, %v3287_v28  ;;  %4785 = vrot.lane.b32.xlu0 %v13085_v59, %s11421_s23  ;;  %v3069_v57 = vadd.s32 3, %v2235_v23  ;;  %v2239_v39 = vand.u32 3, %v2235_v23 }
 0x23a   : > { %v13511_v54 = vpop.permute.xlu1 %4223  ;;  %v2231_v13 = vsel %vm2148_vm5, %v2230_v26, %v2229_v29 }
 0x23b   : > { %11293 = vpow2.f32 %v3302_v62  ;;  %v2234_v36 = vsel %vm2147_vm7, %v13106_v8, %v2231_v13  ;;  %v13517_v10 = vpop.permute.xlu0 %4305  ;;  %v3070_v53 = vand.u32 3, %v3069_v57  ;;  %4217 = vrot.lane.b32.xlu1 %v13449_v18, %s11412_s0  ;;  %vm2244_vm9 = vcmp.eq.s32.totalorder %v2239_v39, 2 }
 0x23c   : > { %11295 = vcosq.f32 %v2234_v36  ;;  %vm2241_vm11 = vcmp.eq.s32.totalorder %v2239_v39, 0  ;;  %vm2240_vm13 = vcmp.lt.s32.totalorder %v2239_v39, 2 }
 0x23d   : > { %11297 = vsinq.f32 %v2234_v36  ;;  %5425 = vrot.lane.b32.xlu0 %v13085_v59, %s11424_s25  ;;  %vm3075_vm8 = vcmp.eq.s32.totalorder %v3070_v53, 2  ;;  %vm3072_vm12 = vcmp.eq.s32.totalorder %v3070_v53, 0  ;;  %vm3071_vm14 = vcmp.lt.s32.totalorder %v3070_v53, 2 }
 0x23e   : > { %v13521_v1 = vpop.permute.xlu1 %4869 }
 0x23f   : > { %v13525_v2 = vpop.permute.xlu0 %4949  ;;  %4865 = vrot.lane.b32.xlu1 %v13449_v18, %s11421_s23 }
 0x241   : > { %6065 = vrot.lane.b32.xlu0 %v13085_v59, %s11426_s29 }
 0x242   : > { %v13529_v7 = vpop.permute.xlu1 %5509 }
 0x243   : > { %v13533_v37 = vpop.permute.xlu0 %5589  ;;  %5505 = vrot.lane.b32.xlu1 %v13449_v18, %s11424_s25 }
 0x245   : > { %6705 = vrot.lane.b32.xlu0 %v13085_v59, %s11427_s28 }
 0x246   : > { %v13537_v28 = vpop.permute.xlu1 %6149 }
 0x247   : > { %15025 = vst [vmem:[#allocation38_spill] sm:$0xff] %v13537_v28  ;;  %v13545_v62 = vpop.permute.xlu0 %6229  ;;  %6145 = vrot.lane.b32.xlu1 %v13449_v18, %s11426_s29 }
 0x248   : > { %v13539_v29 = vpop.eup %11293  ;;  %15026 = vst [vmem:[#allocation39_spill] sm:$0xff] %v13545_v62  ;;  %v3211_v62 = vrot.slane %v1371_v27, %v12410_v42 }
 0x249   : > { %10599 = vmatmul.mubr.msk.f32.vlgmr.msra.gmra.mxu1 %vm3304_vm10, %v13539_v29  ;;  %v11296_v15 = vpop.eup %11295  ;;  %4299 = vrot.lane.b32.xlu0 %v13333_v35, %s11412_s0 }
 0x24a   : > { %10609 = vmatpush3.msra.mxu1 %v13278_v6  ;;  %10612 = vmatprep.mubr.msk.f32.mxu1 %vm11425_vm6, %v14975_v16  ;;  %v13555_v26 = vpop.permute.xlu1 %6789  ;;  %v11298_v13 = vpop.eup %11297  ;;  %v1525_v6 = vcombine.high %v13219_v22, %v13219_v22  ;;  %v2245_v49 = vxor.u32 2147483648, %v11296_v15 }
 0x24b   : > { %10610 = vmatprep.subr.mxu1 %v14975_v16  ;;  %15027 = vst [vmem:[#allocation40_spill] sm:$0xff] %v13555_v26  ;;  %v2242_v25 = vxor.u32 2147483648, %v11298_v13  ;;  %v13562_v36 = vpop.permute.xlu0 %6869  ;;  %6785 = vrot.lane.b32.xlu1 %v13449_v18, %s11427_s28 }
 0x24c   : > { %10611 = vmatpush3.msra.mxu1 %v13138_v33  ;;  %15028 = vst [vmem:[#allocation41_spill] sm:$0xff] %v13562_v36  ;;  %v2246_v23 = vsel %vm2244_vm9, %v2245_v49, %v11298_v13  ;;  %v3077_v22 = vsel %vm3075_vm8, %v2245_v49, %v11298_v13  ;;  %v3259_v36 = vrot.slane %v1525_v6, %v12410_v42 }
 0x24d   : > { %10622 = vmatprep.subr.mxu1 %v14975_v16  ;;  %v2243_v57 = vsel %vm2241_vm11, %v11296_v15, %v2242_v25  ;;  %v3074_v9 = vsel %vm3072_vm12, %v11296_v15, %v2242_v25  ;;  %4945 = vrot.lane.b32.xlu0 %v13333_v35, %s11421_s23 }
 0x24e   : > { %v13570_v33 = vpop.permute.xlu1 %4221  ;;  %v2247_v26 = vsel %vm2240_vm13, %v2243_v57, %v2246_v23  ;;  %v3078_v60 = vsel %vm3071_vm14, %v3074_v9, %v3077_v22 }
 0x24f   : > { %v2248_v51 = vsel %vm2238_vm15, nan, %v2247_v26  ;;  %v3079_v28 = vsel %vm2238_vm15, nan, %v3078_v60  ;;  %v13576_v8 = vpop.permute.xlu0 %4303 }
 0x250   : > { %v3230_v39 = vmul.f32 %v3211_v62, %v2248_v51  ;;  %v3278_v53 = vmul.f32 %v3259_v36, %v3079_v28 }
 0x251   : > { %5585 = vrot.lane.b32.xlu0 %v13333_v35, %s11424_s25 }
 0x252   : > { %v13580_v15 = vpop.permute.xlu1 %4867  ;;  %v3286_v13 = vadd.f32 %v3278_v53, %v3230_v39 }
 0x253   : > { %v13584_v9 = vpop.permute.xlu0 %4947 }
 0x254   : > { %v3300_v42 = vmul.f32 1.442695, %v3286_v13 }
 0x255   : > { %6225 = vrot.lane.b32.xlu0 %v13333_v35, %s11426_s29 }
 0x256   : > { %v13588_v60 = vpop.permute.xlu1 %5507  ;;  %11299 = vpow2.f32 %v3300_v42 }
 0x257   : > { %v13592_v51 = vpop.permute.xlu0 %5587 }
 0x259   : > { %6865 = vrot.lane.b32.xlu0 %v13333_v35, %s11427_s28 }
 0x25a   : > { %v13594_v28 = vpop.permute.xlu1 %6147 }
 0x25b   : > { %15029 = vst [vmem:[#allocation42_spill] sm:$0xff] %v13594_v28  ;;  %v13598_v62 = vpop.permute.xlu0 %6227 }
 0x25c   : > { %15030 = vst [vmem:[#allocation43_spill] sm:$0xff] %v13598_v62 }
 0x25d   : > { %4463 = vrot.lane.b32.xlu0 %v13539_v29, %s11412_s0 }
 0x25e   : > { %v13600_v27 = vpop.permute.xlu1 %6787 }
 0x25f   : > { %15031 = vst [vmem:[#allocation44_spill] sm:$0xff] %v13600_v27  ;;  %v13604_v26 = vpop.permute.xlu0 %6867 }
 0x260   : > { %15032 = vst [vmem:[#allocation45_spill] sm:$0xff] %v13604_v26 }
 0x261   : > { %5105 = vrot.lane.b32.xlu0 %v13539_v29, %s11421_s23 }
 0x262   : > { %v13606_v6 = vpop.permute.xlu1 %4387 }
 0x263   : > { %v13608_v49 = vpop.eup %11299  ;;  %v13612_v25 = vpop.permute.xlu0 %4469 }
 0x264   : > { %15033 = vst [vmem:[#allocation46_spill] sm:$0xff] %v13608_v49  ;;  %10592 = vmatmul.mubr.msk.f32.vlgmr.msra.gmra.mxu0 %vm3304_vm10, %v13608_v49  ;;  %4381 = vrot.lane.b32.xlu1 %v13608_v49, %s11412_s0 }
 0x265   : > { %10602 = vmatpush3.msra.mxu0 %v12942_v56  ;;  %10605 = vmatprep.mubr.msk.f32.mxu0 %vm11425_vm6, %v14975_v16 }
 0x266   : > { %v13619_v36 = vpop.permute.xlu1 %5029  ;;  %10603 = vmatprep.subr.mxu0 %v14975_v16  ;;  %5745 = vrot.lane.b32.xlu0 %v13539_v29, %s11424_s25 }
 0x267   : > { %10604 = vmatpush3.msra.mxu0 %v12961_v5  ;;  %v13627_v23 = vpop.permute.xlu0 %5109 }
 0x268   : > { %7267 = vrot.lane.b32.xlu1 %v15002_v45, %s11424_s25  ;;  %10615 = vmatprep.subr.mxu0 %v14975_v16 }
 0x26a   : > { %v13632_v56 = vpop.permute.xlu1 %5669  ;;  %6385 = vrot.lane.b32.xlu0 %v13539_v29, %s11426_s29 }
 0x26b   : > { %v13636_v22 = vpop.permute.xlu0 %5749 }
 0x26c   : > { %7265 = vrot.lane.b32.xlu1 %v13240_v24, %s11428_s22 }
 0x26e   : > { %v13640_v5 = vpop.permute.xlu1 %6309  ;;  %7025 = vrot.lane.b32.xlu0 %v13539_v29, %s11427_s28 }
 0x26f   : > { %15034 = vst [vmem:[#allocation47_spill] sm:$0xff] %v13640_v5  ;;  %v13646_v57 = vpop.permute.xlu0 %6389 }
 0x270   : > { %7429 = vrot.lane.b32.xlu1 %v12800_v19, %s11424_s25  ;;  %15035 = vst [vmem:[#allocation48_spill] sm:$0xff] %v13646_v57 }
 0x272   : > { %7349 = vrot.lane.b32.xlu0 %v15004_v48, %s11424_s25  ;;  %v13650_v39 = vpop.permute.xlu1 %6949 }
 0x273   : > { %15036 = vst [vmem:[#allocation49_spill] sm:$0xff] %v13650_v39  ;;  %v13654_v53 = vpop.permute.xlu0 %7029 }
 0x274   : > { %5025 = vrot.lane.b32.xlu1 %v13608_v49, %s11421_s23  ;;  %15037 = vst [vmem:[#allocation50_spill] sm:$0xff] %v13654_v53 }
 0x276   : > { %7347 = vrot.lane.b32.xlu0 %v15005_v21, %s11424_s25  ;;  %v13658_v13 = vpop.permute.xlu1 %4385 }
 0x278   : > { %7427 = vrot.lane.b32.xlu1 %v12813_v58, %s11424_s25 }
 0x27a   : > { %7345 = vrot.lane.b32.xlu0 %v13085_v59, %s11428_s22  ;;  %v13664_v42 = vpop.permute.xlu1 %5027 }
 0x27b   : > { %v13668_v26 = vpop.permute.xlu0 %4467 }
 0x27c   : > { %7425 = vrot.lane.b32.xlu1 %v13449_v18, %s11428_s22 }
 0x27e   : > { %7509 = vrot.lane.b32.xlu0 %v12823_v50, %s11424_s25  ;;  %v13672_v53 = vpop.permute.xlu1 %5667 }
 0x27f   : > { %v13676_v39 = vpop.permute.xlu0 %5107 }
 0x280   : > { %7589 = vrot.lane.b32.xlu1 %v13041_v38, %s11424_s25 }
 0x282   : > { %7507 = vrot.lane.b32.xlu0 %v12841_v40, %s11424_s25  ;;  %v13680_v27 = vpop.permute.xlu1 %6307 }
 0x283   : > { %15038 = vst [vmem:[#allocation51_spill] sm:$0xff] %v13680_v27  ;;  %v13684_v57 = vpop.permute.xlu0 %5747  ;;  %v15040_v27 = vld [vmem:[#allocation5_spill] sm:$0xff] }
 0x284   : > { %5665 = vrot.lane.b32.xlu1 %v13608_v49, %s11424_s25 }
 0x286   : > { %7505 = vrot.lane.b32.xlu0 %v13333_v35, %s11428_s22  ;;  %v13688_v62 = vpop.permute.xlu1 %6947 }
 0x287   : > { %15039 = vst [vmem:[#allocation52_spill] sm:$0xff] %v13688_v62  ;;  %v13692_v5 = vpop.permute.xlu0 %6387 }
 0x288   : > { %7587 = vrot.lane.b32.xlu1 %v13060_v46, %s11424_s25 }
 0x28a   : > { %7669 = vrot.lane.b32.xlu0 %v13090_v47, %s11424_s25  ;;  %v3890_v28 = vpop.permute.xlu1 %3889 }
 0x28b   : > { %10606 = vmatmul.mubr.msk.f32.vlgmr.msra.gmra.mxu0 %vm3304_vm10, %v3890_v28  ;;  %v13699_v30 = vpop.permute.xlu0 %7027 }
 0x28c   : > { %7749 = vrot.lane.b32.xlu1 %v15040_v27, %s11429_s24  ;;  %10616 = vmatpush3.msra.mxu0 %v13316_v43  ;;  %v15041_v27 = vld [vmem:[#allocation6_spill] sm:$0xff] }
 0x28d   : > { %10619 = vmatprep.mubr.msk.f32.mxu0 %vm11425_vm6, %v14975_v16  ;;  %10617 = vmatprep.subr.mxu0 %v14975_v16 }
 0x28e   : > { %7667 = vrot.lane.b32.xlu0 %v13273_v55, %s11424_s25  ;;  %10618 = vmatpush3.msra.mxu0 %v13439_v63  ;;  %v13708_v62 = vpop.permute.xlu1 %4545 }
 0x28f   : > { %10629 = vmatprep.subr.mxu0 %v14975_v16  ;;  %v3972_v28 = vpop.permute.xlu0 %3971 }
 0x290   : > { %7747 = vrot.lane.b32.xlu1 %v15041_v27, %s11429_s24  ;;  %10613 = vmatmul.mubr.msk.f32.vlgmr.msra.gmra.mxu1 %vm3304_vm10, %v3972_v28 }
 0x291   : > { %10623 = vmatpush3.msra.mxu1 %v13367_v32  ;;  %10626 = vmatprep.mubr.msk.f32.mxu1 %vm11425_vm6, %v14975_v16 }
 0x292   : > { %7665 = vrot.lane.b32.xlu0 %v13539_v29, %s11428_s22  ;;  %v13717_v43 = vpop.permute.xlu1 %5185  ;;  %10624 = vmatprep.subr.mxu1 %v14975_v16 }
 0x293   : > { %10625 = vmatpush3.msra.mxu1 %v13443_v52  ;;  %v13723_v63 = vpop.permute.xlu0 %4625 }
 0x294   : > { %6305 = vrot.lane.b32.xlu1 %v13608_v49, %s11426_s29  ;;  %10636 = vmatprep.subr.mxu1 %v14975_v16 }
 0x296   : > { %7829 = vrot.lane.b32.xlu0 %v12116_v44, %s11429_s24  ;;  %v13730_v32 = vpop.permute.xlu1 %5825 }
 0x297   : > { %v13734_v27 = vpop.permute.xlu0 %5265 }
 0x298   : > { %7745 = vrot.lane.b32.xlu1 %v13072_v3, %s11430_s26 }
 0x29a   : > { %7827 = vrot.lane.b32.xlu0 %v12371_v20, %s11429_s24  ;;  %v13738_v52 = vpop.permute.xlu1 %6465 }
 0x29b   : > { %v13742_v28 = vpop.permute.xlu0 %5905 }
 0x29c   : > { %7909 = vrot.lane.b32.xlu1 %v15000_v0, %s11429_s24 }
 0x29e   : > { %7825 = vrot.lane.b32.xlu0 %v13062_v14, %s11430_s26  ;;  %v13746_v44 = vpop.permute.xlu1 %7105 }
 0x29f   : > { %v13750_v3 = vpop.permute.xlu0 %6545 }
 0x2a0   : > { %7907 = vrot.lane.b32.xlu1 %v15002_v45, %s11429_s24 }
 0x2a2   : > { %7989 = vrot.lane.b32.xlu0 %v15004_v48, %s11429_s24  ;;  %v4054_v20 = vpop.permute.xlu1 %4053 }
 0x2a3   : > { %10620 = vmatmul.mubr.msk.f32.vlgmr.msra.gmra.mxu0 %vm3304_vm10, %v4054_v20  ;;  %v13757_v0 = vpop.permute.xlu0 %7185 }
 0x2a4   : > { %6945 = vrot.lane.b32.xlu1 %v13608_v49, %s11427_s28  ;;  %10630 = vmatpush3.msra.mxu0 %v13511_v54 }
 0x2a5   : > { %10633 = vmatprep.mubr.msk.f32.mxu0 %vm11425_vm6, %v14975_v16  ;;  %10631 = vmatprep.subr.mxu0 %v14975_v16 }
 0x2a6   : > { %7987 = vrot.lane.b32.xlu0 %v15005_v21, %s11429_s24  ;;  %10632 = vmatpush3.msra.mxu0 %v13570_v33  ;;  %v13766_v48 = vpop.permute.xlu1 %4705 }
 0x2a7   : > { %10643 = vmatprep.subr.mxu0 %v14975_v16  ;;  %v4136_v45 = vpop.permute.xlu0 %4135 }
 0x2a8   : > { %7905 = vrot.lane.b32.xlu1 %v13240_v24, %s11430_s26  ;;  %10627 = vmatmul.mubr.msk.f32.vlgmr.msra.gmra.mxu1 %vm3304_vm10, %v4136_v45 }
 0x2a9   : > { %10637 = vmatpush3.msra.mxu1 %v13517_v10  ;;  %10640 = vmatprep.mubr.msk.f32.mxu1 %vm11425_vm6, %v14975_v16 }
 0x2aa   : > { %7985 = vrot.lane.b32.xlu0 %v13085_v59, %s11430_s26  ;;  %v13775_v54 = vpop.permute.xlu1 %5345  ;;  %10638 = vmatprep.subr.mxu1 %v14975_v16 }
 0x2ab   : > { %10639 = vmatpush3.msra.mxu1 %v13576_v8  ;;  %v13781_v21 = vpop.permute.xlu0 %4785 }
 0x2ac   : > { %8069 = vrot.lane.b32.xlu1 %v12800_v19, %s11429_s24  ;;  %10650 = vmatprep.subr.mxu1 %v14975_v16 }
 0x2ae   : > { %8149 = vrot.lane.b32.xlu0 %v12823_v50, %s11429_s24  ;;  %v13788_v10 = vpop.permute.xlu1 %5985 }
 0x2af   : > { %v13792_v19 = vpop.permute.xlu0 %5425 }
 0x2b0   : > { %8067 = vrot.lane.b32.xlu1 %v12813_v58, %s11429_s24 }
 0x2b2   : > { %8147 = vrot.lane.b32.xlu0 %v12841_v40, %s11429_s24  ;;  %v13796_v33 = vpop.permute.xlu1 %6625 }
 0x2b3   : > { %v13800_v8 = vpop.permute.xlu0 %6065 }
 0x2b4   : > { %7585 = vrot.lane.b32.xlu1 %v13608_v49, %s11428_s22 }
 0x2b6   : > { %8145 = vrot.lane.b32.xlu0 %v13333_v35, %s11430_s26  ;;  %v4218_v50 = vpop.permute.xlu1 %4217 }
 0x2b7   : > { %10634 = vmatmul.mubr.msk.f32.vlgmr.msra.gmra.mxu0 %vm3304_vm10, %v4218_v50  ;;  %v13807_v58 = vpop.permute.xlu0 %6705 }
 0x2b8   : > { %8065 = vrot.lane.b32.xlu1 %v13449_v18, %s11430_s26  ;;  %10644 = vmatpush3.msra.mxu0 %v13606_v6 }
 0x2b9   : > { %10647 = vmatprep.mubr.msk.f32.mxu0 %vm11425_vm6, %v14975_v16  ;;  %10645 = vmatprep.subr.mxu0 %v14975_v16 }
 0x2ba   : > { %8309 = vrot.lane.b32.xlu0 %v13090_v47, %s11429_s24  ;;  %10646 = vmatpush3.msra.mxu0 %v13658_v13  ;;  %v13819_v20 = vpop.permute.xlu1 %4865 }
 0x2bb   : > { %10657 = vmatprep.subr.mxu0 %v14975_v16  ;;  %v4300_v40 = vpop.permute.xlu0 %4299 }
 0x2bc   : > { %8229 = vrot.lane.b32.xlu1 %v13041_v38, %s11429_s24  ;;  %10641 = vmatmul.mubr.msk.f32.vlgmr.msra.gmra.mxu1 %vm3304_vm10, %v4300_v40 }
 0x2bd   : > { %10651 = vmatpush3.msra.mxu1 %v13612_v25  ;;  %10654 = vmatprep.mubr.msk.f32.mxu1 %vm11425_vm6, %v14975_v16 }
 0x2be   : > { %8307 = vrot.lane.b32.xlu0 %v13273_v55, %s11429_s24  ;;  %10652 = vmatprep.subr.mxu1 %v14975_v16  ;;  %v13840_v55 = vpop.permute.xlu1 %5505 }
 0x2bf   : > { %v13822_v6 = vpop.f32.mrf.mxu0  ;;  %10653 = vmatpush3.msra.mxu1 %v13668_v26  ;;  %v13831_v47 = vpop.permute.xlu0 %4945 }
 0x2c0   : > { %15042 = vst [vmem:[#allocation5_spill] sm:$0xff] %v13822_v6  ;;  %8227 = vrot.lane.b32.xlu1 %v13060_v46, %s11429_s24  ;;  %10664 = vmatprep.subr.mxu1 %v14975_v16  ;;  %s11434_s24 = smov 56  }
 0x2c1   : > { %v10551_v38 = vpop.f32.mrf.mxu0 }
 0x2c2   : > { %v13850_v40 = vpop.permute.xlu1 %6145 }
 0x2c3   : > { %v13836_v13 = vpop.f32.mrf.mxu0  ;;  %v13842_v25 = vpop.permute.xlu0 %5585 }
 0x2c4   : > { %15043 = vst [vmem:[#allocation6_spill] sm:$0xff] %v13836_v13  ;;  %8225 = vrot.lane.b32.xlu1 %v13608_v49, %s11430_s26 }
 0x2c5   : > { %v10558_v46 = vpop.f32.mrf.mxu0 }
 0x2c6   : > { %v13856_v49 = vpop.permute.xlu1 %6785 }
 0x2c7   : > { %v13844_v45 = vpop.f32.mrf.mxu0  ;;  %v13848_v50 = vpop.permute.xlu0 %6225 }
 0x2c8   : > { %15044 = vst [vmem:[#allocation53_spill] sm:$0xff] %v13844_v45  ;;  %8305 = vrot.lane.b32.xlu1 %v13539_v29, %s11430_s26 }
 0x2c9   : > { %v10565_v26 = vpop.f32.mrf.mxu0 }
 0x2cb   : > { %v13852_v38 = vpop.f32.mrf.mxu0  ;;  %v13854_v6 = vpop.permute.xlu0 %6865 }
 0x2cd   : > { %v10572_v13 = vpop.f32.mrf.mxu0 }
 0x2cf   : > { %v4464_v35 = vpop.permute.xlu0 %4463 }
 0x2d0   : > { %10655 = vmatmul.mubr.msk.f32.vlgmr.msra.gmra.mxu1 %vm3304_vm10, %v4464_v35 }
 0x2d1   : > { %10665 = vmatpush3.msra.mxu1 %v12979_v17  ;;  %10668 = vmatprep.mubr.msk.f32.mxu1 %vm11425_vm6, %v14975_v16 }
 0x2d2   : > { %10666 = vmatprep.subr.mxu1 %v14975_v16 }
 0x2d3   : > { %v13858_v46 = vpop.f32.mrf.mxu1  ;;  %10667 = vmatpush3.msra.mxu1 %v13161_v61  ;;  %v5106_v26 = vpop.permute.xlu0 %5105 }
 0x2d4   : > { %10678 = vmatprep.subr.mxu1 %v14975_v16  ;;  %10669 = vmatmul.mubr.msk.f32.vlgmr.msra.gmra.mxu1 %vm3304_vm10, %v13723_v63 }
 0x2d5   : > { %v10586_v45 = vpop.f32.mrf.mxu1  ;;  %10679 = vmatpush3.msra.mxu1 %v13394_v12  ;;  %10682 = vmatprep.mubr.msk.f32.mxu1 %vm11425_vm6, %v14975_v16 }
 0x2d6   : > { %v4382_v13 = vpop.permute.xlu1 %4381  ;;  %10680 = vmatprep.subr.mxu1 %v14975_v16  ;;  %v15060_v45 = vld [vmem:[#allocation38_spill] sm:$0xff] }
 0x2d7   : > { %10648 = vmatmul.mubr.msk.f32.vlgmr.msra.gmra.mxu0 %vm3304_vm10, %v4382_v13  ;;  %10681 = vmatpush3.msra.mxu1 %v13461_v34  ;;  %v15061_v13 = vld [vmem:[#allocation35_spill] sm:$0xff] }
 0x2d8   : > { %10658 = vmatpush3.msra.mxu0 %v12951_v11  ;;  %10661 = vmatprep.mubr.msk.f32.mxu0 %vm11425_vm6, %v14975_v16  ;;  %v13887_v11 = vpop.permute.xlu0 %5745 }
 0x2d9   : > { %10659 = vmatprep.subr.mxu0 %v14975_v16  ;;  %10692 = vmatprep.subr.mxu1 %v14975_v16 }
 0x2da   : > { %10660 = vmatpush3.msra.mxu0 %v13134_v31  ;;  %v13877_v17 = vpop.permute.xlu1 %7267  ;;  %10683 = vmatmul.mubr.msk.f32.vlgmr.msra.gmra.mxu1 %vm3304_vm10, %v13781_v21 }
 0x2db   : > { %10671 = vmatprep.subr.mxu0 %v14975_v16  ;;  %10662 = vmatmul.mubr.msk.f32.vlgmr.msra.gmra.mxu0 %vm3304_vm10, %v13708_v62 }
 0x2dc   : > { %10672 = vmatpush3.msra.mxu0 %v13350_v41  ;;  %10675 = vmatprep.mubr.msk.f32.mxu0 %vm11425_vm6, %v14975_v16  ;;  %v13911_v35 = vpop.permute.xlu0 %6385 }
 0x2dd   : > { %10673 = vmatprep.subr.mxu0 %v14975_v16  ;;  %10693 = vmatpush3.msra.mxu1 %v13525_v2  ;;  %v15046_v2 = vld [vmem:[#allocation20_spill] sm:$0xff] }
 0x2de   : > { %10674 = vmatpush3.msra.mxu0 %v13447_v4  ;;  %v13892_v31 = vpop.permute.xlu1 %7265  ;;  %10694 = vmatprep.subr.mxu1 %v14975_v16  ;;  %v15045_v4 = vld [vmem:[#allocation11_spill] sm:$0xff] }
 0x2df   : > { %10685 = vmatprep.subr.mxu0 %v14975_v16  ;;  %10676 = vmatmul.mubr.msk.f32.vlgmr.msra.gmra.mxu0 %vm3304_vm10, %v13766_v48  ;;  %v15052_v48 = vld [vmem:[#allocation33_spill] sm:$0xff] }
 0x2e0   : > { %10686 = vmatpush3.msra.mxu0 %v13521_v1  ;;  %10689 = vmatprep.mubr.msk.f32.mxu0 %vm11425_vm6, %v14975_v16  ;;  %v13928_v12 = vpop.permute.xlu0 %7025 }
 0x2e1   : > { %10687 = vmatprep.subr.mxu0 %v14975_v16  ;;  %10695 = vmatpush3.msra.mxu1 %v13584_v9  ;;  %v15047_v9 = vld [vmem:[#allocation13_spill] sm:$0xff] }
 0x2e2   : > { %10688 = vmatpush3.msra.mxu0 %v13580_v15  ;;  %v13905_v61 = vpop.permute.xlu1 %7429  ;;  %10696 = vmatprep.mubr.msk.f32.mxu1 %vm11425_vm6, %v14975_v16 }
 0x2e3   : > { %10699 = vmatprep.subr.mxu0 %v14975_v16  ;;  %10690 = vmatmul.mubr.msk.f32.vlgmr.msra.gmra.mxu0 %vm3304_vm10, %v13819_v20  ;;  %v15057_v20 = vld [vmem:[#allocation24_spill] sm:$0xff] }
 0x2e4   : > { %10700 = vmatpush3.msra.mxu0 %v13619_v36  ;;  %10703 = vmatprep.mubr.msk.f32.mxu0 %vm11425_vm6, %v14975_v16  ;;  %v13949_v62 = vpop.permute.xlu0 %7349  ;;  %v15048_v36 = vld [vmem:[#allocation25_spill] sm:$0xff] }
 0x2e5   : > { %10701 = vmatprep.subr.mxu0 %v14975_v16  ;;  %10706 = vmatprep.subr.mxu1 %v14975_v16 }
 0x2e6   : > { %10702 = vmatpush3.msra.mxu0 %v13664_v42  ;;  %v5026_v41 = vpop.permute.xlu1 %5025  ;;  %10697 = vmatmul.mubr.msk.f32.vlgmr.msra.gmra.mxu1 %vm3304_vm10, %v13831_v47  ;;  %v15050_v42 = vld [vmem:[#allocation32_spill] sm:$0xff] }
 0x2e7   : > { %10713 = vmatprep.subr.mxu0 %v14975_v16  ;;  %10704 = vmatmul.mubr.msk.f32.vlgmr.msra.gmra.mxu0 %vm3304_vm10, %v5026_v41  ;;  %v15064_v41 = vld [vmem:[#allocation47_spill] sm:$0xff] }
 0x2e8   : > { %10707 = vmatpush3.msra.mxu1 %v13627_v23  ;;  %10714 = vmatpush3.msra.mxu0 %v15045_v4  ;;  %v15049_v23 = vld [vmem:[#allocation22_spill] sm:$0xff]  ;;  %v13969_v63 = vpop.permute.xlu0 %7347  ;;  %v15065_v4 = vld [vmem:[#allocation43_spill] sm:$0xff] }
 0x2e9   : > { %10708 = vmatprep.subr.mxu1 %v14975_v16  ;;  %10715 = vmatprep.subr.mxu0 %v14975_v16 }
 0x2ea   : > { %10709 = vmatpush3.msra.mxu1 %v13676_v39  ;;  %v13936_v1 = vpop.permute.xlu1 %7427  ;;  %10716 = vmatpush3.msra.mxu0 %v15046_v2 }
 0x2eb   : > { %10717 = vmatprep.mubr.msk.f32.mxu0 %vm11425_vm6, %v14975_v16  ;;  %10727 = vmatprep.subr.mxu0 %v14975_v16 }
 0x2ec   : > { %10710 = vmatprep.mubr.msk.f32.mxu1 %vm11425_vm6, %v14975_v16  ;;  %10720 = vmatprep.subr.mxu1 %v14975_v16 }
 0x2ed   : > { %v13932_v34 = vpop.f32.mrf.mxu0  ;;  %10711 = vmatmul.mubr.msk.f32.vlgmr.msra.gmra.mxu1 %vm3304_vm10, %v5106_v26  ;;  %10718 = vmatmul.mubr.msk.f32.vlgmr.msra.gmra.mxu0 %vm3304_vm10, %v13717_v43  ;;  %v15051_v43 = vld [vmem:[#allocation27_spill] sm:$0xff] }
 0x2ee   : > { %10721 = vmatpush3.msra.mxu1 %v15047_v9  ;;  %10728 = vmatpush3.msra.mxu0 %v15048_v36  ;;  %v13955_v39 = vpop.permute.xlu1 %7425  ;;  %v15068_v9 = vld [vmem:[#allocation15_spill] sm:$0xff] }
 0x2ef   : > { %v10579_v15 = vpop.f32.mrf.mxu0  ;;  %10722 = vmatprep.subr.mxu1 %v14975_v16  ;;  %10729 = vmatprep.subr.mxu0 %v14975_v16 }
 0x2f0   : > { %10723 = vmatpush3.msra.mxu1 %v15049_v23  ;;  %10730 = vmatpush3.msra.mxu0 %v15050_v42  ;;  %v15066_v15 = vld [vmem:[#allocation51_spill] sm:$0xff]  ;;  %v15071_v42 = vld [vmem:[#allocation28_spill] sm:$0xff] }
 0x2f1   : > { %10731 = vmatprep.mubr.msk.f32.mxu0 %vm11425_vm6, %v14975_v16  ;;  %10741 = vmatprep.subr.mxu0 %v14975_v16  ;;  %v15069_v23 = vld [vmem:[#allocation23_spill] sm:$0xff] }
 0x2f2   : > { %10724 = vmatprep.mubr.msk.f32.mxu1 %vm11425_vm6, %v14975_v16  ;;  %10734 = vmatprep.subr.mxu1 %v14975_v16  ;;  %v13975_v21 = vpop.permute.xlu1 %7589 }
 0x2f3   : > { %10725 = vmatmul.mubr.msk.f32.vlgmr.msra.gmra.mxu1 %vm3304_vm10, %v13734_v27  ;;  %10732 = vmatmul.mubr.msk.f32.vlgmr.msra.gmra.mxu0 %vm3304_vm10, %v13775_v54  ;;  %v15056_v54 = vld [vmem:[#allocation26_spill] sm:$0xff] }
 0x2f4   : > { %10735 = vmatpush3.msra.mxu1 %v15051_v43  ;;  %10742 = vmatpush3.msra.mxu0 %v13529_v7  ;;  %v13989_v7 = vpop.permute.xlu0 %7345  ;;  %v15072_v43 = vld [vmem:[#allocation8_spill] sm:$0xff] }
 0x2f5   : > { %10736 = vmatprep.subr.mxu1 %v14975_v16  ;;  %10743 = vmatprep.subr.mxu0 %v14975_v16 }
 0x2f6   : > { %10737 = vmatpush3.msra.mxu1 %v15052_v48  ;;  %10744 = vmatpush3.msra.mxu0 %v13588_v60  ;;  %v5666_v60 = vpop.permute.xlu1 %5665 }
 0x2f7   : > { %10745 = vmatprep.mubr.msk.f32.mxu0 %vm11425_vm6, %v14975_v16  ;;  %10755 = vmatprep.subr.mxu0 %v14975_v16 }
 0x2f8   : > { %10738 = vmatprep.mubr.msk.f32.mxu1 %vm11425_vm6, %v14975_v16  ;;  %10748 = vmatprep.subr.mxu1 %v14975_v16 }
 0x2f9   : > { %10739 = vmatmul.mubr.msk.f32.vlgmr.msra.gmra.mxu1 %vm3304_vm10, %v13792_v19  ;;  %10746 = vmatmul.mubr.msk.f32.vlgmr.msra.gmra.mxu0 %vm3304_vm10, %v13840_v55  ;;  %v15058_v55 = vld [vmem:[#allocation34_spill] sm:$0xff] }
 0x2fa   : > { %10749 = vmatpush3.msra.mxu1 %v13533_v37  ;;  %10756 = vmatpush3.msra.mxu0 %v13632_v56  ;;  %v14006_v37 = vpop.permute.xlu0 %7509  ;;  %v14012_v56 = vpop.permute.xlu1 %7587 }
 0x2fb   : > { %10750 = vmatprep.subr.mxu1 %v14975_v16  ;;  %10757 = vmatprep.subr.mxu0 %v14975_v16 }
 0x2fc   : > { %10751 = vmatpush3.msra.mxu1 %v13592_v51  ;;  %10758 = vmatpush3.msra.mxu0 %v13672_v53  ;;  %v15053_v51 = vld [vmem:[#allocation12_spill] sm:$0xff]  ;;  %v15054_v53 = vld [vmem:[#allocation21_spill] sm:$0xff] }
 0x2fd   : > { %10759 = vmatprep.mubr.msk.f32.mxu0 %vm11425_vm6, %v14975_v16  ;;  %10769 = vmatprep.subr.mxu0 %v14975_v16 }
 0x2fe   : > { %10752 = vmatprep.mubr.msk.f32.mxu1 %vm11425_vm6, %v14975_v16  ;;  %10762 = vmatprep.subr.mxu1 %v14975_v16  ;;  %v14028_v27 = vpop.permute.xlu0 %7507  ;;  %v14034_v47 = vpop.permute.xlu1 %7749 }
 0x2ff   : > { %10753 = vmatmul.mubr.msk.f32.vlgmr.msra.gmra.mxu1 %vm3304_vm10, %v13842_v25  ;;  %10760 = vmatmul.mubr.msk.f32.vlgmr.msra.gmra.mxu0 %vm3304_vm10, %v5666_v60  ;;  %v15073_v60 = vld [vmem:[#allocation36_spill] sm:$0xff] }
 0x300   : > { %10763 = vmatpush3.msra.mxu1 %v13636_v22  ;;  %10770 = vmatpush3.msra.mxu0 %v15053_v51 }
 0x301   : > { %10764 = vmatprep.subr.mxu1 %v14975_v16  ;;  %10771 = vmatprep.subr.mxu0 %v14975_v16 }
 0x302   : > { %10765 = vmatpush3.msra.mxu1 %v13684_v57  ;;  %10772 = vmatpush3.msra.mxu0 %v15054_v53  ;;  %v15055_v57 = vld [vmem:[#allocation14_spill] sm:$0xff]  ;;  %v14048_v25 = vpop.permute.xlu0 %7505  ;;  %v14054_v26 = vpop.permute.xlu1 %7747 }
 0x303   : > { %10773 = vmatprep.mubr.msk.f32.mxu0 %vm11425_vm6, %v14975_v16  ;;  %10783 = vmatprep.subr.mxu0 %v14975_v16 }
 0x304   : > { %10766 = vmatprep.mubr.msk.f32.mxu1 %vm11425_vm6, %v14975_v16  ;;  %10776 = vmatprep.subr.mxu1 %v14975_v16 }
 0x305   : > { %10767 = vmatmul.mubr.msk.f32.vlgmr.msra.gmra.mxu1 %vm3304_vm10, %v13887_v11  ;;  %10774 = vmatmul.mubr.msk.f32.vlgmr.msra.gmra.mxu0 %vm3304_vm10, %v13730_v32  ;;  %v15059_v32 = vld [vmem:[#allocation29_spill] sm:$0xff]  ;;  %v15062_v11 = vld [vmem:[#allocation42_spill] sm:$0xff] }
 0x306   : > { %10777 = vmatpush3.msra.mxu1 %v15055_v57  ;;  %10784 = vmatpush3.msra.mxu0 %v15056_v54  ;;  %v6306_v2 = vpop.permute.xlu1 %6305  ;;  %v15075_v57 = vld [vmem:[#allocation40_spill] sm:$0xff]  ;;  %v15076_v54 = vld [vmem:[#allocation37_spill] sm:$0xff] }
 0x307   : > { %10778 = vmatprep.subr.mxu1 %v14975_v16  ;;  %10785 = vmatprep.subr.mxu0 %v14975_v16 }
 0x308   : > { %10779 = vmatpush3.msra.mxu1 %v15057_v20  ;;  %10786 = vmatpush3.msra.mxu0 %v15058_v55  ;;  %v15077_v20 = vld [vmem:[#allocation44_spill] sm:$0xff]  ;;  %v15079_v55 = vld [vmem:[#allocation49_spill] sm:$0xff] }
 0x309   : > { %v14023_v22 = vpop.f32.mrf.mxu1  ;;  %10787 = vmatprep.mubr.msk.f32.mxu0 %vm11425_vm6, %v14975_v16  ;;  %10797 = vmatprep.subr.mxu0 %v14975_v16 }
 0x30a   : > { %10780 = vmatprep.mubr.msk.f32.mxu1 %vm11425_vm6, %v14975_v16  ;;  %10790 = vmatprep.subr.mxu1 %v14975_v16  ;;  %v14091_v36 = vpop.permute.xlu1 %7745 }
 0x30b   : > { %v10600_v19 = vpop.f32.mrf.mxu1  ;;  %10781 = vmatmul.mubr.msk.f32.vlgmr.msra.gmra.mxu1 %vm3304_vm10, %v13742_v28  ;;  %10788 = vmatmul.mubr.msk.f32.vlgmr.msra.gmra.mxu0 %vm3304_vm10, %v13788_v10  ;;  %v15063_v28 = vld [vmem:[#allocation39_spill] sm:$0xff]  ;;  %v14068_v10 = vpop.permute.xlu0 %7669 }
 0x30c   : > { %10791 = vmatpush3.msra.mxu1 %v15059_v32  ;;  %10798 = vmatpush3.msra.mxu0 %v15060_v45  ;;  %v15080_v32 = vld [vmem:[#allocation45_spill] sm:$0xff] }
 0x30d   : > { %10792 = vmatprep.subr.mxu1 %v14975_v16  ;;  %10799 = vmatprep.subr.mxu0 %v14975_v16 }
 0x30e   : > { %10793 = vmatpush3.msra.mxu1 %v15061_v13  ;;  %10800 = vmatpush3.msra.mxu0 %v15062_v11  ;;  %v14111_v48 = vpop.permute.xlu1 %7909  ;;  %v15081_v13 = vld [vmem:[#allocation52_spill] sm:$0xff]  ;;  %v15083_v11 = vld [vmem:[#allocation18_spill] sm:$0xff] }
 0x30f   : > { %10801 = vmatprep.mubr.msk.f32.mxu0 %vm11425_vm6, %v14975_v16  ;;  %10811 = vmatprep.subr.mxu0 %v14975_v16 }
 0x310   : > { %10794 = vmatprep.mubr.msk.f32.mxu1 %vm11425_vm6, %v14975_v16  ;;  %10804 = vmatprep.subr.mxu1 %v14975_v16 }
 0x311   : > { %10795 = vmatmul.mubr.msk.f32.vlgmr.msra.gmra.mxu1 %vm3304_vm10, %v13800_v8  ;;  %10802 = vmatmul.mubr.msk.f32.vlgmr.msra.gmra.mxu0 %vm3304_vm10, %v13850_v40  ;;  %v15067_v8 = vld [vmem:[#allocation48_spill] sm:$0xff]  ;;  %v14085_v40 = vpop.permute.xlu0 %7667 }
 0x312   : > { %10805 = vmatpush3.msra.mxu1 %v15063_v28  ;;  %10812 = vmatpush3.msra.mxu0 %v15064_v41  ;;  %v14133_v19 = vpop.permute.xlu1 %7907  ;;  %v15084_v41 = vld [vmem:[#allocation7_spill] sm:$0xff] }
 0x313   : > { %10806 = vmatprep.subr.mxu1 %v14975_v16  ;;  %10813 = vmatprep.subr.mxu0 %v14975_v16 }
 0x314   : > { %10807 = vmatpush3.msra.mxu1 %v15065_v4  ;;  %10814 = vmatpush3.msra.mxu0 %v15066_v15  ;;  %v15086_v4 = vld [vmem:[#allocation30_spill] sm:$0xff] }
 0x315   : > { %10815 = vmatprep.mubr.msk.f32.mxu0 %vm11425_vm6, %v14975_v16  ;;  %10825 = vmatprep.subr.mxu0 %v14975_v16 }
 0x316   : > { %10808 = vmatprep.mubr.msk.f32.mxu1 %vm11425_vm6, %v14975_v16  ;;  %10818 = vmatprep.subr.mxu1 %v14975_v16  ;;  %v6946_v45 = vpop.permute.xlu1 %6945 }
 0x317   : > { %10809 = vmatmul.mubr.msk.f32.vlgmr.msra.gmra.mxu1 %vm3304_vm10, %v13848_v50  ;;  %10816 = vmatmul.mubr.msk.f32.vlgmr.msra.gmra.mxu0 %vm3304_vm10, %v6306_v2  ;;  %v14105_v50 = vpop.permute.xlu0 %7665  ;;  %v15087_v2 = vld [vmem:[#allocation9_spill] sm:$0xff] }
 0x318   : > { %10819 = vmatpush3.msra.mxu1 %v15067_v8  ;;  %10826 = vmatpush3.msra.mxu0 %v15068_v9  ;;  %v15088_v8 = vld [vmem:[#allocation17_spill] sm:$0xff] }
 0x319   : > { %10820 = vmatprep.subr.mxu1 %v14975_v16  ;;  %10827 = vmatprep.subr.mxu0 %v14975_v16 }
 0x31a   : > { %10821 = vmatpush3.msra.mxu1 %v13692_v5  ;;  %10828 = vmatpush3.msra.mxu0 %v15069_v23  ;;  %v15070_v5 = vld [vmem:[#allocation16_spill] sm:$0xff]  ;;  %v14170_v28 = vpop.permute.xlu1 %7905 }
 0x31b   : > { %10829 = vmatprep.mubr.msk.f32.mxu0 %vm11425_vm6, %v14975_v16  ;;  %10839 = vmatprep.subr.mxu0 %v14975_v16  ;;  %v14127_v51 = vpop.permute.xlu0 %7829 }
 0x31c   : > { %10822 = vmatprep.mubr.msk.f32.mxu1 %vm11425_vm6, %v14975_v16  ;;  %10832 = vmatprep.subr.mxu1 %v14975_v16 }
 0x31d   : > { %10823 = vmatmul.mubr.msk.f32.vlgmr.msra.gmra.mxu1 %vm3304_vm10, %v13911_v35  ;;  %10830 = vmatmul.mubr.msk.f32.vlgmr.msra.gmra.mxu0 %vm3304_vm10, %v13738_v52  ;;  %v15074_v35 = vld [vmem:[#allocation31_spill] sm:$0xff] }
 0x31e   : > { %10833 = vmatpush3.msra.mxu1 %v15070_v5  ;;  %10840 = vmatpush3.msra.mxu0 %v15071_v42  ;;  %v14190_v15 = vpop.permute.xlu1 %8069  ;;  %v8682_v5 = vld [vmem:[%s14910_s6 + $0x58] sm:$0xff]  ;;  %v8681_v42 = vld [vmem:[%s14910_s6 + $0x50] sm:$0xff] }
 0x31f   : > { %10834 = vmatprep.subr.mxu1 %v14975_v16  ;;  %10841 = vmatprep.subr.mxu0 %v14975_v16 }
 0x320   : > { %10835 = vmatpush3.msra.mxu1 %v15072_v43  ;;  %10842 = vmatpush3.msra.mxu0 %v15073_v60 }
 0x321   : > { %10843 = vmatprep.mubr.msk.f32.mxu0 %vm11425_vm6, %v14975_v16  ;;  %10853 = vmatprep.subr.mxu0 %v14975_v16 }
 0x322   : > { %10836 = vmatprep.mubr.msk.f32.mxu1 %vm11425_vm6, %v14975_v16  ;;  %10846 = vmatprep.subr.mxu1 %v14975_v16 }
 0x323   : > { %10837 = vmatmul.mubr.msk.f32.vlgmr.msra.gmra.mxu1 %vm3304_vm10, %v13750_v3  ;;  %10844 = vmatmul.mubr.msk.f32.vlgmr.msra.gmra.mxu0 %vm3304_vm10, %v13796_v33  ;;  %v15078_v3 = vld [vmem:[#allocation41_spill] sm:$0xff]  ;;  %v14147_v33 = vpop.permute.xlu0 %7827 }
 0x324   : > { %v14119_v52 = vpop.f32.mrf.mxu0  ;;  %10847 = vmatpush3.msra.mxu1 %v15074_v35  ;;  %10854 = vmatpush3.msra.mxu0 %v15075_v57  ;;  %v8678_v35 = vld [vmem:[%s14910_s6 + $0x38] sm:$0xff]  ;;  %v8675_v57 = vld [vmem:[%s14910_s6 + $0x20] sm:$0xff] }
 0x325   : > { %10848 = vmatprep.subr.mxu1 %v14975_v16  ;;  %10855 = vmatprep.subr.mxu0 %v14975_v16 }
 0x326   : > { %v10593_v53 = vpop.f32.mrf.mxu0  ;;  %10849 = vmatpush3.msra.mxu1 %v15076_v54  ;;  %10856 = vmatpush3.msra.mxu0 %v15077_v20  ;;  %v8674_v54 = vld [vmem:[%s14910_s6 + $0x18] sm:$0xff] }
 0x327   : > { %10857 = vmatprep.mubr.msk.f32.mxu0 %vm11425_vm6, %v14975_v16  ;;  %10867 = vmatprep.subr.mxu0 %v14975_v16  ;;  %v8676_v53 = vld [vmem:[%s14910_s6 + $0x28] sm:$0xff] }
 0x328   : > { %10850 = vmatprep.mubr.msk.f32.mxu1 %vm11425_vm6, %v14975_v16  ;;  %10860 = vmatprep.subr.mxu1 %v14975_v16 }
 0x329   : > { %10851 = vmatmul.mubr.msk.f32.vlgmr.msra.gmra.mxu1 %vm3304_vm10, %v13807_v58  ;;  %10858 = vmatmul.mubr.msk.f32.vlgmr.msra.gmra.mxu0 %vm3304_vm10, %v13856_v49  ;;  %v15082_v49 = vld [vmem:[#allocation50_spill] sm:$0xff]  ;;  %v14164_v58 = vpop.permute.xlu0 %7825 }
 0x32a   : > { %10861 = vmatpush3.msra.mxu1 %v15078_v3  ;;  %10868 = vmatpush3.msra.mxu0 %v15079_v55  ;;  %v8672_v3 = vld [vmem:[%s14910_s6 + $0x8] sm:$0xff]  ;;  %v8671_v55 = vld [vmem:[%s14910_s6] sm:$0xff] }
 0x32b   : > { %10862 = vmatprep.subr.mxu1 %v14975_v16  ;;  %10869 = vmatprep.subr.mxu0 %v14975_v16 }
 0x32c   : > { %10863 = vmatpush3.msra.mxu1 %v15080_v32  ;;  %10870 = vmatpush3.msra.mxu0 %v15081_v13  ;;  %v15089_v13 = vld [vmem:[#allocation10_spill] sm:$0xff] }
 0x32d   : > { %10871 = vmatprep.mubr.msk.f32.mxu0 %vm11425_vm6, %v14975_v16  ;;  %10881 = vmatprep.subr.mxu0 %v14975_v16 }
 0x32e   : > { %10864 = vmatprep.mubr.msk.f32.mxu1 %vm11425_vm6, %v14975_v16  ;;  %10874 = vmatprep.subr.mxu1 %v14975_v16 }
 0x32f   : > { %10865 = vmatmul.mubr.msk.f32.vlgmr.msra.gmra.mxu1 %vm3304_vm10, %v13854_v6  ;;  %10872 = vmatmul.mubr.msk.f32.vlgmr.msra.gmra.mxu0 %vm3304_vm10, %v6946_v45  ;;  %v14184_v6 = vpop.permute.xlu0 %7989 }
 0x330   : > { %10875 = vmatpush3.msra.mxu1 %v15082_v49  ;;  %10882 = vmatpush3.msra.mxu0 %v15083_v11  ;;  %v15090_v49 = vld [vmem:[#allocation46_spill] sm:$0xff] }
 0x331   : > { %10876 = vmatprep.subr.mxu1 %v14975_v16  ;;  %10883 = vmatprep.subr.mxu0 %v14975_v16 }
 0x332   : > { %10877 = vmatpush3.msra.mxu1 %v13699_v30  ;;  %10884 = vmatpush3.msra.mxu0 %v15084_v41  ;;  %v15085_v30 = vld [vmem:[#allocation19_spill] sm:$0xff] }
 0x333   : > { %10885 = vmatprep.mubr.msk.f32.mxu0 %vm11425_vm6, %v14975_v16  ;;  %10895 = vmatprep.subr.mxu0 %v14975_v16 }
 0x334   : > { %10878 = vmatprep.mubr.msk.f32.mxu1 %vm11425_vm6, %v14975_v16  ;;  %10888 = vmatprep.subr.mxu1 %v14975_v16 }
 0x335   : > { %10879 = vmatmul.mubr.msk.f32.vlgmr.msra.gmra.mxu1 %vm3304_vm10, %v13928_v12  ;;  %10886 = vmatmul.mubr.msk.f32.vlgmr.msra.gmra.mxu0 %vm3304_vm10, %v13746_v44  ;;  %v14204_v44 = vpop.permute.xlu0 %7987 }
 0x336   : > { %10889 = vmatpush3.msra.mxu1 %v15085_v30  ;;  %10896 = vmatpush3.msra.mxu0 %v15086_v4 }
 0x337   : > { %10890 = vmatprep.subr.mxu1 %v14975_v16  ;;  %10897 = vmatprep.subr.mxu0 %v14975_v16 }
 0x338   : > { %10891 = vmatpush3.msra.mxu1 %v15087_v2  ;;  %10898 = vmatpush3.msra.mxu0 %v13877_v17  ;;  %v8068_v17 = vpop.permute.xlu1 %8067 }
 0x339   : > { %10899 = vmatprep.mubr.msk.f32.mxu0 %vm11425_vm6, %v14975_v16  ;;  %10909 = vmatprep.subr.mxu0 %v14975_v16 }
 0x33a   : > { %10892 = vmatprep.mubr.msk.f32.mxu1 %vm11425_vm6, %v14975_v16  ;;  %10902 = vmatprep.subr.mxu1 %v14975_v16 }
 0x33b   : > { %10893 = vmatmul.mubr.msk.f32.vlgmr.msra.gmra.mxu1 %vm3304_vm10, %v13757_v0  ;;  %10900 = vmatmul.mubr.msk.f32.vlgmr.msra.gmra.mxu0 %vm3304_vm10, %v13892_v31  ;;  %v7986_v0 = vpop.permute.xlu0 %7985 }
 0x33c   : > { %10903 = vmatpush3.msra.mxu1 %v13949_v62  ;;  %10910 = vmatpush3.msra.mxu0 %v13905_v61  ;;  %v7586_v31 = vpop.permute.xlu1 %7585 }
 0x33d   : > { %10904 = vmatprep.subr.mxu1 %v14975_v16  ;;  %10911 = vmatprep.subr.mxu0 %v14975_v16 }
 0x33e   : > { %10905 = vmatpush3.msra.mxu1 %v13969_v63  ;;  %10912 = vmatpush3.msra.mxu0 %v13936_v1 }
 0x33f   : > { %10913 = vmatprep.mubr.msk.f32.mxu0 %vm11425_vm6, %v14975_v16  ;;  %10923 = vmatprep.subr.mxu0 %v14975_v16  ;;  %v8150_v61 = vpop.permute.xlu0 %8149 }
 0x340   : > { %10906 = vmatprep.mubr.msk.f32.mxu1 %vm11425_vm6, %v14975_v16  ;;  %10916 = vmatprep.subr.mxu1 %v14975_v16  ;;  %v8066_v12 = vpop.permute.xlu1 %8065 }
 0x341   : > { %10907 = vmatmul.mubr.msk.f32.vlgmr.msra.gmra.mxu1 %vm3304_vm10, %v13989_v7  ;;  %10914 = vmatmul.mubr.msk.f32.vlgmr.msra.gmra.mxu0 %vm3304_vm10, %v13955_v39 }
 0x342   : > { %10917 = vmatpush3.msra.mxu1 %v14006_v37  ;;  %10924 = vmatpush3.msra.mxu0 %v13975_v21 }
 0x343   : > { %10918 = vmatprep.subr.mxu1 %v14975_v16  ;;  %10925 = vmatprep.subr.mxu0 %v14975_v16  ;;  %v8148_v39 = vpop.permute.xlu0 %8147 }
 0x344   : > { %10919 = vmatpush3.msra.mxu1 %v14028_v27  ;;  %10926 = vmatpush3.msra.mxu0 %v14012_v56  ;;  %v8230_v63 = vpop.permute.xlu1 %8229 }
 0x345   : > { %10927 = vmatprep.mubr.msk.f32.mxu0 %vm11425_vm6, %v14975_v16  ;;  %10937 = vmatprep.subr.mxu0 %v14975_v16 }
 0x346   : > { %10920 = vmatprep.mubr.msk.f32.mxu1 %vm11425_vm6, %v14975_v16  ;;  %10930 = vmatprep.subr.mxu1 %v14975_v16 }
 0x347   : > { %10921 = vmatmul.mubr.msk.f32.vlgmr.msra.gmra.mxu1 %vm3304_vm10, %v14048_v25  ;;  %10928 = vmatmul.mubr.msk.f32.vlgmr.msra.gmra.mxu0 %vm3304_vm10, %v7586_v31  ;;  %v8146_v37 = vpop.permute.xlu0 %8145 }
 0x348   : > { %10931 = vmatpush3.msra.mxu1 %v14068_v10  ;;  %10938 = vmatpush3.msra.mxu0 %v14034_v47  ;;  %v8228_v56 = vpop.permute.xlu1 %8227  ;;  %v8686_v47 = vld [vmem:[%s14910_s6 + $0x78] sm:$0xff] }
 0x349   : > { %10932 = vmatprep.subr.mxu1 %v14975_v16  ;;  %10939 = vmatprep.subr.mxu0 %v14975_v16 }
 0x34a   : > { %10933 = vmatpush3.msra.mxu1 %v14085_v40  ;;  %10940 = vmatpush3.msra.mxu0 %v14054_v26  ;;  %v8685_v26 = vld [vmem:[%s14910_s6 + $0x70] sm:$0xff]  ;;  %v8684_v40 = vld [vmem:[%s14910_s6 + $0x68] sm:$0xff] }
 0x34b   : > { %10941 = vmatprep.mubr.msk.f32.mxu0 %vm11425_vm6, %v14975_v16  ;;  %v14244_v1 = vpop.f32.mrf.mxu0  ;;  %10951 = vmatprep.subr.mxu0 %v14975_v16  ;;  %v8310_v27 = vpop.permute.xlu0 %8309 }
 0x34c   : > { %10934 = vmatprep.mubr.msk.f32.mxu1 %vm11425_vm6, %v14975_v16  ;;  %10944 = vmatprep.subr.mxu1 %v14975_v16  ;;  %v8226_v25 = vpop.permute.xlu1 %8225 }
 0x34d   : > { %10935 = vmatmul.mubr.msk.f32.vlgmr.msra.gmra.mxu1 %vm3304_vm10, %v14105_v50  ;;  %v10607_v62 = vpop.f32.mrf.mxu0  ;;  %10942 = vmatmul.mubr.msk.f32.vlgmr.msra.gmra.mxu0 %vm3304_vm10, %v14091_v36  ;;  %v8683_v36 = vld [vmem:[%s14910_s6 + $0x60] sm:$0xff] }
 0x34e   : > { %10945 = vmatpush3.msra.mxu1 %v14127_v51  ;;  %10952 = vmatpush3.msra.mxu0 %v14111_v48  ;;  %v8679_v48 = vld [vmem:[%s14910_s6 + $0x40] sm:$0xff]  ;;  %v8677_v51 = vld [vmem:[%s14910_s6 + $0x30] sm:$0xff] }
 0x34f   : > { %10946 = vmatprep.subr.mxu1 %v14975_v16  ;;  %10953 = vmatprep.subr.mxu0 %v14975_v16  ;;  %v8308_v10 = vpop.permute.xlu0 %8307 }
 0x350   : > { %10947 = vmatpush3.msra.mxu1 %v14147_v33  ;;  %10954 = vmatpush3.msra.mxu0 %v14133_v19  ;;  %v4049_v21 = vpop.f32.mrf.mxu1  ;;  %v8306_v9 = vpop.permute.xlu1 %8305  ;;  %v8673_v19 = vld [vmem:[%s14910_s6 + $0x10] sm:$0xff] }
 0x351   : > { %10955 = vmatprep.mubr.msk.f32.mxu0 %vm11425_vm6, %v14975_v16  ;;  %10965 = vmatprep.subr.mxu0 %v14975_v16 }
 0x352   : > { %10948 = vmatprep.mubr.msk.f32.mxu1 %vm11425_vm6, %v14975_v16  ;;  %10958 = vmatprep.subr.mxu1 %v14975_v16  ;;  %v10614_v7 = vpop.f32.mrf.mxu1 }
 0x353   : > { %10949 = vmatmul.mubr.msk.f32.vlgmr.msra.gmra.mxu1 %vm3304_vm10, %v14164_v58  ;;  %10956 = vmatmul.mubr.msk.f32.vlgmr.msra.gmra.mxu0 %vm3304_vm10, %v14170_v28 }
 0x354   : > { %10959 = vmatpush3.msra.mxu1 %v14184_v6  ;;  %10966 = vmatpush3.msra.mxu0 %v14190_v15 }
 0x355   : > { %10960 = vmatprep.subr.mxu1 %v14975_v16  ;;  %10967 = vmatprep.subr.mxu0 %v14975_v16 }
 0x356   : > { %10961 = vmatpush3.msra.mxu1 %v14204_v44  ;;  %10968 = vmatpush3.msra.mxu0 %v8068_v17 }
 0x357   : > { %10969 = vmatprep.mubr.msk.f32.mxu0 %vm11425_vm6, %v14975_v16  ;;  %10979 = vmatprep.subr.mxu0 %v14975_v16 }
 0x358   : > { %10962 = vmatprep.mubr.msk.f32.mxu1 %vm11425_vm6, %v14975_v16  ;;  %10972 = vmatprep.subr.mxu1 %v14975_v16 }
 0x359   : > { %10963 = vmatmul.mubr.msk.f32.vlgmr.msra.gmra.mxu1 %vm3304_vm10, %v7986_v0  ;;  %10970 = vmatmul.mubr.msk.f32.vlgmr.msra.gmra.mxu0 %vm3304_vm10, %v8066_v12 }
 0x35a   : > { %10973 = vmatpush3.msra.mxu1 %v8150_v61  ;;  %10980 = vmatpush3.msra.mxu0 %v8230_v63 }
 0x35b   : > { %10974 = vmatprep.subr.mxu1 %v14975_v16  ;;  %10981 = vmatprep.subr.mxu0 %v14975_v16 }
 0x35c   : > { %10975 = vmatpush3.msra.mxu1 %v8148_v39  ;;  %10982 = vmatpush3.msra.mxu0 %v8228_v56 }
 0x35d   : > { %10983 = vmatprep.mubr.msk.f32.mxu0 %vm11425_vm6, %v14975_v16  ;;  %10993 = vmatprep.subr.mxu0 %v8686_v47 }
 0x35e   : > { %10976 = vmatprep.mubr.msk.f32.mxu1 %vm11425_vm6, %v14975_v16  ;;  %10986 = vmatprep.subr.mxu1 %v14975_v16 }
 0x35f   : > { %10977 = vmatmul.mubr.msk.f32.vlgmr.msra.gmra.mxu1 %vm3304_vm10, %v8146_v37  ;;  %10984 = vmatmul.mubr.msk.f32.vlgmr.msra.gmra.mxu0 %vm3304_vm10, %v8226_v25 }
 0x360   : > { %10987 = vmatpush3.msra.mxu1 %v8310_v27  ;;  %10994 = vmatpush3.msra.mxu0 %v8686_v47 }
 0x361   : > { %11025 = vmatprep.mubr.f32.mxu0 %v15088_v8  ;;  %10995 = vmatprep.subr.mxu0 %v8685_v26 }
 0x362   : > { %10988 = vmatprep.subr.mxu1 %v14975_v16  ;;  %10996 = vmatpush3.msra.mxu0 %v8685_v26 }
 0x363   : > { %10989 = vmatpush3.msra.mxu1 %v8308_v10  ;;  %v4131_v23 = vpop.f32.mrf.mxu0  ;;  %10997 = vmatprep.subr.mxu0 %v8684_v40 }
 0x364   : > { %10990 = vmatprep.mubr.msk.f32.mxu1 %vm11425_vm6, %v14975_v16  ;;  %10998 = vmatpush3.msra.mxu0 %v8684_v40  ;;  %v8680_v16 = vld [vmem:[%s14910_s6 + $0x48] sm:$0xff]  ;;  %vm8609_vm6 = vcmask 64512  }
 0x365   : > { %10991 = vmatmul.mubr.msk.f32.vlgmr.msra.gmra.mxu1 %vm3304_vm10, %v8306_v9  ;;  %v10621_v50 = vpop.f32.mrf.mxu0  ;;  %10999 = vmatprep.subr.mxu0 %v8683_v36 }
 0x366   : > { %8393 = vrot.lane.b32.xlu0 %v14244_v1, %s11431_s14  ;;  %11000 = vmatpush3.msra.mxu0 %v8683_v36 }
 0x367   : > { %8395 = vrot.lane.b32.xlu1 %v4049_v21, %s11431_s14  ;;  %11001 = vmatprep.subr.mxu0 %v8682_v5 }
 0x368   : > { %11002 = vmatpush3.msra.mxu0 %v8682_v5  ;;  %v4213_v43 = vpop.f32.mrf.mxu1 }
 0x369   : > { %11003 = vmatprep.subr.mxu0 %v8681_v42 }
 0x36a   : > { %8399 = vrot.lane.b32.xlu0 %v4213_v43, %s11431_s14  ;;  %11004 = vmatpush3.msra.mxu0 %v8681_v42  ;;  %v10628_v60 = vpop.f32.mrf.mxu1 }
 0x36b   : > { %8397 = vrot.lane.b32.xlu1 %v4131_v23, %s11431_s14  ;;  %11005 = vmatprep.subr.mxu0 %v8680_v16 }
 0x36c   : > { %11006 = vmatpush3.msra.mxu0 %v8680_v16 }
 0x36d   : > { %11007 = vmatprep.subr.mxu0 %v8679_v48 }
 0x36e   : > { %11008 = vmatpush3.msra.mxu0 %v8679_v48 }
 0x36f   : > { %11009 = vmatprep.subr.mxu0 %v8678_v35 }
 0x370   : > { %11010 = vmatpush3.msra.mxu0 %v8678_v35 }
 0x371   : > { %11011 = vmatprep.subr.mxu0 %v8677_v51 }
 0x372   : > { %11012 = vmatpush3.msra.mxu0 %v8677_v51 }
 0x373   : > { %11013 = vmatprep.subr.mxu0 %v8676_v53 }
 0x374   : > { %11014 = vmatpush3.msra.mxu0 %v8676_v53 }
 0x375   : > { %11015 = vmatprep.subr.mxu0 %v8675_v57 }
 0x376   : > { %11016 = vmatpush3.msra.mxu0 %v8675_v57 }
 0x377   : > { %v4295_v20 = vpop.f32.mrf.mxu0  ;;  %11017 = vmatprep.subr.mxu0 %v8674_v54 }
 0x378   : > { %8401 = vrot.lane.b32.xlu1 %v4295_v20, %s11431_s14  ;;  %11018 = vmatpush3.msra.mxu0 %v8674_v54 }
 0x379   : > { %v10635_v33 = vpop.f32.mrf.mxu0  ;;  %11019 = vmatprep.subr.mxu0 %v8673_v19 }
 0x37a   : > { %11020 = vmatpush3.msra.mxu0 %v8673_v19 }
 0x37b   : > { %11021 = vmatprep.subr.mxu0 %v8672_v3 }
 0x37c   : > { %11022 = vmatpush3.msra.mxu0 %v8672_v3  ;;  %v4377_v32 = vpop.f32.mrf.mxu1 }
 0x37d   : > { %11023 = vmatprep.subr.mxu0 %v8671_v55  ;;  %8403 = vrot.lane.b32.xlu0 %v4377_v32, %s11431_s14 }
 0x37e   : > { %11024 = vmatpush3.msra.mxu0 %v8671_v55  ;;  %v10642_v45 = vpop.f32.mrf.mxu1 }
 0x37f   : > { %11026 = vmatmul.mubr.f32.vlgmr.msra.gmra.mxu0 %v13062_v14 }
 0x380   : > { %11028 = vmatprep.mubr.f32.mxu0 %v13240_v24 }
 0x383   : > { %11029 = vmatmul.mubr.f32.gmra.mxu0 %v13085_v59 }
 0x384   : > { %11031 = vmatprep.mubr.f32.mxu0 %v13449_v18 }
 0x387   : > { %11032 = vmatmul.mubr.f32.gmra.mxu0 %v15089_v13 }
 0x388   : > { %11034 = vmatprep.mubr.f32.mxu0 %v15090_v49 }
 0x38b   : > { %11035 = vmatmul.mubr.f32.gmra.mxu0 %v13539_v29 }
 0x390   : > { %v4541_v58 = vpop.f32.mrf.mxu1 }
 0x391   : > { %8407 = vrot.lane.b32.xlu0 %v4541_v58, %s11431_s14 }
 0x392   : > { %v10656_v11 = vpop.f32.mrf.mxu1 }
 0x394   : > { %v4701_v28 = vpop.f32.mrf.mxu1 }
 0x396   : > { %v10670_v14 = vpop.f32.mrf.mxu1 }
 0x397   : > { %v4459_v41 = vpop.f32.mrf.mxu0 }
 0x398   : > { %8405 = vrot.lane.b32.xlu1 %v4459_v41, %s11431_s14 }
 0x399   : > { %v10649_v24 = vpop.f32.mrf.mxu0 }
 0x39a   : > { %v4861_v6 = vpop.f32.mrf.mxu1 }
 0x39b   : > { %v4621_v30 = vpop.f32.mrf.mxu0 }
 0x39c   : > { %8425 = vrot.lane.b32.xlu0 %v4621_v30, %s11430_s26  ;;  %8427 = vrot.lane.b32.xlu1 %v4701_v28, %s11430_s26  ;;  %v10684_v2 = vpop.f32.mrf.mxu1 }
 0x39d   : > { %v10663_v59 = vpop.f32.mrf.mxu0 }
 0x39f   : > { %v4781_v18 = vpop.f32.mrf.mxu0 }
 0x3a0   : > { %8429 = vrot.lane.b32.xlu1 %v4781_v18, %s11430_s26  ;;  %8431 = vrot.lane.b32.xlu0 %v4861_v6, %s11430_s26  ;;  %v9785_v18 = vld [vmem:[%s14911_s7 + $0x78] sm:$0xff] }
 0x3a1   : > { %v10677_v29 = vpop.f32.mrf.mxu0  ;;  %11037 = vmatprep.subr.mxu1 %v9785_v18 }
 0x3a2   : > { %v9784_v29 = vld [vmem:[%s14911_s7 + $0x70] sm:$0xff]  ;;  %11038 = vmatpush3.msra.mxu1 %v9785_v18 }
 0x3a3   : > { %v4941_v4 = vpop.f32.mrf.mxu0  ;;  %11039 = vmatprep.subr.mxu1 %v9784_v29 }
 0x3a4   : > { %8433 = vrot.lane.b32.xlu1 %v4941_v4, %s11430_s26  ;;  %11040 = vmatpush3.msra.mxu1 %v9784_v29 }
 0x3a5   : > { %v10691_v15 = vpop.f32.mrf.mxu0 }
 0x3a6   : > { %v5021_v44 = vpop.f32.mrf.mxu1 }
 0x3a7   : > { %v5101_v17 = vpop.f32.mrf.mxu0  ;;  %8435 = vrot.lane.b32.xlu0 %v5021_v44, %s11430_s26 }
 0x3a8   : > { %v10698_v0 = vpop.f32.mrf.mxu1  ;;  %8437 = vrot.lane.b32.xlu1 %v5101_v17, %s11430_s26  ;;  %v9783_v17 = vld [vmem:[%s14911_s7 + $0x68] sm:$0xff] }
 0x3a9   : > { %v10705_v31 = vpop.f32.mrf.mxu0  ;;  %v9782_v0 = vld [vmem:[%s14911_s7 + $0x60] sm:$0xff]  ;;  %11041 = vmatprep.subr.mxu1 %v9783_v17 }
 0x3aa   : > { %11042 = vmatpush3.msra.mxu1 %v9783_v17 }
 0x3ab   : > { %11043 = vmatprep.subr.mxu1 %v9782_v0 }
 0x3ac   : > { %11044 = vmatpush3.msra.mxu1 %v9782_v0 }
 0x3ad   : > { %v5181_v61 = vpop.f32.mrf.mxu1  ;;  %v5261_v12 = vpop.f32.mrf.mxu0 }
 0x3ae   : > { %8439 = vrot.lane.b32.xlu0 %v5181_v61, %s11430_s26  ;;  %s11433_s26 = smov 40  }
 0x3af   : > { %v10712_v1 = vpop.f32.mrf.mxu1  ;;  %v10719_v62 = vpop.f32.mrf.mxu0 }
 0x3b2   : > { %8457 = vrot.lane.b32.xlu0 %v5261_v12, %s11432_s16 }
 0x3b3   : > { %v5341_v39 = vpop.f32.mrf.mxu1  ;;  %v5421_v63 = vpop.f32.mrf.mxu0 }
 0x3b4   : > { %8459 = vrot.lane.b32.xlu1 %v5341_v39, %s11432_s16  ;;  %v9781_v39 = vld [vmem:[%s14911_s7 + $0x58] sm:$0xff] }
 0x3b5   : > { %v10726_v21 = vpop.f32.mrf.mxu1  ;;  %v10733_v7 = vpop.f32.mrf.mxu0  ;;  %11045 = vmatprep.subr.mxu1 %v9781_v39 }
 0x3b6   : > { %11046 = vmatpush3.msra.mxu1 %v9781_v39 }
 0x3b8   : > { %8461 = vrot.lane.b32.xlu1 %v5421_v63, %s11432_s16  ;;  %v9780_v63 = vld [vmem:[%s14911_s7 + $0x50] sm:$0xff] }
 0x3b9   : > { %v5501_v37 = vpop.f32.mrf.mxu1  ;;  %v5581_v56 = vpop.f32.mrf.mxu0  ;;  %11047 = vmatprep.subr.mxu1 %v9780_v63 }
 0x3ba   : > { %8463 = vrot.lane.b32.xlu0 %v5501_v37, %s11432_s16  ;;  %11048 = vmatpush3.msra.mxu1 %v9780_v63 }
 0x3bb   : > { %v10740_v27 = vpop.f32.mrf.mxu1  ;;  %v10747_v47 = vpop.f32.mrf.mxu0 }
 0x3bc   : > { %8465 = vrot.lane.b32.xlu1 %v5581_v56, %s11432_s16 }
 0x3bf   : > { %v5661_v25 = vpop.f32.mrf.mxu1  ;;  %v5741_v26 = vpop.f32.mrf.mxu0 }
 0x3c0   : > { %8467 = vrot.lane.b32.xlu0 %v5661_v25, %s11432_s16  ;;  %8469 = vrot.lane.b32.xlu1 %v5741_v26, %s11432_s16 }
 0x3c1   : > { %v10754_v10 = vpop.f32.mrf.mxu1  ;;  %v10761_v8 = vpop.f32.mrf.mxu0 }
 0x3c5   : > { %v5821_v40 = vpop.f32.mrf.mxu1  ;;  %v5901_v9 = vpop.f32.mrf.mxu0 }
 0x3c6   : > { %8471 = vrot.lane.b32.xlu0 %v5821_v40, %s11432_s16  ;;  %v9779_v40 = vld [vmem:[%s14911_s7 + $0x48] sm:$0xff] }
 0x3c7   : > { %v10768_v36 = vpop.f32.mrf.mxu1  ;;  %v10775_v23 = vpop.f32.mrf.mxu0  ;;  %11049 = vmatprep.subr.mxu1 %v9779_v40 }
 0x3c8   : > { %11050 = vmatpush3.msra.mxu1 %v9779_v40 }
 0x3cb   : > { %v5981_v5 = vpop.f32.mrf.mxu1  ;;  %v6061_v50 = vpop.f32.mrf.mxu0 }
 0x3cc   : > { %8491 = vrot.lane.b32.xlu0 %v5981_v5, %s11428_s22  ;;  %8493 = vrot.lane.b32.xlu1 %v6061_v50, %s11428_s22  ;;  %v15091_v50 = vld [vmem:[#allocation5_spill] sm:$0xff] }
 0x3cd   : > { %v10782_v42 = vpop.f32.mrf.mxu1  ;;  %v10789_v16 = vpop.f32.mrf.mxu0 }
 0x3d0   : > { %8489 = vrot.lane.b32.xlu0 %v5901_v9, %s11428_s22  ;;  %v9778_v9 = vld [vmem:[%s14911_s7 + $0x40] sm:$0xff] }
 0x3d1   : > { %v6141_v43 = vpop.f32.mrf.mxu1  ;;  %v6221_v48 = vpop.f32.mrf.mxu0  ;;  %11051 = vmatprep.subr.mxu1 %v9778_v9 }
 0x3d2   : > { %8497 = vrot.lane.b32.xlu1 %v6221_v48, %s11428_s22  ;;  %11052 = vmatpush3.msra.mxu1 %v9778_v9  ;;  %v15092_v48 = vld [vmem:[#allocation6_spill] sm:$0xff] }
 0x3d3   : > { %v10796_v60 = vpop.f32.mrf.mxu1  ;;  %v10803_v35 = vpop.f32.mrf.mxu0 }
 0x3d4   : > { %8495 = vrot.lane.b32.xlu0 %v6141_v43, %s11428_s22 }
 0x3d7   : > { %v6301_v51 = vpop.f32.mrf.mxu1  ;;  %v6381_v53 = vpop.f32.mrf.mxu0 }
 0x3d8   : > { %8499 = vrot.lane.b32.xlu0 %v6301_v51, %s11428_s22  ;;  %v8394_v15 = vpop.permute.xlu0 %8393 }
 0x3d9   : > { %v10810_v57 = vpop.f32.mrf.mxu1  ;;  %v10817_v54 = vpop.f32.mrf.mxu0  ;;  %v8610_v42 = vsel %vm8609_vm6, %v15091_v50, %v8394_v15 }
 0x3da   : > { %v8396_v12 = vpop.permute.xlu1 %8395 }
 0x3db   : > { %v8611_v60 = vsel %vm8609_vm6, %v15092_v48, %v8396_v12 }
 0x3dc   : > { %v8400_v62 = vpop.permute.xlu0 %8399 }
 0x3dd   : > { %v6461_v19 = vpop.f32.mrf.mxu1  ;;  %v6541_v20 = vpop.f32.mrf.mxu0 }
 0x3de   : > { %8503 = vrot.lane.b32.xlu1 %v6461_v19, %s11428_s22  ;;  %v8398_v7 = vpop.permute.xlu1 %8397 }
 0x3df   : > { %v10824_v3 = vpop.f32.mrf.mxu1  ;;  %v10831_v33 = vpop.f32.mrf.mxu0 }
 0x3e2   : > { %8501 = vrot.lane.b32.xlu1 %v6381_v53, %s11428_s22  ;;  %s371_s22 = sand.u32 1, %s11401_s10  }
 0x3e3   : > { %v6621_v55 = vpop.f32.mrf.mxu1  ;;  %v6701_v32 = vpop.f32.mrf.mxu0  ;;  %s9769_s21 = sshll.u32 %s371_s22, 6 }
 0x3e4   : > { %8523 = vrot.lane.b32.xlu0 %v6621_v55, %s11433_s26  ;;  %v8613_v55 = vsel %vm8609_vm6, %v13852_v38, %v8400_v62  ;;  %s14828_s27 = scalar_lea.vmem [#allocation2], %s9769_s21 }
 0x3e5   : > { %v10838_v45 = vpop.f32.mrf.mxu1  ;;  %v10845_v13 = vpop.f32.mrf.mxu0 }
 0x3e6   : > { %8521 = vrot.lane.b32.xlu1 %v6541_v20, %s11433_s26  ;;  %v15093_v20 = vld [vmem:[#allocation53_spill] sm:$0xff] }
 0x3e7   : > { %v8612_v3 = vsel %vm8609_vm6, %v15093_v20, %v8398_v7 }
 0x3e9   : > { %v6781_v49 = vpop.f32.mrf.mxu1  ;;  %v6861_v58 = vpop.f32.mrf.mxu0 }
 0x3ea   : > { %8527 = vrot.lane.b32.xlu0 %v6781_v49, %s11433_s26  ;;  %8525 = vrot.lane.b32.xlu1 %v6701_v32, %s11433_s26  ;;  %v8402_v25 = vpop.permute.xlu1 %8401 }
 0x3eb   : > { %v10852_v11 = vpop.f32.mrf.mxu1  ;;  %v10859_v28 = vpop.f32.mrf.mxu0 }
 0x3ee   : > { %8529 = vrot.lane.b32.xlu1 %v6861_v58, %s11433_s26 }
 0x3ef   : > { %v6941_v41 = vpop.f32.mrf.mxu1  ;;  %v7021_v14 = vpop.f32.mrf.mxu0 }
 0x3f0   : > { %8531 = vrot.lane.b32.xlu0 %v6941_v41, %s11433_s26  ;;  %v8404_v27 = vpop.permute.xlu0 %8403  ;;  %v8614_v41 = vsel %vm8609_vm6, %v13932_v34, %v8402_v25 }
 0x3f1   : > { %v10866_v24 = vpop.f32.mrf.mxu1  ;;  %v10873_v30 = vpop.f32.mrf.mxu0 }
 0x3f4   : > { %8533 = vrot.lane.b32.xlu0 %v7021_v14, %s11433_s26 }
 0x3f5   : > { %v7101_v59 = vpop.f32.mrf.mxu1  ;;  %v7181_v6 = vpop.f32.mrf.mxu0 }
 0x3f6   : > { %8535 = vrot.lane.b32.xlu1 %v7101_v59, %s11433_s26  ;;  %v8615_v59 = vsel %vm8609_vm6, %v13858_v46, %v8404_v27 }
 0x3f7   : > { %v10880_v4 = vpop.f32.mrf.mxu1  ;;  %v10887_v2 = vpop.f32.mrf.mxu0 }
 0x3fa   : > { %8553 = vrot.lane.b32.xlu1 %v7181_v6, %s11427_s28 }
 0x3fb   : > { %v7261_v44 = vpop.f32.mrf.mxu1  ;;  %v7341_v31 = vpop.f32.mrf.mxu0 }
 0x3fc   : > { %8555 = vrot.lane.b32.xlu0 %v7261_v44, %s11427_s28 }
 0x3fd   : > { %v10894_v61 = vpop.f32.mrf.mxu1  ;;  %v10901_v1 = vpop.f32.mrf.mxu0 }
 0x3fe   : > { %8557 = vrot.lane.b32.xlu1 %v7341_v31, %s11427_s28 }
 0x401   : > { %v7421_v21 = vpop.f32.mrf.mxu1  ;;  %v7501_v37 = vpop.f32.mrf.mxu0 }
 0x402   : > { %8559 = vrot.lane.b32.xlu0 %v7421_v21, %s11427_s28  ;;  %8561 = vrot.lane.b32.xlu1 %v7501_v37, %s11427_s28 }
 0x403   : > { %v10908_v56 = vpop.f32.mrf.mxu1  ;;  %v10915_v47 = vpop.f32.mrf.mxu0 }
 0x404   : > { %v8408_v10 = vpop.permute.xlu0 %8407 }
 0x405   : > { %v8617_v46 = vsel %vm8609_vm6, %v14023_v22, %v8408_v10 }
 0x407   : > { %v7581_v26 = vpop.f32.mrf.mxu1  ;;  %v7661_v8 = vpop.f32.mrf.mxu0 }
 0x408   : > { %8563 = vrot.lane.b32.xlu0 %v7581_v26, %s11427_s28 }
 0x409   : > { %v10922_v36 = vpop.f32.mrf.mxu1  ;;  %v10929_v23 = vpop.f32.mrf.mxu0 }
 0x40a   : > { %v8406_v5 = vpop.permute.xlu1 %8405 }
 0x40b   : > { %v8616_v6 = vsel %vm8609_vm6, %v14119_v52, %v8406_v5 }
 0x40c   : > { %8565 = vrot.lane.b32.xlu0 %v7661_v8, %s11427_s28 }
 0x40d   : > { %v7741_v16 = vpop.f32.mrf.mxu1  ;;  %v7821_v35 = vpop.f32.mrf.mxu0 }
 0x40e   : > { %v8426_v43 = vpop.permute.xlu0 %8425  ;;  %v8428_v53 = vpop.permute.xlu1 %8427  ;;  %8585 = vrot.lane.b32.xlu1 %v7821_v35, %s11434_s24 }
 0x40f   : > { %v14413_v51 = vsel %vm3304_vm10, %v8610_v42, %v8426_v43  ;;  %v10936_v57 = vpop.f32.mrf.mxu1  ;;  %v14417_v54 = vsel %vm3304_vm10, %v8611_v60, %v8428_v53  ;;  %v10943_v19 = vpop.f32.mrf.mxu0 }
 0x412   : > { %v8430_v33 = vpop.permute.xlu1 %8429  ;;  %v8432_v13 = vpop.permute.xlu0 %8431 }
 0x413   : > { %v7901_v32 = vpop.f32.mrf.mxu1  ;;  %v14424_v45 = vsel %vm3304_vm10, %v8612_v3, %v8430_v33  ;;  %v7981_v49 = vpop.f32.mrf.mxu0  ;;  %v14428_v58 = vsel %vm3304_vm10, %v8613_v55, %v8432_v13 }
 0x414   : > { %8587 = vrot.lane.b32.xlu0 %v7901_v32, %s11434_s24  ;;  %8589 = vrot.lane.b32.xlu1 %v7981_v49, %s11434_s24 }
 0x415   : > { %v10950_v11 = vpop.f32.mrf.mxu1  ;;  %v10957_v28 = vpop.f32.mrf.mxu0 }
 0x416   : > { %v8434_v14 = vpop.permute.xlu1 %8433 }
 0x417   : > { %v14434_v38 = vsel %vm3304_vm10, %v8614_v41, %v8434_v14 }
 0x419   : > { %v8061_v24 = vpop.f32.mrf.mxu1  ;;  %v8141_v30 = vpop.f32.mrf.mxu0 }
 0x41a   : > { %8591 = vrot.lane.b32.xlu0 %v8061_v24, %s11434_s24  ;;  %v8436_v18 = vpop.permute.xlu0 %8435  ;;  %8593 = vrot.lane.b32.xlu1 %v8141_v30, %s11434_s24  ;;  %v8438_v4 = vpop.permute.xlu1 %8437 }
 0x41b   : > { %v10964_v29 = vpop.f32.mrf.mxu1  ;;  %v8623_v34 = vsel %vm3304_vm10, %v8615_v59, %v8436_v18  ;;  %v10971_v2 = vpop.f32.mrf.mxu0  ;;  %v8624_v15 = vsel %vm3304_vm10, %v8616_v6, %v8438_v4 }
 0x41e   : > { %8567 = vrot.lane.b32.xlu1 %v7741_v16, %s11427_s28  ;;  %s15094_s28 = sshll.u32 %s15100_s17, 3  ;;  %s11435_s17 = smov [#allocation2]  }
 0x41f   : > { %v8221_v44 = vpop.f32.mrf.mxu1  ;;  %v8301_v17 = vpop.f32.mrf.mxu0  ;;  %s14557_s26 = scalar_lea.vmem %s14907_s3, %s15094_s28  ;;  %s9667_s28 = sshll.u32 %s14828_s27, 4  ;;  %s14857_s28 = int_to_ptr.vmem [resolvable:$true] %s9667_s28 }
 0x420   : > { %8595 = vrot.lane.b32.xlu0 %v8221_v44, %s11434_s24  ;;  %v8440_v0 = vpop.permute.xlu0 %8439  ;;  %s11349_s23 = scalar_lea.vmem %s14857_s28, 1024  ;;  %s11353_s21 = sshll.u32 %s11435_s17, 4  ;;  %s11354_s21 = int_to_ptr.vmem [resolvable:$false] %s11353_s21 }
 0x421   : > { %v10978_v31 = vpop.f32.mrf.mxu1  ;;  %v8625_v61 = vsel %vm3304_vm10, %v8617_v46, %v8440_v0  ;;  %v10985_v52 = vpop.f32.mrf.mxu0  ;;  %vm8635_vm10 = vcmask 261120   ;;  %p11350_p13 = scmp.ne.s32.totalorder %s14857_s28, %s11349_s23  ;;  %s11355_s25 = scalar_lea.vmem %s11354_s21, 2048 }
 0x422   : > { %p11356_p2 = scmp.lt.s32.totalorder %s14857_s28, %s11354_s21  ;;  %p11357_p3 = scmp.lt.s32.totalorder %s11355_s25, %s11349_s23 }
 0x423   : > { %p11351_p0 = pnand %p11350_p13, %p11525_p5 }
 0x424   : > { %8597 = vrot.lane.b32.xlu0 %v8301_v17, %s11434_s24  ;;  %v8458_v1 = vpop.permute.xlu0 %8457  ;;  %p11358_p4 = por %p11357_p3, %p11356_p2 }
 0x425   : > { %v8381_v12 = vpop.f32.mrf.mxu1  ;;  %v8627_v14 = vsel %vm8626_vm1, %v14413_v51, %v8458_v1  ;;  %p11352_p1 = pneg %p11351_p0 }
 0x426   : > { %8599 = vrot.lane.b32.xlu1 %v8381_v12, %s11434_s24  ;;  %v8460_v62 = vpop.permute.xlu1 %8459  ;;  %s10016_s24 = sshll.u32 %s11508_s13, 10  ;;  %s14863_s13 = scalar_lea.sflag [#allocation3], %s371_s22 }
 0x427   : > { %v10992_v39 = vpop.f32.mrf.mxu1  ;;  %v8628_v51 = vsel %vm8626_vm1, %v14417_v54, %v8460_v62  ;;  %p11359_p7 = pnand %p11358_p4, %p11352_p1 }
 0x42a   : > { %v8462_v63 = vpop.permute.xlu1 %8461 }
 0x42c   : > { %v14451_v21 = vpop.permute.xlu0 %8463 }
 0x42e   : > { %v14453_v7 = vpop.permute.xlu1 %8465 }
 0x432   : > { %v8468_v22 = vpop.permute.xlu0 %8467  ;;  %v8470_v56 = vpop.permute.xlu1 %8469 }
 0x433   : > { %v14456_v37 = vsel %vm8626_vm1, %v8623_v34, %v8468_v22  ;;  %v14459_v27 = vsel %vm8626_vm1, %v8624_v15, %v8470_v56  ;;  %v8629_v15 = vsel %vm8626_vm1, %v14424_v45, %v8462_v63  ;;  %v8630_v22 = vsel %vm8626_vm1, %v14428_v58, %v14451_v21 }
 0x438   : > { %v8472_v47 = vpop.permute.xlu0 %8471 }
 0x439   : > { %v14462_v25 = vsel %vm8626_vm1, %v8625_v61, %v8472_v47  ;;  %v8631_v47 = vsel %vm8626_vm1, %v14434_v38, %v14453_v7 }
 0x43e   : > { %v8492_v26 = vpop.permute.xlu0 %8491  ;;  %v8494_v8 = vpop.permute.xlu1 %8493 }
 0x43f   : > { %v11027_v57 = vpop.f32.mrf.mxu0  ;;  %v8637_v44 = vsel %vm8635_vm10, %v8628_v51, %v8492_v26  ;;  %v8638_v17 = vsel %vm8635_vm10, %v8629_v15, %v8494_v8  ;;  %v8811_v15 = vld [vmem:[%s14557_s26 + $0x18] sm:$0xff] }
 0x441   : > { %v8753_v19 = vpop.f32.mrf.mxu0 }
 0x442   : > { %v8490_v10 = vpop.permute.xlu0 %8489  ;;  %11301 = vrcp.f32 %v8753_v19 }
 0x443   : > { %v11030_v33 = vpop.f32.mrf.mxu0  ;;  %11303 = vrcp.f32 %v11027_v57  ;;  %v8636_v24 = vsel %vm8635_vm10, %v8627_v14, %v8490_v10 }
 0x444   : > { %v14466_v9 = vpop.permute.xlu1 %8497 }
 0x445   : > { %v8763_v13 = vpop.f32.mrf.mxu0  ;;  %v8640_v10 = vsel %vm8635_vm10, %v8631_v47, %v14466_v9 }
 0x446   : > { %v14464_v40 = vpop.permute.xlu0 %8495  ;;  %11305 = vrcp.f32 %v8763_v13 }
 0x447   : > { %v11033_v49 = vpop.f32.mrf.mxu0  ;;  %11307 = vrcp.f32 %v11030_v33  ;;  %v8639_v26 = vsel %vm8635_vm10, %v8630_v22, %v14464_v40 }
 0x449   : > { %v8773_v41 = vpop.f32.mrf.mxu0 }
 0x44a   : > { %v14468_v36 = vpop.permute.xlu0 %8499  ;;  %11309 = vrcp.f32 %v8773_v41 }
 0x44b   : > { %v11036_v4 = vpop.f32.mrf.mxu0  ;;  %11311 = vrcp.f32 %v11033_v49  ;;  %v8641_v19 = vsel %vm8635_vm10, %v14456_v37, %v14468_v36 }
 0x44d   : > { %v8783_v54 = vpop.f32.mrf.mxu0 }
 0x44e   : > { %11313 = vrcp.f32 %v8783_v54 }
 0x44f   : > { %v11302_v6 = vpop.eup %11301  ;;  %11315 = vrcp.f32 %v11036_v4 }
 0x450   : > { %v14470_v23 = vpop.permute.xlu1 %8503  ;;  %v11304_v52 = vpop.eup %11303 }
 0x453   : > { %v11306_v62 = vpop.eup %11305 }
 0x454   : > { %v14472_v5 = vpop.permute.xlu1 %8501  ;;  %v11308_v7 = vpop.eup %11307 }
 0x455   : > { %v8642_v13 = vsel %vm8635_vm10, %v14459_v27, %v14472_v5 }
 0x456   : > { %v8524_v50 = vpop.permute.xlu0 %8523 }
 0x457   : > { %v8646_v46 = vsel %vm8644_vm2, %v8637_v44, %v8524_v50 }
 0x458   : > { %v8522_v42 = vpop.permute.xlu1 %8521 }
 0x459   : > { %v8645_v30 = vsel %vm8644_vm2, %v8636_v24, %v8522_v42 }
 0x45c   : > { %v14474_v16 = vpop.permute.xlu0 %8527  ;;  %v8526_v43 = vpop.permute.xlu1 %8525 }
 0x45d   : > { %v8647_v0 = vsel %vm8644_vm2, %v8638_v17, %v8526_v43  ;;  %v8648_v8 = vsel %vm8644_vm2, %v8639_v26, %v14474_v16  ;;  %v11310_v43 = vpop.eup %11309  ;;  %v8810_v17 = vld [vmem:[%s14557_s26 + $0x10] sm:$0xff] }
 0x460   : > { %v14478_v60 = vpop.permute.xlu1 %8529 }
 0x461   : > { %v8649_v58 = vsel %vm8644_vm2, %v8640_v10, %v14478_v60 }
 0x462   : > { %v14476_v48 = vpop.permute.xlu0 %8531 }
 0x463   : > { %v8650_v60 = vsel %vm8644_vm2, %v8641_v19, %v14476_v48  ;;  %v8643_v48 = vsel %vm8635_vm10, %v14462_v25, %v14470_v23  ;;  %v8809_v23 = vld [vmem:[%s14557_s26 + $0x8] sm:$0xff] }
 0x466   : > { %v14480_v35 = vpop.permute.xlu0 %8533 }
 0x467   : > { %v8651_v36 = vsel %vm8644_vm2, %v8642_v13, %v14480_v35 }
 0x468   : > { %v14482_v53 = vpop.permute.xlu1 %8535 }
 0x469   : > { %v8652_v41 = vsel %vm8644_vm2, %v8643_v48, %v14482_v53  ;;  %v9978_v53 = vld [vmem:[%s14912_s8] ss:$0 sm:$0xff] }
 0x46c   : > { %v8554_v3 = vpop.permute.xlu1 %8553 }
 0x46d   : > { %v8654_v18 = vsel %vm8653_vm4, %v8645_v30, %v8554_v3 }
 0x46e   : > { %v8556_v20 = vpop.permute.xlu0 %8555 }
 0x46f   : > { %v8655_v31 = vsel %vm8653_vm4, %v8646_v46, %v8556_v20 }
 0x470   : > { %v8558_v32 = vpop.permute.xlu1 %8557 }
 0x471   : > { %v8656_v12 = vsel %vm8653_vm4, %v8647_v0, %v8558_v32 }
 0x474   : > { %v8560_v55 = vpop.permute.xlu0 %8559  ;;  %v8562_v28 = vpop.permute.xlu1 %8561 }
 0x475   : > { %v8657_v21 = vsel %vm8653_vm4, %v8648_v8, %v8560_v55  ;;  %v8658_v40 = vsel %vm8653_vm4, %v8649_v58, %v8562_v28  ;;  %v11312_v55 = vpop.eup %11311  ;;  %v8814_v58 = vld [vmem:[%s14557_s26 + $0x30] sm:$0xff] }
 0x476   : > { %v11314_v28 = vpop.eup %11313 }
 0x477   : > { %v11316_v24 = vpop.eup %11315 }
 0x47a   : > { %v14484_v11 = vpop.permute.xlu0 %8563 }
 0x47b   : > { %v8659_v20 = vsel %vm8653_vm4, %v8650_v60, %v14484_v11 }
 0x47e   : > { %v8566_v59 = vpop.permute.xlu0 %8565 }
 0x47f   : > { %v8660_v49 = vsel %vm8653_vm4, %v8651_v36, %v8566_v59 }
 0x480   : > { %v8586_v29 = vpop.permute.xlu1 %8585 }
 0x481   : > { %v8663_v34 = vsel %vm8662_vm3, %v8654_v18, %v8586_v29  ;;  %v8808_v18 = vld [vmem:[%s14557_s26] sm:$0xff] }
 0x482   : > { %v8800_v2 = vmul.f32 %v11302_v6, %v8663_v34 }
 0x484   : > { %11053 = vmatprep.mubr.msk.f32.mxu1 %vm882_vm0, %v8800_v2 }
 0x486   : > { %v8588_v61 = vpop.permute.xlu0 %8587  ;;  %v8590_v1 = vpop.permute.xlu1 %8589 }
 0x487   : > { %v8664_v45 = vsel %vm8662_vm3, %v8655_v31, %v8588_v61  ;;  %v8665_v63 = vsel %vm8662_vm3, %v8656_v12, %v8590_v1 }
 0x488   : > { %v8801_v39 = vmul.f32 %v11304_v52, %v8664_v45  ;;  %v8802_v56 = vmul.f32 %v11306_v62, %v8665_v63  ;;  %v8813_v52 = vld [vmem:[%s14557_s26 + $0x28] sm:$0xff]  ;;  %v8812_v45 = vld [vmem:[%s14557_s26 + $0x20] sm:$0xff] }
 0x48a   : > { %11054 = vmatmul.mubr.msk.f32.vlgmr.msra.gmra.mxu1 %vm882_vm0, %v8801_v39 }
 0x48b   : > { %11056 = vmatprep.mubr.msk.f32.mxu1 %vm882_vm0, %v8802_v56  ;;  %v8815_v56 = vld [vmem:[%s14557_s26 + $0x38] sm:$0xff]  ;;  %s14853_s26 = scalar_lea.hbm %s14913_s9, %s10016_s24 }
 0x48c   : > { %v8592_v38 = vpop.permute.xlu0 %8591  ;;  %v8594_v42 = vpop.permute.xlu1 %8593 }
 0x48d   : > { %v8666_v50 = vsel %vm8662_vm3, %v8657_v21, %v8592_v38  ;;  %v8667_v57 = vsel %vm8662_vm3, %v8658_v40, %v8594_v42 }
 0x48e   : > { %v8803_v9 = vmul.f32 %v11308_v7, %v8666_v50  ;;  %v8804_v16 = vmul.f32 %v11310_v43, %v8667_v57 }
 0x490   : > { %11057 = vmatmul.mubr.msk.f32.gmra.mxu1 %vm882_vm0, %v8803_v9  ;;  %v8568_v33 = vpop.permute.xlu1 %8567 }
 0x491   : > { %11059 = vmatprep.mubr.msk.f32.mxu1 %vm882_vm0, %v8804_v16  ;;  %v8661_v5 = vsel %vm8653_vm4, %v8652_v41, %v8568_v33 }
 0x492   : > { %v8596_v3 = vpop.permute.xlu0 %8595 }
 0x493   : > { %v8668_v32 = vsel %vm8662_vm3, %v8659_v20, %v8596_v3 }
 0x494   : > { %v8805_v37 = vmul.f32 %v11312_v55, %v8668_v32 }
 0x496   : > { %v8598_v11 = vpop.permute.xlu0 %8597  ;;  %11060 = vmatmul.mubr.msk.f32.gmra.mxu1 %vm882_vm0, %v8805_v37 }
 0x497   : > { %v8669_v27 = vsel %vm8662_vm3, %v8660_v49, %v8598_v11 }
 0x498   : > { %v8806_v14 = vmul.f32 %v11314_v28, %v8669_v27  ;;  %v8600_v35 = vpop.permute.xlu1 %8599 }
 0x499   : > { %v8670_v30 = vsel %vm8662_vm3, %v8661_v5, %v8600_v35 }
 0x49a   : > { %11062 = vmatprep.mubr.msk.f32.mxu1 %vm882_vm0, %v8806_v14  ;;  %v8807_v25 = vmul.f32 %v11316_v24, %v8670_v30 }
 0x49c   : > { %11063 = vmatmul.mubr.msk.f32.gmra.mxu1 %vm882_vm0, %v8807_v25 }
 0x54a   : > { %v11055_v59 = vpop.f32.mrf.mxu1 }
 0x54b   : > { %v8946_v29 = vadd.f32 %v11055_v59, %v8809_v23 }
 0x54c   : > { %v8906_v6 = vpop.f32.mrf.mxu1 }
 0x54d   : > { %v8958_v34 = vadd.f32 %v9978_v53, %v8946_v29  ;;  %v8945_v4 = vadd.f32 %v8906_v6, %v8808_v18 }
 0x54f   : > { %v8957_v51 = vadd.f32 %v9978_v53, %v8945_v4  ;;  %v8968_v2 = vsel %vm882_vm0, %v8958_v34, 0.0 }
 0x550   : > { %v11058_v44 = vpop.f32.mrf.mxu1  ;;  %8969 = vadd.xlane.f32.xlu1 %v8968_v2 }
 0x551   : > { %v8965_v46 = vsel %vm882_vm0, %v8957_v51, 0.0  ;;  %v8948_v31 = vadd.f32 %v11058_v44, %v8811_v15 }
 0x552   : > { %v8916_v0 = vpop.f32.mrf.mxu1  ;;  %8966 = vadd.xlane.f32.xlu0 %v8965_v46 }
 0x553   : > { %v8947_v61 = vadd.f32 %v8916_v0, %v8810_v17  ;;  %v8960_v1 = vadd.f32 %v9978_v53, %v8948_v31 }
 0x555   : > { %v8959_v54 = vadd.f32 %v9978_v53, %v8947_v61  ;;  %v8974_v10 = vsel %vm882_vm0, %v8960_v1, 0.0 }
 0x556   : > { %v11061_v12 = vpop.f32.mrf.mxu1 }
 0x557   : > { %v8950_v62 = vadd.f32 %v11061_v12, %v8813_v52  ;;  %v8971_v39 = vsel %vm882_vm0, %v8959_v54, 0.0  ;;  %v9793_v52 = vld [vmem:[%s14911_s7 + $0xb8] sm:$0xff]  ;;  %v9791_v12 = vld [vmem:[%s14911_s7 + $0xa8] sm:$0xff] }
 0x558   : > { %v8926_v63 = vpop.f32.mrf.mxu1  ;;  %8972 = vadd.xlane.f32.xlu0 %v8971_v39  ;;  %11065 = vmatprep.subr.mxu1 %v9793_v52  ;;  %v9787_v39 = vld [vmem:[%s14911_s7 + $0x88] sm:$0xff] }
 0x559   : > { %v8949_v22 = vadd.f32 %v8926_v63, %v8812_v45  ;;  %v8962_v47 = vadd.f32 %v9978_v53, %v8950_v62  ;;  %11066 = vmatpush3.msra.mxu1 %v9793_v52  ;;  %v9790_v45 = vld [vmem:[%s14911_s7 + $0xa0] sm:$0xff]  ;;  %v9788_v62 = vld [vmem:[%s14911_s7 + $0x90] sm:$0xff] }
 0x55a   : > { %v9786_v63 = vld [vmem:[%s14911_s7 + $0x80] sm:$0xff] }
 0x55b   : > { %v8961_v26 = vadd.f32 %v9978_v53, %v8949_v22  ;;  %v8980_v42 = vsel %vm882_vm0, %v8962_v47, 0.0  ;;  %v9801_v22 = vld [vmem:[%s14911_s7 + $0xf8] sm:$0xff] }
 0x55c   : > { %v11064_v8 = vpop.f32.mrf.mxu1  ;;  %8975 = vadd.xlane.f32.xlu0 %v8974_v10  ;;  %11093 = vmatprep.subr.mxu0 %v9801_v22 }
 0x55d   : > { %v8952_v21 = vadd.f32 %v11064_v8, %v8815_v56  ;;  %v8977_v38 = vsel %vm882_vm0, %v8961_v26, 0.0  ;;  %v9800_v56 = vld [vmem:[%s14911_s7 + $0xf0] sm:$0xff]  ;;  %11094 = vmatpush3.msra.mxu0 %v9801_v22  ;;  %v9795_v22 = vld [vmem:[%s14911_s7 + $0xc8] sm:$0xff] }
 0x55e   : > { %8978 = vadd.xlane.f32.xlu1 %v8977_v38  ;;  %v8936_v7 = vpop.f32.mrf.mxu1  ;;  %11095 = vmatprep.subr.mxu0 %v9800_v56 }
 0x55f   : > { %v8964_v40 = vadd.f32 %v9978_v53, %v8952_v21  ;;  %v8951_v50 = vadd.f32 %v8936_v7, %v8814_v58  ;;  %11096 = vmatpush3.msra.mxu0 %v9800_v56  ;;  %v9794_v56 = vld [vmem:[%s14911_s7 + $0xc0] sm:$0xff] }
 0x560   : > { %8981 = vadd.xlane.f32.xlu0 %v8980_v42 }
 0x561   : > { %v8963_v43 = vadd.f32 %v9978_v53, %v8951_v50  ;;  %v8986_v57 = vsel %vm882_vm0, %v8964_v40, 0.0 }
 0x563   : > { %v8983_v9 = vsel %vm882_vm0, %v8963_v43, 0.0 }
 0x564   : > { %8984 = vadd.xlane.f32.xlu1 %v8983_v9  ;;  %8987 = vadd.xlane.f32.xlu0 %v8986_v57 }
 0x5d9   : > { %v8970_v16 = vpop.xlane.xlu1 %8969 }
 0x5da   : > { %v8991_v19 = vmul.f32 0.015625, %v8970_v16 }
 0x5db   : > { %v8967_v60 = vpop.xlane.xlu0 %8966 }
 0x5dc   : > { %v14578_v20 = vsub.f32 %v8958_v34, %v8991_v19  ;;  %v8990_v3 = vmul.f32 0.015625, %v8967_v60 }
 0x5de   : > { %v14580_v33 = vsub.f32 %v8957_v51, %v8990_v3  ;;  %v9007_v55 = vmul.f32 %v14578_v20, %v14578_v20 }
 0x5e0   : > { %v9017_v32 = vsel %vm882_vm0, %v9007_v55, 0.0  ;;  %v9006_v13 = vmul.f32 %v14580_v33, %v14580_v33 }
 0x5e1   : > { %v8973_v37 = vpop.xlane.xlu0 %8972  ;;  %9018 = vadd.xlane.f32.xlu0 %v9017_v32 }
 0x5e2   : > { %v8992_v36 = vmul.f32 0.015625, %v8973_v37  ;;  %v9014_v48 = vsel %vm882_vm0, %v9006_v13, 0.0 }
 0x5e3   : > { %9015 = vadd.xlane.f32.xlu1 %v9014_v48  ;;  %v9979_v48 = vld [vmem:[%s14912_s8 + $0x1] ss:$0 sm:$0xff] }
 0x5e4   : > { %v14588_v49 = vsub.f32 %v8959_v54, %v8992_v36  ;;  %v9792_v54 = vld [vmem:[%s14911_s7 + $0xb0] sm:$0xff] }
 0x5e5   : > { %v8976_v11 = vpop.xlane.xlu0 %8975  ;;  %11067 = vmatprep.subr.mxu1 %v9792_v54 }
 0x5e6   : > { %v8993_v28 = vmul.f32 0.015625, %v8976_v11  ;;  %v9008_v41 = vmul.f32 %v14588_v49, %v14588_v49  ;;  %11068 = vmatpush3.msra.mxu1 %v9792_v54 }
 0x5e7   : > { %v8979_v27 = vpop.xlane.xlu1 %8978  ;;  %11069 = vmatprep.subr.mxu1 %v9791_v12 }
 0x5e8   : > { %v14592_v5 = vsub.f32 %v8960_v1, %v8993_v28  ;;  %v8994_v14 = vmul.f32 0.015625, %v8979_v27  ;;  %v9020_v35 = vsel %vm882_vm0, %v9008_v41, 0.0  ;;  %11070 = vmatpush3.msra.mxu1 %v9791_v12  ;;  %v9789_v1 = vld [vmem:[%s14911_s7 + $0x98] sm:$0xff] }
 0x5e9   : > { %v8982_v24 = vpop.xlane.xlu0 %8981  ;;  %9021 = vadd.xlane.f32.xlu1 %v9020_v35  ;;  %11071 = vmatprep.subr.mxu1 %v9790_v45 }
 0x5ea   : > { %v14595_v30 = vsub.f32 %v8961_v26, %v8994_v14  ;;  %v8995_v25 = vmul.f32 0.015625, %v8982_v24  ;;  %v9009_v23 = vmul.f32 %v14592_v5, %v14592_v5  ;;  %11072 = vmatpush3.msra.mxu1 %v9790_v45  ;;  %v9798_v26 = vld [vmem:[%s14911_s7 + $0xe0] sm:$0xff] }
 0x5eb   : > { %11073 = vmatprep.subr.mxu1 %v9789_v1 }
 0x5ec   : > { %v14599_v53 = vsub.f32 %v8962_v47, %v8995_v25  ;;  %v9023_v59 = vsel %vm882_vm0, %v9009_v23, 0.0  ;;  %v9010_v18 = vmul.f32 %v14595_v30, %v14595_v30  ;;  %11074 = vmatpush3.msra.mxu1 %v9789_v1  ;;  %v9799_v47 = vld [vmem:[%s14911_s7 + $0xe8] sm:$0xff] }
 0x5ed   : > { %v8985_v29 = vpop.xlane.xlu1 %8984  ;;  %9024 = vadd.xlane.f32.xlu0 %v9023_v59  ;;  %v8988_v6 = vpop.xlane.xlu0 %8987  ;;  %11075 = vmatprep.subr.mxu1 %v9788_v62 }
 0x5ee   : > { %v8996_v34 = vmul.f32 0.015625, %v8985_v29  ;;  %v8997_v4 = vmul.f32 0.015625, %v8988_v6  ;;  %v9026_v51 = vsel %vm882_vm0, %v9010_v18, 0.0  ;;  %v9011_v2 = vmul.f32 %v14599_v53, %v14599_v53  ;;  %11076 = vmatpush3.msra.mxu1 %v9788_v62  ;;  %11097 = vmatprep.subr.mxu0 %v9799_v47 }
 0x5ef   : > { %9027 = vadd.xlane.f32.xlu1 %v9026_v51  ;;  %11077 = vmatprep.subr.mxu1 %v9787_v39 }
 0x5f0   : > { %v14607_v15 = vsub.f32 %v8963_v43, %v8996_v34  ;;  %v14609_v44 = vsub.f32 %v8964_v40, %v8997_v4  ;;  %v9029_v17 = vsel %vm882_vm0, %v9011_v2, 0.0  ;;  %11078 = vmatpush3.msra.mxu1 %v9787_v39  ;;  %11098 = vmatpush3.msra.mxu0 %v9799_v47  ;;  %v9809_v47 = vld [vmem:[%s14911_s7 + $0x138] sm:$0xff] }
 0x5f1   : > { %9030 = vadd.xlane.f32.xlu0 %v9029_v17  ;;  %11079 = vmatprep.subr.mxu1 %v9786_v63 }
 0x5f2   : > { %v9012_v46 = vmul.f32 %v14607_v15, %v14607_v15  ;;  %v9013_v0 = vmul.f32 %v14609_v44, %v14609_v44  ;;  %11080 = vmatpush3.msra.mxu1 %v9786_v63  ;;  %11099 = vmatprep.subr.mxu0 %v9798_v26 }
 0x5f3   : > { %11100 = vmatpush3.msra.mxu0 %v9798_v26  ;;  %v9808_v26 = vld [vmem:[%s14911_s7 + $0x130] sm:$0xff]  ;;  %11121 = vmatprep.subr.mxu1 %v9809_v47 }
 0x5f4   : > { %v9032_v31 = vsel %vm882_vm0, %v9012_v46, 0.0  ;;  %v9035_v61 = vsel %vm882_vm0, %v9013_v0, 0.0 }
 0x5f5   : > { %9033 = vadd.xlane.f32.xlu1 %v9032_v31  ;;  %9036 = vadd.xlane.f32.xlu0 %v9035_v61 }
 0x66a   : > { %v9019_v10 = vpop.xlane.xlu0 %9018 }
 0x66b   : > { %v9039_v8 = vmul.f32 0.015625, %v9019_v10  ;;  %v9807_v10 = vld [vmem:[%s14911_s7 + $0x128] sm:$0xff] }
 0x66c   : > { %v9016_v58 = vpop.xlane.xlu1 %9015 }
 0x66d   : > { %v9047_v21 = vadd.f32 1e-05, %v9039_v8  ;;  %v9038_v38 = vmul.f32 0.015625, %v9016_v58  ;;  %v9806_v8 = vld [vmem:[%s14911_s7 + $0x120] sm:$0xff] }
 0x66e   : > { %v9981_v58 = vld [vmem:[%s14912_s8 + $0x3] ss:$0 sm:$0xff] }
 0x66f   : > { %11317 = vrsqrt.f32 %v9047_v21  ;;  %v9046_v7 = vadd.f32 1e-05, %v9038_v38 }
 0x671   : > { %11319 = vrsqrt.f32 %v9046_v7 }
 0x672   : > { %v9022_v40 = vpop.xlane.xlu1 %9021 }
 0x673   : > { %v9040_v50 = vmul.f32 0.015625, %v9022_v40 }
 0x675   : > { %v9048_v42 = vadd.f32 1e-05, %v9040_v50 }
 0x676   : > { %v9025_v43 = vpop.xlane.xlu0 %9024 }
 0x677   : > { %11321 = vrsqrt.f32 %v9048_v42  ;;  %v9041_v9 = vmul.f32 0.015625, %v9025_v43 }
 0x678   : > { %v9028_v57 = vpop.xlane.xlu1 %9027 }
 0x679   : > { %v9049_v16 = vadd.f32 1e-05, %v9041_v9  ;;  %v9042_v19 = vmul.f32 0.015625, %v9028_v57 }
 0x67a   : > { %v9031_v60 = vpop.xlane.xlu0 %9030 }
 0x67b   : > { %11323 = vrsqrt.f32 %v9049_v16  ;;  %v9050_v3 = vadd.f32 1e-05, %v9042_v19  ;;  %v9043_v55 = vmul.f32 0.015625, %v9031_v60 }
 0x67c   : > { %v11318_v32 = vpop.eup %11317 }
 0x67d   : > { %v9063_v13 = vmul.f32 %v11318_v32, %v14578_v20  ;;  %11325 = vrsqrt.f32 %v9050_v3  ;;  %v9051_v37 = vadd.f32 1e-05, %v9043_v55  ;;  %v9980_v20 = vld [vmem:[%s14912_s8 + $0x2] ss:$0 sm:$0xff] }
 0x67e   : > { %v11320_v36 = vpop.eup %11319  ;;  %v9034_v11 = vpop.xlane.xlu1 %9033 }
 0x67f   : > { %v9037_v28 = vpop.xlane.xlu0 %9036  ;;  %11327 = vrsqrt.f32 %v9051_v37  ;;  %v9044_v41 = vmul.f32 0.015625, %v9034_v11  ;;  %v9062_v14 = vmul.f32 %v11320_v36, %v14580_v33  ;;  %v9075_v35 = vmul.f32 %v9979_v48, %v9063_v13 }
 0x680   : > { %v9045_v27 = vmul.f32 0.015625, %v9037_v28 }
 0x681   : > { %v9052_v24 = vadd.f32 1e-05, %v9044_v41  ;;  %v9074_v23 = vmul.f32 %v9979_v48, %v9062_v14  ;;  %v14664_v29 = vadd.f32 %v9980_v20, %v9075_v35  ;;  %v9805_v35 = vld [vmem:[%s14911_s7 + $0x118] sm:$0xff] }
 0x682   : > { %v9053_v25 = vadd.f32 1e-05, %v9045_v27 }
 0x683   : > { %11329 = vrsqrt.f32 %v9052_v24  ;;  %v14662_v18 = vadd.f32 %v9980_v20, %v9074_v23  ;;  %v9804_v24 = vld [vmem:[%s14911_s7 + $0x110] sm:$0xff]  ;;  %v9990_v23 = vld [vmem:[%s14912_s8 + $0x4] ss:$0 sm:$0xff] }
 0x684   : > { %v11322_v59 = vpop.eup %11321  ;;  %11331 = vrsqrt.f32 %v9053_v25  ;;  %v9803_v25 = vld [vmem:[%s14911_s7 + $0x108] sm:$0xff] }
 0x685   : > { %v9064_v6 = vmul.f32 %v11322_v59, %v14588_v49  ;;  %11081 = vmatprep.mubr.msk.f32.mxu1 %vm882_vm0, %v14662_v18 }
 0x686   : > { %11082 = vmatmul.mubr.msk.f32.vlgmr.msra.gmra.mxu1 %vm882_vm0, %v14664_v29 }
 0x687   : > { %v9076_v33 = vmul.f32 %v9979_v48, %v9064_v6  ;;  %11122 = vmatpush3.msra.mxu1 %v9809_v47 }
 0x688   : > { %v11324_v34 = vpop.eup %11323  ;;  %11123 = vmatprep.subr.mxu1 %v9808_v26 }
 0x689   : > { %v14671_v4 = vadd.f32 %v9980_v20, %v9076_v33  ;;  %v9065_v51 = vmul.f32 %v11324_v34, %v14592_v5  ;;  %11124 = vmatpush3.msra.mxu1 %v9808_v26 }
 0x68a   : > { %v11326_v2 = vpop.eup %11325  ;;  %11125 = vmatprep.subr.mxu1 %v9807_v10 }
 0x68b   : > { %11084 = vmatprep.mubr.msk.f32.mxu1 %vm882_vm0, %v14671_v4  ;;  %v9077_v17 = vmul.f32 %v9979_v48, %v9065_v51  ;;  %v9066_v46 = vmul.f32 %v11326_v2, %v14595_v30  ;;  %11126 = vmatpush3.msra.mxu1 %v9807_v10  ;;  %v9999_v10 = vld [vmem:[%s14912_s8 + $0x5] ss:$0 sm:$0xff] }
 0x68c   : > { %v11328_v49 = vpop.eup %11327  ;;  %11127 = vmatprep.subr.mxu1 %v9806_v8 }
 0x68d   : > { %v14677_v0 = vadd.f32 %v9980_v20, %v9077_v17  ;;  %v9078_v31 = vmul.f32 %v9979_v48, %v9066_v46  ;;  %v9067_v61 = vmul.f32 %v11328_v49, %v14599_v53  ;;  %11128 = vmatpush3.msra.mxu1 %v9806_v8 }
 0x68e   : > { %11129 = vmatprep.subr.mxu1 %v9805_v35 }
 0x68f   : > { %11085 = vmatmul.mubr.msk.f32.gmra.mxu1 %vm882_vm0, %v14677_v0  ;;  %v14682_v52 = vadd.f32 %v9980_v20, %v9078_v31  ;;  %v9079_v54 = vmul.f32 %v9979_v48, %v9067_v61 }
 0x690   : > { %v11330_v5 = vpop.eup %11329  ;;  %11130 = vmatpush3.msra.mxu1 %v9805_v35 }
 0x691   : > { %v11332_v12 = vpop.eup %11331  ;;  %11087 = vmatprep.mubr.msk.f32.mxu1 %vm882_vm0, %v14682_v52  ;;  %v14686_v45 = vadd.f32 %v9980_v20, %v9079_v54  ;;  %v9068_v30 = vmul.f32 %v11330_v5, %v14607_v15  ;;  %v9797_v15 = vld [vmem:[%s14911_s7 + $0xd8] sm:$0xff]  ;;  %11131 = vmatprep.subr.mxu1 %v9804_v24 }
 0x692   : > { %v9069_v1 = vmul.f32 %v11332_v12, %v14609_v44  ;;  %11101 = vmatprep.subr.mxu0 %v9797_v15  ;;  %v9796_v44 = vld [vmem:[%s14911_s7 + $0xd0] sm:$0xff]  ;;  %11132 = vmatpush3.msra.mxu1 %v9804_v24 }
 0x693   : > { %11088 = vmatmul.mubr.msk.f32.gmra.mxu1 %vm882_vm0, %v14686_v45  ;;  %v9080_v53 = vmul.f32 %v9979_v48, %v9068_v30  ;;  %11102 = vmatpush3.msra.mxu0 %v9797_v15 }
 0x694   : > { %v9081_v62 = vmul.f32 %v9979_v48, %v9069_v1  ;;  %11103 = vmatprep.subr.mxu0 %v9796_v44  ;;  %11133 = vmatprep.subr.mxu1 %v9803_v25 }
 0x695   : > { %v14692_v39 = vadd.f32 %v9980_v20, %v9080_v53  ;;  %11104 = vmatpush3.msra.mxu0 %v9796_v44  ;;  %11134 = vmatpush3.msra.mxu1 %v9803_v25 }
 0x696   : > { %v14694_v63 = vadd.f32 %v9980_v20, %v9081_v62  ;;  %11105 = vmatprep.subr.mxu0 %v9795_v22  ;;  %v9802_v20 = vld [vmem:[%s14911_s7 + $0x100] sm:$0xff] }
 0x697   : > { %11090 = vmatprep.mubr.msk.f32.mxu1 %vm882_vm0, %v14692_v39  ;;  %11106 = vmatpush3.msra.mxu0 %v9795_v22 }
 0x698   : > { %11091 = vmatmul.mubr.msk.f32.gmra.mxu1 %vm882_vm0, %v14694_v63  ;;  %11107 = vmatprep.subr.mxu0 %v9794_v56 }
 0x699   : > { %11108 = vmatpush3.msra.mxu0 %v9794_v56  ;;  %11135 = vmatprep.subr.mxu1 %v9802_v20 }
 0x69a   : > { %11136 = vmatpush3.msra.mxu1 %v9802_v20 }
 0x746   : > { %v11083_v21 = vpop.f32.mrf.mxu1 }
 0x747   : > { %v9194_v38 = vadd.f32 %v11083_v21, %v9981_v58 }
 0x748   : > { %v9188_v7 = vpop.f32.mrf.mxu1 }
 0x749   : > { %v9189_v40 = vadd.f32 %v9981_v58, %v9188_v7  ;;  %v9228_v42 = vmax.f32 %v9194_v38, 0.0 }
 0x74b   : > { %v9227_v50 = vmax.f32 %v9189_v40, 0.0 }
 0x74d   : > { %11109 = vmatprep.mubr.msk.f32.mxu0 %vm882_vm0, %v9227_v50 }
 0x74e   : > { %11110 = vmatmul.mubr.msk.f32.vlgmr.msra.gmra.mxu0 %vm882_vm0, %v9228_v42 }
 0x74f   : > { %v11086_v43 = vpop.f32.mrf.mxu1 }
 0x750   : > { %v9204_v9 = vadd.f32 %v11086_v43, %v9981_v58 }
 0x751   : > { %v9198_v57 = vpop.f32.mrf.mxu1 }
 0x752   : > { %v9199_v16 = vadd.f32 %v9981_v58, %v9198_v57  ;;  %v9230_v3 = vmax.f32 %v9204_v9, 0.0 }
 0x753   : > { %v11089_v19 = vpop.f32.mrf.mxu1 }
 0x754   : > { %v9229_v60 = vmax.f32 %v9199_v16, 0.0  ;;  %v9214_v55 = vadd.f32 %v11089_v19, %v9981_v58 }
 0x755   : > { %v9208_v32 = vpop.f32.mrf.mxu1 }
 0x756   : > { %v9209_v13 = vadd.f32 %v9981_v58, %v9208_v32  ;;  %11112 = vmatprep.mubr.msk.f32.mxu0 %vm882_vm0, %v9229_v60  ;;  %v9232_v48 = vmax.f32 %v9214_v55, 0.0 }
 0x757   : > { %11113 = vmatmul.mubr.msk.f32.gmra.mxu0 %vm882_vm0, %v9230_v3 }
 0x758   : > { %v9231_v37 = vmax.f32 %v9209_v13, 0.0  ;;  %v11092_v36 = vpop.f32.mrf.mxu1 }
 0x759   : > { %v9224_v11 = vadd.f32 %v11092_v36, %v9981_v58 }
 0x75a   : > { %v9218_v28 = vpop.f32.mrf.mxu1  ;;  %11115 = vmatprep.mubr.msk.f32.mxu0 %vm882_vm0, %v9231_v37 }
 0x75b   : > { %v9219_v41 = vadd.f32 %v9981_v58, %v9218_v28  ;;  %11116 = vmatmul.mubr.msk.f32.gmra.mxu0 %vm882_vm0, %v9232_v48  ;;  %v9234_v14 = vmax.f32 %v9224_v11, 0.0 }
 0x75d   : > { %v9233_v27 = vmax.f32 %v9219_v41, 0.0 }
 0x75f   : > { %11118 = vmatprep.mubr.msk.f32.mxu0 %vm882_vm0, %v9233_v27 }
 0x760   : > { %11119 = vmatmul.mubr.msk.f32.gmra.mxu0 %vm882_vm0, %v9234_v14 }
 0x80e   : > { %v11111_v59 = vpop.f32.mrf.mxu0 }
 0x80f   : > { %v9335_v6 = vadd.f32 %v11111_v59, %v9990_v23 }
 0x810   : > { %v9329_v33 = vpop.f32.mrf.mxu0 }
 0x811   : > { %v9330_v34 = vadd.f32 %v9990_v23, %v9329_v33  ;;  %v9369_v2 = vmax.f32 %v9335_v6, 0.0 }
 0x813   : > { %v9368_v51 = vmax.f32 %v9330_v34, 0.0 }
 0x815   : > { %11137 = vmatprep.mubr.msk.f32.mxu1 %vm882_vm0, %v9368_v51 }
 0x816   : > { %11138 = vmatmul.mubr.msk.f32.vlgmr.msra.gmra.mxu1 %vm882_vm0, %v9369_v2 }
 0x817   : > { %v11114_v17 = vpop.f32.mrf.mxu0 }
 0x818   : > { %v9345_v46 = vadd.f32 %v11114_v17, %v9990_v23 }
 0x819   : > { %v9339_v49 = vpop.f32.mrf.mxu0 }
 0x81a   : > { %v9340_v31 = vadd.f32 %v9990_v23, %v9339_v49  ;;  %v9371_v5 = vmax.f32 %v9345_v46, 0.0 }
 0x81b   : > { %v11117_v61 = vpop.f32.mrf.mxu0 }
 0x81c   : > { %v9370_v54 = vmax.f32 %v9340_v31, 0.0  ;;  %v9355_v12 = vadd.f32 %v11117_v61, %v9990_v23 }
 0x81d   : > { %v9349_v30 = vpop.f32.mrf.mxu0 }
 0x81e   : > { %v9350_v1 = vadd.f32 %v9990_v23, %v9349_v30  ;;  %11140 = vmatprep.mubr.msk.f32.mxu1 %vm882_vm0, %v9370_v54  ;;  %v9373_v15 = vmax.f32 %v9355_v12, 0.0 }
 0x81f   : > { %11141 = vmatmul.mubr.msk.f32.gmra.mxu1 %vm882_vm0, %v9371_v5 }
 0x820   : > { %v9372_v53 = vmax.f32 %v9350_v1, 0.0  ;;  %v11120_v62 = vpop.f32.mrf.mxu0 }
 0x821   : > { %v9365_v44 = vadd.f32 %v11120_v62, %v9990_v23 }
 0x822   : > { %v9359_v22 = vpop.f32.mrf.mxu0  ;;  %11143 = vmatprep.mubr.msk.f32.mxu1 %vm882_vm0, %v9372_v53 }
 0x823   : > { %v9360_v56 = vadd.f32 %v9990_v23, %v9359_v22  ;;  %11144 = vmatmul.mubr.msk.f32.gmra.mxu1 %vm882_vm0, %v9373_v15  ;;  %v9375_v26 = vmax.f32 %v9365_v44, 0.0 }
 0x825   : > { %v9374_v47 = vmax.f32 %v9360_v56, 0.0 }
 0x827   : > { %11146 = vmatprep.mubr.msk.f32.mxu1 %vm882_vm0, %v9374_v47 }
 0x828   : > { %11147 = vmatmul.mubr.msk.f32.gmra.mxu1 %vm882_vm0, %v9375_v26 }
 0x8d6   : > { %v11139_v8 = vpop.f32.mrf.mxu1 }
 0x8d7   : > { %v9476_v58 = vadd.f32 %v11139_v8, %v9999_v10 }
 0x8d8   : > { %v9470_v21 = vpop.f32.mrf.mxu1 }
 0x8d9   : > { %v9510_v38 = vadd.f32 %v9476_v58, %v14664_v29  ;;  %v9471_v7 = vadd.f32 %v9999_v10, %v9470_v21 }
 0x8db   : > { %v9509_v40 = vadd.f32 %v9471_v7, %v14662_v18  ;;  %v9520_v50 = vsel %vm882_vm0, %v9510_v38, 0.0 }
 0x8dc   : > { %9521 = vadd.xlane.f32.xlu0 %v9520_v50 }
 0x8dd   : > { %v9517_v42 = vsel %vm882_vm0, %v9509_v40, 0.0 }
 0x8de   : > { %9518 = vadd.xlane.f32.xlu1 %v9517_v42 }
 0x8df   : > { %v11142_v43 = vpop.f32.mrf.mxu1 }
 0x8e0   : > { %v9486_v9 = vadd.f32 %v11142_v43, %v9999_v10 }
 0x8e1   : > { %v9480_v57 = vpop.f32.mrf.mxu1 }
 0x8e2   : > { %v9512_v16 = vadd.f32 %v9486_v9, %v14677_v0  ;;  %v9481_v19 = vadd.f32 %v9999_v10, %v9480_v57 }
 0x8e3   : > { %v11145_v60 = vpop.f32.mrf.mxu1 }
 0x8e4   : > { %v9511_v3 = vadd.f32 %v9481_v19, %v14671_v4  ;;  %v9496_v55 = vadd.f32 %v11145_v60, %v9999_v10  ;;  %v9526_v29 = vsel %vm882_vm0, %v9512_v16, 0.0 }
 0x8e5   : > { %9527 = vadd.xlane.f32.xlu0 %v9526_v29  ;;  %v9490_v18 = vpop.f32.mrf.mxu1 }
 0x8e6   : > { %v9514_v32 = vadd.f32 %v9496_v55, %v14686_v45  ;;  %v9491_v13 = vadd.f32 %v9999_v10, %v9490_v18  ;;  %v9523_v37 = vsel %vm882_vm0, %v9511_v3, 0.0 }
 0x8e7   : > { %9524 = vadd.xlane.f32.xlu1 %v9523_v37 }
 0x8e8   : > { %v9513_v36 = vadd.f32 %v9491_v13, %v14682_v52  ;;  %v11148_v48 = vpop.f32.mrf.mxu1  ;;  %v9532_v0 = vsel %vm882_vm0, %v9514_v32, 0.0 }
 0x8e9   : > { %v9506_v11 = vadd.f32 %v11148_v48, %v9999_v10  ;;  %9533 = vadd.xlane.f32.xlu0 %v9532_v0 }
 0x8ea   : > { %v9500_v28 = vpop.f32.mrf.mxu1  ;;  %v9529_v4 = vsel %vm882_vm0, %v9513_v36, 0.0 }
 0x8eb   : > { %v9516_v41 = vadd.f32 %v9506_v11, %v14694_v63  ;;  %v9501_v27 = vadd.f32 %v9999_v10, %v9500_v28  ;;  %9530 = vadd.xlane.f32.xlu1 %v9529_v4 }
 0x8ed   : > { %v9515_v45 = vadd.f32 %v9501_v27, %v14692_v39  ;;  %v9538_v14 = vsel %vm882_vm0, %v9516_v41, 0.0  ;;  %v10008_v27 = vld [vmem:[%s14912_s8 + $0x6] ss:$0 sm:$0xff] }
 0x8ee   : > { %9539 = vadd.xlane.f32.xlu0 %v9538_v14 }
 0x8ef   : > { %v9535_v35 = vsel %vm882_vm0, %v9515_v45, 0.0 }
 0x8f0   : > { %9536 = vadd.xlane.f32.xlu1 %v9535_v35 }
 0x965   : > { %v9522_v52 = vpop.xlane.xlu0 %9521 }
 0x966   : > { %v9542_v24 = vmul.f32 0.015625, %v9522_v52 }
 0x967   : > { %v9519_v25 = vpop.xlane.xlu1 %9518 }
 0x968   : > { %v14777_v20 = vsub.f32 %v9510_v38, %v9542_v24  ;;  %v9541_v23 = vmul.f32 0.015625, %v9519_v25  ;;  %v10009_v24 = vld [vmem:[%s14912_s8 + $0x7] ss:$0 sm:$0xff] }
 0x96a   : > { %v14779_v59 = vsub.f32 %v9509_v40, %v9541_v23  ;;  %v9558_v63 = vmul.f32 %v14777_v20, %v14777_v20 }
 0x96c   : > { %v9568_v6 = vsel %vm882_vm0, %v9558_v63, 0.0  ;;  %v9557_v39 = vmul.f32 %v14779_v59, %v14779_v59 }
 0x96d   : > { %9569 = vadd.xlane.f32.xlu0 %v9568_v6 }
 0x96e   : > { %v9528_v33 = vpop.xlane.xlu0 %9527  ;;  %v9565_v51 = vsel %vm882_vm0, %v9557_v39, 0.0 }
 0x96f   : > { %v9544_v34 = vmul.f32 0.015625, %v9528_v33  ;;  %9566 = vadd.xlane.f32.xlu1 %v9565_v51 }
 0x970   : > { %v9525_v2 = vpop.xlane.xlu1 %9524 }
 0x971   : > { %v14787_v17 = vsub.f32 %v9512_v16, %v9544_v34  ;;  %v9543_v46 = vmul.f32 0.015625, %v9525_v2 }
 0x972   : > { %v9534_v49 = vpop.xlane.xlu0 %9533 }
 0x973   : > { %v14789_v31 = vsub.f32 %v9511_v3, %v9543_v46  ;;  %v9546_v61 = vmul.f32 0.015625, %v9534_v49  ;;  %v9560_v54 = vmul.f32 %v14787_v17, %v14787_v17 }
 0x974   : > { %v9531_v5 = vpop.xlane.xlu1 %9530 }
 0x975   : > { %v14793_v12 = vsub.f32 %v9514_v32, %v9546_v61  ;;  %v9545_v30 = vmul.f32 0.015625, %v9531_v5  ;;  %v9574_v1 = vsel %vm882_vm0, %v9560_v54, 0.0  ;;  %v9559_v53 = vmul.f32 %v14789_v31, %v14789_v31 }
 0x976   : > { %9575 = vadd.xlane.f32.xlu0 %v9574_v1 }
 0x977   : > { %v14798_v62 = vsub.f32 %v9513_v36, %v9545_v30  ;;  %v9540_v15 = vpop.xlane.xlu0 %9539  ;;  %v9571_v44 = vsel %vm882_vm0, %v9559_v53, 0.0  ;;  %v9562_v22 = vmul.f32 %v14793_v12, %v14793_v12 }
 0x978   : > { %v9548_v56 = vmul.f32 0.015625, %v9540_v15  ;;  %9572 = vadd.xlane.f32.xlu1 %v9571_v44 }
 0x979   : > { %v9537_v47 = vpop.xlane.xlu1 %9536  ;;  %v9580_v26 = vsel %vm882_vm0, %v9562_v22, 0.0  ;;  %v9561_v10 = vmul.f32 %v14798_v62, %v14798_v62 }
 0x97a   : > { %v14806_v8 = vsub.f32 %v9516_v41, %v9548_v56  ;;  %v9547_v58 = vmul.f32 0.015625, %v9537_v47  ;;  %9581 = vadd.xlane.f32.xlu0 %v9580_v26 }
 0x97b   : > { %v9577_v21 = vsel %vm882_vm0, %v9561_v10, 0.0 }
 0x97c   : > { %v14809_v38 = vsub.f32 %v9515_v45, %v9547_v58  ;;  %9578 = vadd.xlane.f32.xlu1 %v9577_v21  ;;  %v9564_v7 = vmul.f32 %v14806_v8, %v14806_v8 }
 0x97e   : > { %v9586_v40 = vsel %vm882_vm0, %v9564_v7, 0.0  ;;  %v9563_v50 = vmul.f32 %v14809_v38, %v14809_v38 }
 0x97f   : > { %9587 = vadd.xlane.f32.xlu0 %v9586_v40 }
 0x980   : > { %v9583_v42 = vsel %vm882_vm0, %v9563_v50, 0.0 }
 0x981   : > { %9584 = vadd.xlane.f32.xlu1 %v9583_v42 }
 0x9f6   : > { %v9570_v43 = vpop.xlane.xlu0 %9569 }
 0x9f7   : > { %v9590_v9 = vmul.f32 0.015625, %v9570_v43 }
 0x9f8   : > { %v9567_v57 = vpop.xlane.xlu1 %9566 }
 0x9f9   : > { %v9598_v16 = vadd.f32 1e-05, %v9590_v9  ;;  %v9589_v19 = vmul.f32 0.015625, %v9567_v57 }
 0x9fb   : > { %11333 = vrsqrt.f32 %v9598_v16  ;;  %v9597_v60 = vadd.f32 1e-05, %v9589_v19 }
 0x9fd   : > { %11335 = vrsqrt.f32 %v9597_v60 }
 0x9ff   : > { %v9576_v3 = vpop.xlane.xlu0 %9575 }
 0xa00   : > { %v9592_v55 = vmul.f32 0.015625, %v9576_v3 }
 0xa01   : > { %v9573_v29 = vpop.xlane.xlu1 %9572 }
 0xa02   : > { %v9600_v18 = vadd.f32 1e-05, %v9592_v55  ;;  %v9591_v32 = vmul.f32 0.015625, %v9573_v29 }
 0xa03   : > { %v9582_v13 = vpop.xlane.xlu0 %9581 }
 0xa04   : > { %11337 = vrsqrt.f32 %v9600_v18  ;;  %v9599_v37 = vadd.f32 1e-05, %v9591_v32  ;;  %v9594_v36 = vmul.f32 0.015625, %v9582_v13 }
 0xa05   : > { %v9579_v48 = vpop.xlane.xlu1 %9578 }
 0xa06   : > { %11339 = vrsqrt.f32 %v9599_v37  ;;  %v9602_v0 = vadd.f32 1e-05, %v9594_v36  ;;  %v9593_v11 = vmul.f32 0.015625, %v9579_v48 }
 0xa08   : > { %11341 = vrsqrt.f32 %v9602_v0  ;;  %v9601_v28 = vadd.f32 1e-05, %v9593_v11  ;;  %v9588_v4 = vpop.xlane.xlu0 %9587  ;;  %v11334_v41 = vpop.eup %11333 }
 0xa09   : > { %v9596_v45 = vmul.f32 0.015625, %v9588_v4  ;;  %v9614_v14 = vmul.f32 %v11334_v41, %v14777_v20 }
 0xa0a   : > { %11343 = vrsqrt.f32 %v9601_v28  ;;  %v9585_v35 = vpop.xlane.xlu1 %9584  ;;  %v11336_v52 = vpop.eup %11335 }
 0xa0b   : > { %v9604_v25 = vadd.f32 1e-05, %v9596_v45  ;;  %v9595_v23 = vmul.f32 0.015625, %v9585_v35  ;;  %v9626_v63 = vmul.f32 %v10008_v27, %v9614_v14  ;;  %v9613_v6 = vmul.f32 %v11336_v52, %v14779_v59 }
 0xa0d   : > { %11345 = vrsqrt.f32 %v9604_v25  ;;  %v9603_v39 = vadd.f32 1e-05, %v9595_v23  ;;  %v9638_v33 = vadd.f32 %v10009_v24, %v9626_v63  ;;  %v9625_v34 = vmul.f32 %v10008_v27, %v9613_v6 }
 0xa0f   : > { %11347 = vrsqrt.f32 %v9603_v39  ;;  %9646 = vst.msk [vmem:[%s14828_s27 + $0x8] sm:$0xff] %vm882_vm0, %v9638_v33  ;;  %v9637_v20 = vadd.f32 %v10009_v24, %v9625_v34 }
 0xa11   : > { %v11338_v51 = vpop.eup %11337  ;;  %9645 = vst.msk [vmem:[%s14828_s27] sm:$0xff] %vm882_vm0, %v9637_v20 }
 0xa12   : > { %v9616_v2 = vmul.f32 %v11338_v51, %v14787_v17 }
 0xa13   : > { %v11340_v59 = vpop.eup %11339 }
 0xa14   : > { %v9628_v46 = vmul.f32 %v10008_v27, %v9616_v2  ;;  %v9615_v49 = vmul.f32 %v11340_v59, %v14789_v31 }
 0xa15   : > { %v11342_v61 = vpop.eup %11341 }
 0xa16   : > { %v9640_v54 = vadd.f32 %v10009_v24, %v9628_v46  ;;  %v9627_v5 = vmul.f32 %v10008_v27, %v9615_v49  ;;  %v9618_v30 = vmul.f32 %v11342_v61, %v14793_v12 }
 0xa17   : > { %v11344_v1 = vpop.eup %11343 }
 0xa18   : > { %9648 = vst.msk [vmem:[%s14828_s27 + $0x18] sm:$0xff] %vm882_vm0, %v9640_v54  ;;  %v9639_v53 = vadd.f32 %v10009_v24, %v9627_v5  ;;  %v9630_v15 = vmul.f32 %v10008_v27, %v9618_v30  ;;  %v9617_v17 = vmul.f32 %v11344_v1, %v14798_v62 }
 0xa1a   : > { %v11346_v44 = vpop.eup %11345  ;;  %9647 = vst.msk [vmem:[%s14828_s27 + $0x10] sm:$0xff] %vm882_vm0, %v9639_v53  ;;  %v9642_v31 = vadd.f32 %v10009_v24, %v9630_v15  ;;  %v9629_v22 = vmul.f32 %v10008_v27, %v9617_v17 }
 0xa1b   : > { %v9620_v56 = vmul.f32 %v11346_v44, %v14806_v8 }
 0xa1c   : > { %v11348_v12 = vpop.eup %11347  ;;  %9650 = vst.msk [vmem:[%s14828_s27 + $0x28] sm:$0xff] %vm882_vm0, %v9642_v31  ;;  %v9641_v47 = vadd.f32 %v10009_v24, %v9629_v22 }
 0xa1d   : > { %v9632_v26 = vmul.f32 %v10008_v27, %v9620_v56  ;;  %v9619_v10 = vmul.f32 %v11348_v12, %v14809_v38 }
 0xa1e   : > { %9649 = vst.msk [vmem:[%s14828_s27 + $0x20] sm:$0xff] %vm882_vm0, %v9641_v47 }
 0xa1f   : > { %v9644_v62 = vadd.f32 %v10009_v24, %v9632_v26  ;;  %v9631_v58 = vmul.f32 %v10008_v27, %v9619_v10 }
 0xa21   : > { %9652 = vst.msk [vmem:[%s14828_s27 + $0x38] sm:$0xff] %vm882_vm0, %v9644_v62  ;;  %v9643_v8 = vadd.f32 %v10009_v24, %v9631_v58 }
 0xa23   : > { %9651 = vst.msk [vmem:[%s14828_s27 + $0x30] sm:$0xff] %vm882_vm0, %v9643_v8 }
 0xa24   : > { %11362 = shalt.err (!%p11359_p7)
}
 0xa25   : > { %s11363_s22 = scalar_lea.hbm %s14853_s26, 1024  ;;  %s11367_s24 = scalar_lea.hbm %s14913_s9, 2048 }
 0xa26   : > { %p11364_p8 = scmp.ne.s32.totalorder %s14853_s26, %s11363_s22  ;;  %p11368_p11 = scmp.lt.s32.totalorder %s14853_s26, %s14913_s9 }
 0xa27   : > { %p11369_p12 = scmp.lt.s32.totalorder %s11367_s24, %s11363_s22 }
 0xa28   : > { %p11365_p9 = pnand %p11364_p8, %p11525_p5 }
 0xa29   : > { %p11370_p13 = por %p11369_p12, %p11368_p11 }
 0xa2a   : > { %p11366_p10 = pneg %p11365_p9 }
 0xa2c   : > { %p11371_p0 = pnand %p11370_p13, %p11366_p10 }
 0xa2e   : > { %11374 = shalt.err (!%p11371_p0)
}
 0xa2f   : > { %s11436_s23 = smov 128  }
 0xa30   : > { %11185 = dma.vmem_to_hbm [thread:$0]  (%p11525_p5), %s14857_s28, 1024, %s14853_s26, %s14863_s13, %s11436_s23, %s11436_s23, %s11431_s14  }
 0xa31 PF: > { %p11191_p1 = scmp.ge.s32.totalorder %s11409_s12, 2  ;;  %s9682_s17 = sand.u32 1, %s11397_s30  }
 0xa32   : > { %s9683_s21 = scalar_lea.sflag [#allocation3], %s9682_s17 }
 0xa33   : > { %p11188_p2 = pnand %p11191_p1, %p11529_p6 }
 0xa35   : > { %p11189_p3 = pneg %p11188_p2 }
 0xa37   : > { %11392 = dma.done.wait (%p11189_p3), %s9683_s21, 1024  }
 0xa38   : > { %11394 = vsyncadd (%p11189_p3), %s9683_s21, 4294966272  ;;  %p19_p4 = scmp.ge.s32.totalorder %s11512_s15, 4   ;;  %s15095_s30 = smov %s11401_s10 }
 0xa39   : > { %s15096_s10 = smov %s11405_s11  ;;  %s15097_s11 = smov %s11523_s18 }
 0xa3a   : > { %s15098_s12 = smov %s11512_s15  ;;  %21 = sbr.rel (!%p19_p4) target bundleno = 5 (0x5), region = 104 }
 0xa3f   :  { %9688 = vsyncpa [#allocation3], 1 }
 0xa40   :  { %9690 = vsyncpa [#allocation3 + $0x1], 1 }

</bundles_post_ra>
